<compile_context>
chip_gen: v6e
topology: v6e:2x2x1
jax: 0.10.0
libtpu: 0.0.40
codegen_flags: <defaults>
</compile_context>

<pallas_src>
import functools

import jax
import jax.numpy as jnp
from jax import lax
from jax.experimental import pallas as pl
from jax.experimental.pallas import tpu as pltpu

LANE = 128


def _round_up(x, m):
    return (x + m - 1) // m * m


# ------------- fused conv2x2 + bias + ReLU + maxpool2x2 kernel --------------

def _conv_pool_kernel(x_ref, w_ref, b_ref, o_ref, *, H, W, hp, wp, out_pad):
    """One batch element.

    x_ref : (1, rows >= H*W+1, CinP)  flattened NHWC input, row = h*W + w
    w_ref : (4, CinP, CoutP)          2x2 taps, tap index = dy*2 + dx
    b_ref : (1, CoutP)
    o_ref : (1, hp*wp + out_pad, CoutP) pooled output, row = i*wp + j
    """
    ho = H - 1
    m = ho * W
    cout_p = w_ref.shape[-1]

    # Conv as 4 shifted MXU dots over contiguous row slabs (in-kernel im2col).
    acc = None
    for idx, (dy, dx) in enumerate(((0, 0), (0, 1), (1, 0), (1, 1))):
        off = dy * W + dx
        d = jnp.dot(x_ref[0, pl.ds(off, m), :], w_ref[idx],
                    preferred_element_type=jnp.float32)
        acc = d if acc is None else acc + d
    act = jnp.maximum(acc + b_ref[...], 0.0)                 # (m, CoutP)

    # 2x2 / stride-2 max pool: 2x2 window max via 4 shifted contiguous views,
    # then gather the stride-2 anchors with tiny static row copies.  Anchors
    # never touch the wrap-around column w = W-1, so no garbage is selected.
    mw = 2 * (hp - 1) * W + 2 * (wp - 1) + 1                 # rows of win needed
    win = jnp.maximum(jnp.maximum(act[0:mw], act[1:mw + 1]),
                      jnp.maximum(act[W:mw + W], act[W + 1:mw + W + 1]))
    for i in range(hp):
        for j in range(wp):
            a = 2 * i * W + 2 * j
            o_ref[0, pl.ds(i * wp + j, 1), :] = win[a:a + 1, :]
    if out_pad:
        o_ref[0, pl.ds(hp * wp, out_pad), :] = jnp.zeros(
            (out_pad, cout_p), jnp.float32)


def conv2x2_relu_pool(x_flat, w4, bias, *, H, W, out_pad):
    """x_flat: (N, rows>=H*W+1, CinP) -> pooled (N, hp*wp + out_pad, CoutP)."""
    N, rows, cin_p = x_flat.shape
    assert rows >= H * W + 1, (rows, H, W)
    cout_p = w4.shape[-1]
    hp, wp = (H - 1) // 2, (W - 1) // 2
    out_rows = hp * wp + out_pad
    kernel = functools.partial(_conv_pool_kernel, H=H, W=W, hp=hp, wp=wp,
                               out_pad=out_pad)
    return pl.pallas_call(
        kernel,
        out_shape=jax.ShapeDtypeStruct((N, out_rows, cout_p), jnp.float32),
        grid=(N,),
        in_specs=[
            pl.BlockSpec((1, rows, cin_p), lambda n: (n, 0, 0)),
            pl.BlockSpec((4, cin_p, cout_p), lambda n: (0, 0, 0)),
            pl.BlockSpec((1, cout_p), lambda n: (0, 0)),
        ],
        out_specs=pl.BlockSpec((1, out_rows, cout_p), lambda n: (n, 0, 0)),
        compiler_params=pltpu.CompilerParams(
            dimension_semantics=("parallel",)),
    )(x_flat, w4, bias)


# --------------------- fused fc1 -> fc2 -> fc3 kernel -----------------------

def _mlp_kernel(x_ref, w1_ref, b1_ref, w2_ref, b2_ref, w3_ref, b3_ref, o_ref):
    h = jnp.dot(x_ref[...], w1_ref[...], preferred_element_type=jnp.float32)
    h = jnp.maximum(h + b1_ref[...], 0.0)
    # TODO(synk): nn.Dropout(0.7) is identity in eval mode; no mask applied.
    h = jnp.dot(h, w2_ref[...], preferred_element_type=jnp.float32)
    h = jnp.maximum(h + b2_ref[...], 0.0)
    h = jnp.dot(h, w3_ref[...], preferred_element_type=jnp.float32)
    o_ref[...] = (h + b3_ref[...]).astype(o_ref.dtype)


def mlp3(x, w1, b1, w2, b2, w3, b3, *, tile_m=256):
    M, K = x.shape
    D1, D2, D3 = w1.shape[1], w2.shape[1], w3.shape[1]
    tm = min(tile_m, M)
    return pl.pallas_call(
        _mlp_kernel,
        out_shape=jax.ShapeDtypeStruct((M, D3), jnp.float32),
        grid=(pl.cdiv(M, tm),),
        in_specs=[
            pl.BlockSpec((tm, K), lambda i: (i, 0)),
            pl.BlockSpec((K, D1), lambda i: (0, 0)),
            pl.BlockSpec((1, D1), lambda i: (0, 0)),
            pl.BlockSpec((D1, D2), lambda i: (0, 0)),
            pl.BlockSpec((1, D2), lambda i: (0, 0)),
            pl.BlockSpec((D2, D3), lambda i: (0, 0)),
            pl.BlockSpec((1, D3), lambda i: (0, 0)),
        ],
        out_specs=pl.BlockSpec((tm, D3), lambda i: (i, 0)),
        compiler_params=pltpu.CompilerParams(
            dimension_semantics=("parallel",)),
    )(x, w1, b1, w2, b2, w3, b3)


# ------------------------------ parameters ----------------------------------

def init_params(key, in_hw):
    """Deterministic synthetic params, PyTorch-equivalent logical shapes
    (conv weights HWIO, linear weights (in, out))."""
    ks = jax.random.split(key, 10)

    def u(k, shape, fan_in):
        bound = 1.0 / jnp.sqrt(jnp.float32(fan_in))
        return jax.random.uniform(k, shape, jnp.float32, -bound, bound)

    h1 = (in_hw - 1) // 2          # after conv1 (k=2) + pool2x2
    h2 = (h1 - 1) // 2             # after conv2 (k=2) + pool2x2
    to_linear = 100 * h2 * h2      # mirrors self._to_linear

    p = dict(
        w1=u(ks[0], (2, 2, 3, 50), 3 * 4),    b1=u(ks[1], (50,), 3 * 4),
        w2=u(ks[2], (2, 2, 50, 100), 50 * 4), b2=u(ks[3], (100,), 50 * 4),
        wf1=u(ks[4], (to_linear, 500), to_linear), bf1=u(ks[5], (500,), to_linear),
        wf2=u(ks[6], (500, 100), 500),             bf2=u(ks[7], (100,), 500),
        wf3=u(ks[8], (100, 4), 100),               bf3=u(ks[9], (4,), 100),
    )
    return p, to_linear, h2


def prepare_kernel_params(p, *, h2, w2):
    """Pad channel dims to lane width (zero columns/rows are inert) and fold
    the NCHW flatten permutation into fc1's weight rows."""
    cin, cin_p = 3, LANE
    c1, c1p = 50, LANE
    c2, c2p = 100, LANE
    d1, d1p = 500, _round_up(500, LANE)      # 512
    d3p = LANE

    def pad_to(a, axis, size):
        pad = [(0, 0)] * a.ndim
        pad[axis] = (0, size - a.shape[axis])
        return jnp.pad(a, pad)

    w1k = pad_to(pad_to(p["w1"].reshape(4, cin, c1), 1, cin_p), 2, c1p)   # (4,128,128)
    b1k = pad_to(p["b1"], 0, c1p).reshape(1, c1p)

    w2k = pad_to(pad_to(p["w2"].reshape(4, c1, c2), 1, c1p), 2, c2p)      # (4,128,128)
    b2k = pad_to(p["b2"], 0, c2p).reshape(1, c2p)

    # fc1: PyTorch flattens (C, H, W); our activation is (s = i*wp+j, c) with c
    # padded to 128.  Permute+pad wf1 rows so act_flat @ wf1k == reference.
    s2 = h2 * w2
    wf1 = p["wf1"].reshape(c2, s2, d1)            # row c*s2+s  ->  [c, s, :]
    wf1 = jnp.transpose(wf1, (1, 0, 2))           # (s2, c2, d1)
    wf1 = pad_to(wf1, 1, c2p).reshape(s2 * c2p, d1)
    wf1k = pad_to(wf1, 1, d1p)                    # (s2*128, 512)
    bf1k = pad_to(p["bf1"], 0, d1p).reshape(1, d1p)

    wf2k = pad_to(pad_to(p["wf2"], 0, d1p), 1, c2p)              # (512, 128)
    bf2k = pad_to(p["bf2"], 0, c2p).reshape(1, c2p)

    wf3k = pad_to(pad_to(p["wf3"], 0, c2p), 1, d3p)              # (128, 128)
    bf3k = pad_to(p["bf3"], 0, d3p).reshape(1, d3p)

    return dict(w1k=w1k, b1k=b1k, w2k=w2k, b2k=b2k,
                wf1k=wf1k, bf1k=bf1k, wf2k=wf2k, bf2k=bf2k,
                wf3k=wf3k, bf3k=bf3k)


# ------------------------------ Cans forward --------------------------------

def cans_forward(kp, x_nchw):
    n, cin, hh, ww = x_nchw.shape
    # NCHW -> NHWC, flattened so rows index (h*W + w) and lanes index channels.
    # Pad W extra zero rows (so conv tap slabs never read OOB) and pad channels
    # to the lane width.
    x = jnp.transpose(x_nchw, (0, 2, 3, 1)).reshape(n, hh * ww, cin)
    x = jnp.pad(x, ((0, 0), (0, ww), (0, LANE - cin)))
    hp1, wp1 = (hh - 1) // 2, (ww - 1) // 2
    # Layer-1 output carries wp1 extra zero rows so it can feed conv2 directly.
    x = conv2x2_relu_pool(x, kp["w1k"], kp["b1k"], H=hh, W=ww, out_pad=wp1)
    hh, ww = hp1, wp1
    x = conv2x2_relu_pool(x, kp["w2k"], kp["b2k"], H=hh, W=ww, out_pad=0)
    # Contiguous flatten; NCHW-flatten permutation is folded into wf1k rows.
    x = x.reshape(n, x.shape[1] * x.shape[2])
    logits = mlp3(x, kp["wf1k"], kp["bf1k"], kp["wf2k"], kp["bf2k"],
                  kp["wf3k"], kp["bf3k"])
    return logits[:, :4]


# ---------------------------- pure-JAX reference ----------------------------

def cans_reference(params, x_nchw, to_linear):
    hi = lax.Precision.HIGHEST
    w1 = jnp.transpose(params["w1"], (3, 2, 0, 1))   # HWIO -> OIHW
    w2 = jnp.transpose(params["w2"], (3, 2, 0, 1))
    dn1 = lax.conv_dimension_numbers(x_nchw.shape, w1.shape, ("NCHW", "OIHW", "NCHW"))
    y = lax.conv_general_dilated(x_nchw, w1, (1, 1), "VALID",
                                 dimension_numbers=dn1, precision=hi)
    y = jnp.maximum(y + params["b1"][None, :, None, None], 0.0)
    y = lax.reduce_window(y, -jnp.inf, lax.max, (1, 1, 2, 2), (1, 1, 2, 2), "VALID")
    dn2 = lax.conv_dimension_numbers(y.shape, w2.shape, ("NCHW", "OIHW", "NCHW"))
    y = lax.conv_general_dilated(y, w2, (1, 1), "VALID",
                                 dimension_numbers=dn2, precision=hi)
    y = jnp.maximum(y + params["b2"][None, :, None, None], 0.0)
    y = lax.reduce_window(y, -jnp.inf, lax.max, (1, 1, 2, 2), (1, 1, 2, 2), "VALID")
    y = y.reshape(y.shape[0], to_linear)
    y = jnp.maximum(jnp.dot(y, params["wf1"], precision=hi) + params["bf1"], 0.0)
    y = jnp.maximum(jnp.dot(y, params["wf2"], precision=hi) + params["bf2"], 0.0)
    return jnp.dot(y, params["wf3"], precision=hi) + params["bf3"]


if __name__ == "__main__":
    key = jax.random.PRNGKey(0)
    kparam_key, kx = jax.random.split(key)

    H = 16  # small spatial size; _to_linear re-derived for this size
    params, to_linear, h2 = init_params(kparam_key, H)
    kparams = prepare_kernel_params(params, h2=h2, w2=h2)
    x = jax.random.normal(kx, (2, 3, H, H), jnp.float32)   # NCHW, like PyTorch

    fwd = jax.jit(cans_forward)
    out = jax.block_until_ready(fwd(kparams, x))

    ref = cans_reference(params, x, to_linear)
    assert out.shape == (2, 4), out.shape
    assert jnp.allclose(out, ref, rtol=2e-3, atol=2e-3), "Pallas output != reference"
    print("KERNEL_OK")
</pallas_src>

<mosaic_0001>
module attributes {stable_mosaic.version = 11 : i64} {
  func.func @_conv_pool_kernel(%arg0: i32, %arg1: memref<1x272x128xf32, #tpu.memory_space<vmem>>, %arg2: memref<4x128x128xf32, #tpu.memory_space<vmem>>, %arg3: memref<1x128xf32, #tpu.memory_space<vmem>>, %arg4: memref<1x56x128xf32, #tpu.memory_space<vmem>>) attributes {dimension_semantics = [#tpu.dimension_semantics<parallel>], iteration_bounds = array<i64: 2>, scalar_prefetch = 0 : i64, scratch_operands = 0 : i64, tpu.core_type = #tpu.core_type<tc>, window_params = [{transform_indices = @transform_0, window_bounds = array<i64: 1, 272, 128>}, {pipeline_mode = #tpu.pipeline_mode<synchronous>, transform_indices = @transform_1, window_bounds = array<i64: 4, 128, 128>}, {pipeline_mode = #tpu.pipeline_mode<synchronous>, transform_indices = @transform_2, window_bounds = array<i64: 1, 128>}, {transform_indices = @transform_3, window_bounds = array<i64: 1, 56, 128>}]} {
    %c0 = arith.constant 0 : index
    %c0_0 = arith.constant 0 : index
    %c0_1 = arith.constant 0 : index
    %0 = vector.load %arg1[%c0, %c0_0, %c0_1] : memref<1x272x128xf32, #tpu.memory_space<vmem>>, vector<1x240x128xf32>
    %1 = vector.shape_cast %0 : vector<1x240x128xf32> to vector<240x128xf32>
    %c0_2 = arith.constant 0 : index
    %c0_3 = arith.constant 0 : index
    %c0_4 = arith.constant 0 : index
    %2 = vector.load %arg2[%c0_2, %c0_3, %c0_4] : memref<4x128x128xf32, #tpu.memory_space<vmem>>, vector<1x128x128xf32>
    %3 = vector.shape_cast %2 : vector<1x128x128xf32> to vector<128x128xf32>
    %cst = arith.constant dense<0.000000e+00> : vector<240x128xf32>
    %4 = tpu.matmul %1, %3, %cst {dimension_numbers = #tpu.dot_dimension_numbers<[1], [0], [0], [1], [0, 0, 1, 1], [], []>} : vector<240x128xf32>, vector<128x128xf32>, vector<240x128xf32> -> vector<240x128xf32>
    %c0_5 = arith.constant 0 : index
    %c1 = arith.constant 1 : index
    %c0_6 = arith.constant 0 : index
    %5 = vector.load %arg1[%c0_5, %c1, %c0_6] : memref<1x272x128xf32, #tpu.memory_space<vmem>>, vector<1x240x128xf32>
    %6 = vector.shape_cast %5 : vector<1x240x128xf32> to vector<240x128xf32>
    %c1_7 = arith.constant 1 : index
    %c0_8 = arith.constant 0 : index
    %c0_9 = arith.constant 0 : index
    %7 = vector.load %arg2[%c1_7, %c0_8, %c0_9] : memref<4x128x128xf32, #tpu.memory_space<vmem>>, vector<1x128x128xf32>
    %8 = vector.shape_cast %7 : vector<1x128x128xf32> to vector<128x128xf32>
    %cst_10 = arith.constant dense<0.000000e+00> : vector<240x128xf32>
    %9 = tpu.matmul %6, %8, %cst_10 {dimension_numbers = #tpu.dot_dimension_numbers<[1], [0], [0], [1], [0, 0, 1, 1], [], []>} : vector<240x128xf32>, vector<128x128xf32>, vector<240x128xf32> -> vector<240x128xf32>
    %10 = arith.addf %4, %9 : vector<240x128xf32>
    %c0_11 = arith.constant 0 : index
    %c16 = arith.constant 16 : index
    %c0_12 = arith.constant 0 : index
    %11 = vector.load %arg1[%c0_11, %c16, %c0_12] : memref<1x272x128xf32, #tpu.memory_space<vmem>>, vector<1x240x128xf32>
    %12 = vector.shape_cast %11 : vector<1x240x128xf32> to vector<240x128xf32>
    %c2 = arith.constant 2 : index
    %c0_13 = arith.constant 0 : index
    %c0_14 = arith.constant 0 : index
    %13 = vector.load %arg2[%c2, %c0_13, %c0_14] : memref<4x128x128xf32, #tpu.memory_space<vmem>>, vector<1x128x128xf32>
    %14 = vector.shape_cast %13 : vector<1x128x128xf32> to vector<128x128xf32>
    %cst_15 = arith.constant dense<0.000000e+00> : vector<240x128xf32>
    %15 = tpu.matmul %12, %14, %cst_15 {dimension_numbers = #tpu.dot_dimension_numbers<[1], [0], [0], [1], [0, 0, 1, 1], [], []>} : vector<240x128xf32>, vector<128x128xf32>, vector<240x128xf32> -> vector<240x128xf32>
    %16 = arith.addf %10, %15 : vector<240x128xf32>
    %c0_16 = arith.constant 0 : index
    %c17 = arith.constant 17 : index
    %c0_17 = arith.constant 0 : index
    %17 = vector.load %arg1[%c0_16, %c17, %c0_17] : memref<1x272x128xf32, #tpu.memory_space<vmem>>, vector<1x240x128xf32>
    %18 = vector.shape_cast %17 : vector<1x240x128xf32> to vector<240x128xf32>
    %c3 = arith.constant 3 : index
    %c0_18 = arith.constant 0 : index
    %c0_19 = arith.constant 0 : index
    %19 = vector.load %arg2[%c3, %c0_18, %c0_19] : memref<4x128x128xf32, #tpu.memory_space<vmem>>, vector<1x128x128xf32>
    %20 = vector.shape_cast %19 : vector<1x128x128xf32> to vector<128x128xf32>
    %cst_20 = arith.constant dense<0.000000e+00> : vector<240x128xf32>
    %21 = tpu.matmul %18, %20, %cst_20 {dimension_numbers = #tpu.dot_dimension_numbers<[1], [0], [0], [1], [0, 0, 1, 1], [], []>} : vector<240x128xf32>, vector<128x128xf32>, vector<240x128xf32> -> vector<240x128xf32>
    %22 = arith.addf %16, %21 : vector<240x128xf32>
    %c0_21 = arith.constant 0 : index
    %c0_22 = arith.constant 0 : index
    %23 = vector.load %arg3[%c0_21, %c0_22] : memref<1x128xf32, #tpu.memory_space<vmem>>, vector<1x128xf32>
    %24 = vector.broadcast %23 : vector<1x128xf32> to vector<240x128xf32>
    %25 = arith.addf %22, %24 : vector<240x128xf32>
    %cst_23 = arith.constant 0.000000e+00 : f32
    %26 = vector.broadcast %cst_23 : f32 to vector<240x128xf32>
    %27 = arith.maximumf %25, %26 : vector<240x128xf32>
    %28 = vector.extract_strided_slice %27 {offsets = [0, 0], sizes = [205, 128], strides = [1, 1]} : vector<240x128xf32> to vector<205x128xf32>
    %29 = vector.extract_strided_slice %27 {offsets = [1, 0], sizes = [205, 128], strides = [1, 1]} : vector<240x128xf32> to vector<205x128xf32>
    %30 = arith.maximumf %28, %29 : vector<205x128xf32>
    %31 = vector.extract_strided_slice %27 {offsets = [16, 0], sizes = [205, 128], strides = [1, 1]} : vector<240x128xf32> to vector<205x128xf32>
    %32 = vector.extract_strided_slice %27 {offsets = [17, 0], sizes = [205, 128], strides = [1, 1]} : vector<240x128xf32> to vector<205x128xf32>
    %33 = arith.maximumf %31, %32 : vector<205x128xf32>
    %34 = arith.maximumf %30, %33 : vector<205x128xf32>
    %35 = vector.extract_strided_slice %34 {offsets = [0, 0], sizes = [1, 128], strides = [1, 1]} : vector<205x128xf32> to vector<1x128xf32>
    %c0_24 = arith.constant 0 : index
    %c0_25 = arith.constant 0 : index
    %c0_26 = arith.constant 0 : index
    %36 = vector.load %arg4[%c0_24, %c0_25, %c0_26] : memref<1x56x128xf32, #tpu.memory_space<vmem>>, vector<1x1x128xf32>
    %37 = vector.shape_cast %36 : vector<1x1x128xf32> to vector<1x128xf32>
    %38 = vector.shape_cast %35 : vector<1x128xf32> to vector<1x1x128xf32>
    tpu.vector_store %arg4[%c0_24, %c0_25, %c0_26], %38 {strides = array<i32>} : memref<1x56x128xf32, #tpu.memory_space<vmem>>, vector<1x1x128xf32>,
    %39 = vector.extract_strided_slice %34 {offsets = [2, 0], sizes = [1, 128], strides = [1, 1]} : vector<205x128xf32> to vector<1x128xf32>
    %c0_27 = arith.constant 0 : index
    %c1_28 = arith.constant 1 : index
    %c0_29 = arith.constant 0 : index
    %40 = vector.load %arg4[%c0_27, %c1_28, %c0_29] : memref<1x56x128xf32, #tpu.memory_space<vmem>>, vector<1x1x128xf32>
    %41 = vector.shape_cast %40 : vector<1x1x128xf32> to vector<1x128xf32>
    %42 = vector.shape_cast %39 : vector<1x128xf32> to vector<1x1x128xf32>
    tpu.vector_store %arg4[%c0_27, %c1_28, %c0_29], %42 {strides = array<i32>} : memref<1x56x128xf32, #tpu.memory_space<vmem>>, vector<1x1x128xf32>,
    %43 = vector.extract_strided_slice %34 {offsets = [4, 0], sizes = [1, 128], strides = [1, 1]} : vector<205x128xf32> to vector<1x128xf32>
    %c0_30 = arith.constant 0 : index
    %c2_31 = arith.constant 2 : index
    %c0_32 = arith.constant 0 : index
    %44 = vector.load %arg4[%c0_30, %c2_31, %c0_32] : memref<1x56x128xf32, #tpu.memory_space<vmem>>, vector<1x1x128xf32>
    %45 = vector.shape_cast %44 : vector<1x1x128xf32> to vector<1x128xf32>
    %46 = vector.shape_cast %43 : vector<1x128xf32> to vector<1x1x128xf32>
    tpu.vector_store %arg4[%c0_30, %c2_31, %c0_32], %46 {strides = array<i32>} : memref<1x56x128xf32, #tpu.memory_space<vmem>>, vector<1x1x128xf32>,
    %47 = vector.extract_strided_slice %34 {offsets = [6, 0], sizes = [1, 128], strides = [1, 1]} : vector<205x128xf32> to vector<1x128xf32>
    %c0_33 = arith.constant 0 : index
    %c3_34 = arith.constant 3 : index
    %c0_35 = arith.constant 0 : index
    %48 = vector.load %arg4[%c0_33, %c3_34, %c0_35] : memref<1x56x128xf32, #tpu.memory_space<vmem>>, vector<1x1x128xf32>
    %49 = vector.shape_cast %48 : vector<1x1x128xf32> to vector<1x128xf32>
    %50 = vector.shape_cast %47 : vector<1x128xf32> to vector<1x1x128xf32>
    tpu.vector_store %arg4[%c0_33, %c3_34, %c0_35], %50 {strides = array<i32>} : memref<1x56x128xf32, #tpu.memory_space<vmem>>, vector<1x1x128xf32>,
    %51 = vector.extract_strided_slice %34 {offsets = [8, 0], sizes = [1, 128], strides = [1, 1]} : vector<205x128xf32> to vector<1x128xf32>
    %c0_36 = arith.constant 0 : index
    %c4 = arith.constant 4 : index
    %c0_37 = arith.constant 0 : index
    %52 = vector.load %arg4[%c0_36, %c4, %c0_37] : memref<1x56x128xf32, #tpu.memory_space<vmem>>, vector<1x1x128xf32>
    %53 = vector.shape_cast %52 : vector<1x1x128xf32> to vector<1x128xf32>
    %54 = vector.shape_cast %51 : vector<1x128xf32> to vector<1x1x128xf32>
    tpu.vector_store %arg4[%c0_36, %c4, %c0_37], %54 {strides = array<i32>} : memref<1x56x128xf32, #tpu.memory_space<vmem>>, vector<1x1x128xf32>,
    %55 = vector.extract_strided_slice %34 {offsets = [10, 0], sizes = [1, 128], strides = [1, 1]} : vector<205x128xf32> to vector<1x128xf32>
    %c0_38 = arith.constant 0 : index
    %c5 = arith.constant 5 : index
    %c0_39 = arith.constant 0 : index
    %56 = vector.load %arg4[%c0_38, %c5, %c0_39] : memref<1x56x128xf32, #tpu.memory_space<vmem>>, vector<1x1x128xf32>
    %57 = vector.shape_cast %56 : vector<1x1x128xf32> to vector<1x128xf32>
    %58 = vector.shape_cast %55 : vector<1x128xf32> to vector<1x1x128xf32>
    tpu.vector_store %arg4[%c0_38, %c5, %c0_39], %58 {strides = array<i32>} : memref<1x56x128xf32, #tpu.memory_space<vmem>>, vector<1x1x128xf32>,
    %59 = vector.extract_strided_slice %34 {offsets = [12, 0], sizes = [1, 128], strides = [1, 1]} : vector<205x128xf32> to vector<1x128xf32>
    %c0_40 = arith.constant 0 : index
    %c6 = arith.constant 6 : index
    %c0_41 = arith.constant 0 : index
    %60 = vector.load %arg4[%c0_40, %c6, %c0_41] : memref<1x56x128xf32, #tpu.memory_space<vmem>>, vector<1x1x128xf32>
    %61 = vector.shape_cast %60 : vector<1x1x128xf32> to vector<1x128xf32>
    %62 = vector.shape_cast %59 : vector<1x128xf32> to vector<1x1x128xf32>
    tpu.vector_store %arg4[%c0_40, %c6, %c0_41], %62 {strides = array<i32>} : memref<1x56x128xf32, #tpu.memory_space<vmem>>, vector<1x1x128xf32>,
    %63 = vector.extract_strided_slice %34 {offsets = [32, 0], sizes = [1, 128], strides = [1, 1]} : vector<205x128xf32> to vector<1x128xf32>
    %c0_42 = arith.constant 0 : index
    %c7 = arith.constant 7 : index
    %c0_43 = arith.constant 0 : index
    %64 = vector.load %arg4[%c0_42, %c7, %c0_43] : memref<1x56x128xf32, #tpu.memory_space<vmem>>, vector<1x1x128xf32>
    %65 = vector.shape_cast %64 : vector<1x1x128xf32> to vector<1x128xf32>
    %66 = vector.shape_cast %63 : vector<1x128xf32> to vector<1x1x128xf32>
    tpu.vector_store %arg4[%c0_42, %c7, %c0_43], %66 {strides = array<i32>} : memref<1x56x128xf32, #tpu.memory_space<vmem>>, vector<1x1x128xf32>,
    %67 = vector.extract_strided_slice %34 {offsets = [34, 0], sizes = [1, 128], strides = [1, 1]} : vector<205x128xf32> to vector<1x128xf32>
    %c0_44 = arith.constant 0 : index
    %c8 = arith.constant 8 : index
    %c0_45 = arith.constant 0 : index
    %68 = vector.load %arg4[%c0_44, %c8, %c0_45] : memref<1x56x128xf32, #tpu.memory_space<vmem>>, vector<1x1x128xf32>
    %69 = vector.shape_cast %68 : vector<1x1x128xf32> to vector<1x128xf32>
    %70 = vector.shape_cast %67 : vector<1x128xf32> to vector<1x1x128xf32>
    tpu.vector_store %arg4[%c0_44, %c8, %c0_45], %70 {strides = array<i32>} : memref<1x56x128xf32, #tpu.memory_space<vmem>>, vector<1x1x128xf32>,
    %71 = vector.extract_strided_slice %34 {offsets = [36, 0], sizes = [1, 128], strides = [1, 1]} : vector<205x128xf32> to vector<1x128xf32>
    %c0_46 = arith.constant 0 : index
    %c9 = arith.constant 9 : index
    %c0_47 = arith.constant 0 : index
    %72 = vector.load %arg4[%c0_46, %c9, %c0_47] : memref<1x56x128xf32, #tpu.memory_space<vmem>>, vector<1x1x128xf32>
    %73 = vector.shape_cast %72 : vector<1x1x128xf32> to vector<1x128xf32>
    %74 = vector.shape_cast %71 : vector<1x128xf32> to vector<1x1x128xf32>
    tpu.vector_store %arg4[%c0_46, %c9, %c0_47], %74 {strides = array<i32>} : memref<1x56x128xf32, #tpu.memory_space<vmem>>, vector<1x1x128xf32>,
    %75 = vector.extract_strided_slice %34 {offsets = [38, 0], sizes = [1, 128], strides = [1, 1]} : vector<205x128xf32> to vector<1x128xf32>
    %c0_48 = arith.constant 0 : index
    %c10 = arith.constant 10 : index
    %c0_49 = arith.constant 0 : index
    %76 = vector.load %arg4[%c0_48, %c10, %c0_49] : memref<1x56x128xf32, #tpu.memory_space<vmem>>, vector<1x1x128xf32>
    %77 = vector.shape_cast %76 : vector<1x1x128xf32> to vector<1x128xf32>
    %78 = vector.shape_cast %75 : vector<1x128xf32> to vector<1x1x128xf32>
    tpu.vector_store %arg4[%c0_48, %c10, %c0_49], %78 {strides = array<i32>} : memref<1x56x128xf32, #tpu.memory_space<vmem>>, vector<1x1x128xf32>,
    %79 = vector.extract_strided_slice %34 {offsets = [40, 0], sizes = [1, 128], strides = [1, 1]} : vector<205x128xf32> to vector<1x128xf32>
    %c0_50 = arith.constant 0 : index
    %c11 = arith.constant 11 : index
    %c0_51 = arith.constant 0 : index
    %80 = vector.load %arg4[%c0_50, %c11, %c0_51] : memref<1x56x128xf32, #tpu.memory_space<vmem>>, vector<1x1x128xf32>
    %81 = vector.shape_cast %80 : vector<1x1x128xf32> to vector<1x128xf32>
    %82 = vector.shape_cast %79 : vector<1x128xf32> to vector<1x1x128xf32>
    tpu.vector_store %arg4[%c0_50, %c11, %c0_51], %82 {strides = array<i32>} : memref<1x56x128xf32, #tpu.memory_space<vmem>>, vector<1x1x128xf32>,
    %83 = vector.extract_strided_slice %34 {offsets = [42, 0], sizes = [1, 128], strides = [1, 1]} : vector<205x128xf32> to vector<1x128xf32>
    %c0_52 = arith.constant 0 : index
    %c12 = arith.constant 12 : index
    %c0_53 = arith.constant 0 : index
    %84 = vector.load %arg4[%c0_52, %c12, %c0_53] : memref<1x56x128xf32, #tpu.memory_space<vmem>>, vector<1x1x128xf32>
    %85 = vector.shape_cast %84 : vector<1x1x128xf32> to vector<1x128xf32>
    %86 = vector.shape_cast %83 : vector<1x128xf32> to vector<1x1x128xf32>
    tpu.vector_store %arg4[%c0_52, %c12, %c0_53], %86 {strides = array<i32>} : memref<1x56x128xf32, #tpu.memory_space<vmem>>, vector<1x1x128xf32>,
    %87 = vector.extract_strided_slice %34 {offsets = [44, 0], sizes = [1, 128], strides = [1, 1]} : vector<205x128xf32> to vector<1x128xf32>
    %c0_54 = arith.constant 0 : index
    %c13 = arith.constant 13 : index
    %c0_55 = arith.constant 0 : index
    %88 = vector.load %arg4[%c0_54, %c13, %c0_55] : memref<1x56x128xf32, #tpu.memory_space<vmem>>, vector<1x1x128xf32>
    %89 = vector.shape_cast %88 : vector<1x1x128xf32> to vector<1x128xf32>
    %90 = vector.shape_cast %87 : vector<1x128xf32> to vector<1x1x128xf32>
    tpu.vector_store %arg4[%c0_54, %c13, %c0_55], %90 {strides = array<i32>} : memref<1x56x128xf32, #tpu.memory_space<vmem>>, vector<1x1x128xf32>,
    %91 = vector.extract_strided_slice %34 {offsets = [64, 0], sizes = [1, 128], strides = [1, 1]} : vector<205x128xf32> to vector<1x128xf32>
    %c0_56 = arith.constant 0 : index
    %c14 = arith.constant 14 : index
    %c0_57 = arith.constant 0 : index
    %92 = vector.load %arg4[%c0_56, %c14, %c0_57] : memref<1x56x128xf32, #tpu.memory_space<vmem>>, vector<1x1x128xf32>
    %93 = vector.shape_cast %92 : vector<1x1x128xf32> to vector<1x128xf32>
    %94 = vector.shape_cast %91 : vector<1x128xf32> to vector<1x1x128xf32>
    tpu.vector_store %arg4[%c0_56, %c14, %c0_57], %94 {strides = array<i32>} : memref<1x56x128xf32, #tpu.memory_space<vmem>>, vector<1x1x128xf32>,
    %95 = vector.extract_strided_slice %34 {offsets = [66, 0], sizes = [1, 128], strides = [1, 1]} : vector<205x128xf32> to vector<1x128xf32>
    %c0_58 = arith.constant 0 : index
    %c15 = arith.constant 15 : index
    %c0_59 = arith.constant 0 : index
    %96 = vector.load %arg4[%c0_58, %c15, %c0_59] : memref<1x56x128xf32, #tpu.memory_space<vmem>>, vector<1x1x128xf32>
    %97 = vector.shape_cast %96 : vector<1x1x128xf32> to vector<1x128xf32>
    %98 = vector.shape_cast %95 : vector<1x128xf32> to vector<1x1x128xf32>
    tpu.vector_store %arg4[%c0_58, %c15, %c0_59], %98 {strides = array<i32>} : memref<1x56x128xf32, #tpu.memory_space<vmem>>, vector<1x1x128xf32>,
    %99 = vector.extract_strided_slice %34 {offsets = [68, 0], sizes = [1, 128], strides = [1, 1]} : vector<205x128xf32> to vector<1x128xf32>
    %c0_60 = arith.constant 0 : index
    %c16_61 = arith.constant 16 : index
    %c0_62 = arith.constant 0 : index
    %100 = vector.load %arg4[%c0_60, %c16_61, %c0_62] : memref<1x56x128xf32, #tpu.memory_space<vmem>>, vector<1x1x128xf32>
    %101 = vector.shape_cast %100 : vector<1x1x128xf32> to vector<1x128xf32>
    %102 = vector.shape_cast %99 : vector<1x128xf32> to vector<1x1x128xf32>
    tpu.vector_store %arg4[%c0_60, %c16_61, %c0_62], %102 {strides = array<i32>} : memref<1x56x128xf32, #tpu.memory_space<vmem>>, vector<1x1x128xf32>,
    %103 = vector.extract_strided_slice %34 {offsets = [70, 0], sizes = [1, 128], strides = [1, 1]} : vector<205x128xf32> to vector<1x128xf32>
    %c0_63 = arith.constant 0 : index
    %c17_64 = arith.constant 17 : index
    %c0_65 = arith.constant 0 : index
    %104 = vector.load %arg4[%c0_63, %c17_64, %c0_65] : memref<1x56x128xf32, #tpu.memory_space<vmem>>, vector<1x1x128xf32>
    %105 = vector.shape_cast %104 : vector<1x1x128xf32> to vector<1x128xf32>
    %106 = vector.shape_cast %103 : vector<1x128xf32> to vector<1x1x128xf32>
    tpu.vector_store %arg4[%c0_63, %c17_64, %c0_65], %106 {strides = array<i32>} : memref<1x56x128xf32, #tpu.memory_space<vmem>>, vector<1x1x128xf32>,
    %107 = vector.extract_strided_slice %34 {offsets = [72, 0], sizes = [1, 128], strides = [1, 1]} : vector<205x128xf32> to vector<1x128xf32>
    %c0_66 = arith.constant 0 : index
    %c18 = arith.constant 18 : index
    %c0_67 = arith.constant 0 : index
    %108 = vector.load %arg4[%c0_66, %c18, %c0_67] : memref<1x56x128xf32, #tpu.memory_space<vmem>>, vector<1x1x128xf32>
    %109 = vector.shape_cast %108 : vector<1x1x128xf32> to vector<1x128xf32>
    %110 = vector.shape_cast %107 : vector<1x128xf32> to vector<1x1x128xf32>
    tpu.vector_store %arg4[%c0_66, %c18, %c0_67], %110 {strides = array<i32>} : memref<1x56x128xf32, #tpu.memory_space<vmem>>, vector<1x1x128xf32>,
    %111 = vector.extract_strided_slice %34 {offsets = [74, 0], sizes = [1, 128], strides = [1, 1]} : vector<205x128xf32> to vector<1x128xf32>
    %c0_68 = arith.constant 0 : index
    %c19 = arith.constant 19 : index
    %c0_69 = arith.constant 0 : index
    %112 = vector.load %arg4[%c0_68, %c19, %c0_69] : memref<1x56x128xf32, #tpu.memory_space<vmem>>, vector<1x1x128xf32>
    %113 = vector.shape_cast %112 : vector<1x1x128xf32> to vector<1x128xf32>
    %114 = vector.shape_cast %111 : vector<1x128xf32> to vector<1x1x128xf32>
    tpu.vector_store %arg4[%c0_68, %c19, %c0_69], %114 {strides = array<i32>} : memref<1x56x128xf32, #tpu.memory_space<vmem>>, vector<1x1x128xf32>,
    %115 = vector.extract_strided_slice %34 {offsets = [76, 0], sizes = [1, 128], strides = [1, 1]} : vector<205x128xf32> to vector<1x128xf32>
    %c0_70 = arith.constant 0 : index
    %c20 = arith.constant 20 : index
    %c0_71 = arith.constant 0 : index
    %116 = vector.load %arg4[%c0_70, %c20, %c0_71] : memref<1x56x128xf32, #tpu.memory_space<vmem>>, vector<1x1x128xf32>
    %117 = vector.shape_cast %116 : vector<1x1x128xf32> to vector<1x128xf32>
    %118 = vector.shape_cast %115 : vector<1x128xf32> to vector<1x1x128xf32>
    tpu.vector_store %arg4[%c0_70, %c20, %c0_71], %118 {strides = array<i32>} : memref<1x56x128xf32, #tpu.memory_space<vmem>>, vector<1x1x128xf32>,
    %119 = vector.extract_strided_slice %34 {offsets = [96, 0], sizes = [1, 128], strides = [1, 1]} : vector<205x128xf32> to vector<1x128xf32>
    %c0_72 = arith.constant 0 : index
    %c21 = arith.constant 21 : index
    %c0_73 = arith.constant 0 : index
    %120 = vector.load %arg4[%c0_72, %c21, %c0_73] : memref<1x56x128xf32, #tpu.memory_space<vmem>>, vector<1x1x128xf32>
    %121 = vector.shape_cast %120 : vector<1x1x128xf32> to vector<1x128xf32>
    %122 = vector.shape_cast %119 : vector<1x128xf32> to vector<1x1x128xf32>
    tpu.vector_store %arg4[%c0_72, %c21, %c0_73], %122 {strides = array<i32>} : memref<1x56x128xf32, #tpu.memory_space<vmem>>, vector<1x1x128xf32>,
    %123 = vector.extract_strided_slice %34 {offsets = [98, 0], sizes = [1, 128], strides = [1, 1]} : vector<205x128xf32> to vector<1x128xf32>
    %c0_74 = arith.constant 0 : index
    %c22 = arith.constant 22 : index
    %c0_75 = arith.constant 0 : index
    %124 = vector.load %arg4[%c0_74, %c22, %c0_75] : memref<1x56x128xf32, #tpu.memory_space<vmem>>, vector<1x1x128xf32>
    %125 = vector.shape_cast %124 : vector<1x1x128xf32> to vector<1x128xf32>
    %126 = vector.shape_cast %123 : vector<1x128xf32> to vector<1x1x128xf32>
    tpu.vector_store %arg4[%c0_74, %c22, %c0_75], %126 {strides = array<i32>} : memref<1x56x128xf32, #tpu.memory_space<vmem>>, vector<1x1x128xf32>,
    %127 = vector.extract_strided_slice %34 {offsets = [100, 0], sizes = [1, 128], strides = [1, 1]} : vector<205x128xf32> to vector<1x128xf32>
    %c0_76 = arith.constant 0 : index
    %c23 = arith.constant 23 : index
    %c0_77 = arith.constant 0 : index
    %128 = vector.load %arg4[%c0_76, %c23, %c0_77] : memref<1x56x128xf32, #tpu.memory_space<vmem>>, vector<1x1x128xf32>
    %129 = vector.shape_cast %128 : vector<1x1x128xf32> to vector<1x128xf32>
    %130 = vector.shape_cast %127 : vector<1x128xf32> to vector<1x1x128xf32>
    tpu.vector_store %arg4[%c0_76, %c23, %c0_77], %130 {strides = array<i32>} : memref<1x56x128xf32, #tpu.memory_space<vmem>>, vector<1x1x128xf32>,
    %131 = vector.extract_strided_slice %34 {offsets = [102, 0], sizes = [1, 128], strides = [1, 1]} : vector<205x128xf32> to vector<1x128xf32>
    %c0_78 = arith.constant 0 : index
    %c24 = arith.constant 24 : index
    %c0_79 = arith.constant 0 : index
    %132 = vector.load %arg4[%c0_78, %c24, %c0_79] : memref<1x56x128xf32, #tpu.memory_space<vmem>>, vector<1x1x128xf32>
    %133 = vector.shape_cast %132 : vector<1x1x128xf32> to vector<1x128xf32>
    %134 = vector.shape_cast %131 : vector<1x128xf32> to vector<1x1x128xf32>
    tpu.vector_store %arg4[%c0_78, %c24, %c0_79], %134 {strides = array<i32>} : memref<1x56x128xf32, #tpu.memory_space<vmem>>, vector<1x1x128xf32>,
    %135 = vector.extract_strided_slice %34 {offsets = [104, 0], sizes = [1, 128], strides = [1, 1]} : vector<205x128xf32> to vector<1x128xf32>
    %c0_80 = arith.constant 0 : index
    %c25 = arith.constant 25 : index
    %c0_81 = arith.constant 0 : index
    %136 = vector.load %arg4[%c0_80, %c25, %c0_81] : memref<1x56x128xf32, #tpu.memory_space<vmem>>, vector<1x1x128xf32>
    %137 = vector.shape_cast %136 : vector<1x1x128xf32> to vector<1x128xf32>
    %138 = vector.shape_cast %135 : vector<1x128xf32> to vector<1x1x128xf32>
    tpu.vector_store %arg4[%c0_80, %c25, %c0_81], %138 {strides = array<i32>} : memref<1x56x128xf32, #tpu.memory_space<vmem>>, vector<1x1x128xf32>,
    %139 = vector.extract_strided_slice %34 {offsets = [106, 0], sizes = [1, 128], strides = [1, 1]} : vector<205x128xf32> to vector<1x128xf32>
    %c0_82 = arith.constant 0 : index
    %c26 = arith.constant 26 : index
    %c0_83 = arith.constant 0 : index
    %140 = vector.load %arg4[%c0_82, %c26, %c0_83] : memref<1x56x128xf32, #tpu.memory_space<vmem>>, vector<1x1x128xf32>
    %141 = vector.shape_cast %140 : vector<1x1x128xf32> to vector<1x128xf32>
    %142 = vector.shape_cast %139 : vector<1x128xf32> to vector<1x1x128xf32>
    tpu.vector_store %arg4[%c0_82, %c26, %c0_83], %142 {strides = array<i32>} : memref<1x56x128xf32, #tpu.memory_space<vmem>>, vector<1x1x128xf32>,
    %143 = vector.extract_strided_slice %34 {offsets = [108, 0], sizes = [1, 128], strides = [1, 1]} : vector<205x128xf32> to vector<1x128xf32>
    %c0_84 = arith.constant 0 : index
    %c27 = arith.constant 27 : index
    %c0_85 = arith.constant 0 : index
    %144 = vector.load %arg4[%c0_84, %c27, %c0_85] : memref<1x56x128xf32, #tpu.memory_space<vmem>>, vector<1x1x128xf32>
    %145 = vector.shape_cast %144 : vector<1x1x128xf32> to vector<1x128xf32>
    %146 = vector.shape_cast %143 : vector<1x128xf32> to vector<1x1x128xf32>
    tpu.vector_store %arg4[%c0_84, %c27, %c0_85], %146 {strides = array<i32>} : memref<1x56x128xf32, #tpu.memory_space<vmem>>, vector<1x1x128xf32>,
    %147 = vector.extract_strided_slice %34 {offsets = [128, 0], sizes = [1, 128], strides = [1, 1]} : vector<205x128xf32> to vector<1x128xf32>
    %c0_86 = arith.constant 0 : index
    %c28 = arith.constant 28 : index
    %c0_87 = arith.constant 0 : index
    %148 = vector.load %arg4[%c0_86, %c28, %c0_87] : memref<1x56x128xf32, #tpu.memory_space<vmem>>, vector<1x1x128xf32>
    %149 = vector.shape_cast %148 : vector<1x1x128xf32> to vector<1x128xf32>
    %150 = vector.shape_cast %147 : vector<1x128xf32> to vector<1x1x128xf32>
    tpu.vector_store %arg4[%c0_86, %c28, %c0_87], %150 {strides = array<i32>} : memref<1x56x128xf32, #tpu.memory_space<vmem>>, vector<1x1x128xf32>,
    %151 = vector.extract_strided_slice %34 {offsets = [130, 0], sizes = [1, 128], strides = [1, 1]} : vector<205x128xf32> to vector<1x128xf32>
    %c0_88 = arith.constant 0 : index
    %c29 = arith.constant 29 : index
    %c0_89 = arith.constant 0 : index
    %152 = vector.load %arg4[%c0_88, %c29, %c0_89] : memref<1x56x128xf32, #tpu.memory_space<vmem>>, vector<1x1x128xf32>
    %153 = vector.shape_cast %152 : vector<1x1x128xf32> to vector<1x128xf32>
    %154 = vector.shape_cast %151 : vector<1x128xf32> to vector<1x1x128xf32>
    tpu.vector_store %arg4[%c0_88, %c29, %c0_89], %154 {strides = array<i32>} : memref<1x56x128xf32, #tpu.memory_space<vmem>>, vector<1x1x128xf32>,
    %155 = vector.extract_strided_slice %34 {offsets = [132, 0], sizes = [1, 128], strides = [1, 1]} : vector<205x128xf32> to vector<1x128xf32>
    %c0_90 = arith.constant 0 : index
    %c30 = arith.constant 30 : index
    %c0_91 = arith.constant 0 : index
    %156 = vector.load %arg4[%c0_90, %c30, %c0_91] : memref<1x56x128xf32, #tpu.memory_space<vmem>>, vector<1x1x128xf32>
    %157 = vector.shape_cast %156 : vector<1x1x128xf32> to vector<1x128xf32>
    %158 = vector.shape_cast %155 : vector<1x128xf32> to vector<1x1x128xf32>
    tpu.vector_store %arg4[%c0_90, %c30, %c0_91], %158 {strides = array<i32>} : memref<1x56x128xf32, #tpu.memory_space<vmem>>, vector<1x1x128xf32>,
    %159 = vector.extract_strided_slice %34 {offsets = [134, 0], sizes = [1, 128], strides = [1, 1]} : vector<205x128xf32> to vector<1x128xf32>
    %c0_92 = arith.constant 0 : index
    %c31 = arith.constant 31 : index
    %c0_93 = arith.constant 0 : index
    %160 = vector.load %arg4[%c0_92, %c31, %c0_93] : memref<1x56x128xf32, #tpu.memory_space<vmem>>, vector<1x1x128xf32>
    %161 = vector.shape_cast %160 : vector<1x1x128xf32> to vector<1x128xf32>
    %162 = vector.shape_cast %159 : vector<1x128xf32> to vector<1x1x128xf32>
    tpu.vector_store %arg4[%c0_92, %c31, %c0_93], %162 {strides = array<i32>} : memref<1x56x128xf32, #tpu.memory_space<vmem>>, vector<1x1x128xf32>,
    %163 = vector.extract_strided_slice %34 {offsets = [136, 0], sizes = [1, 128], strides = [1, 1]} : vector<205x128xf32> to vector<1x128xf32>
    %c0_94 = arith.constant 0 : index
    %c32 = arith.constant 32 : index
    %c0_95 = arith.constant 0 : index
    %164 = vector.load %arg4[%c0_94, %c32, %c0_95] : memref<1x56x128xf32, #tpu.memory_space<vmem>>, vector<1x1x128xf32>
    %165 = vector.shape_cast %164 : vector<1x1x128xf32> to vector<1x128xf32>
    %166 = vector.shape_cast %163 : vector<1x128xf32> to vector<1x1x128xf32>
    tpu.vector_store %arg4[%c0_94, %c32, %c0_95], %166 {strides = array<i32>} : memref<1x56x128xf32, #tpu.memory_space<vmem>>, vector<1x1x128xf32>,
    %167 = vector.extract_strided_slice %34 {offsets = [138, 0], sizes = [1, 128], strides = [1, 1]} : vector<205x128xf32> to vector<1x128xf32>
    %c0_96 = arith.constant 0 : index
    %c33 = arith.constant 33 : index
    %c0_97 = arith.constant 0 : index
    %168 = vector.load %arg4[%c0_96, %c33, %c0_97] : memref<1x56x128xf32, #tpu.memory_space<vmem>>, vector<1x1x128xf32>
    %169 = vector.shape_cast %168 : vector<1x1x128xf32> to vector<1x128xf32>
    %170 = vector.shape_cast %167 : vector<1x128xf32> to vector<1x1x128xf32>
    tpu.vector_store %arg4[%c0_96, %c33, %c0_97], %170 {strides = array<i32>} : memref<1x56x128xf32, #tpu.memory_space<vmem>>, vector<1x1x128xf32>,
    %171 = vector.extract_strided_slice %34 {offsets = [140, 0], sizes = [1, 128], strides = [1, 1]} : vector<205x128xf32> to vector<1x128xf32>
    %c0_98 = arith.constant 0 : index
    %c34 = arith.constant 34 : index
    %c0_99 = arith.constant 0 : index
    %172 = vector.load %arg4[%c0_98, %c34, %c0_99] : memref<1x56x128xf32, #tpu.memory_space<vmem>>, vector<1x1x128xf32>
    %173 = vector.shape_cast %172 : vector<1x1x128xf32> to vector<1x128xf32>
    %174 = vector.shape_cast %171 : vector<1x128xf32> to vector<1x1x128xf32>
    tpu.vector_store %arg4[%c0_98, %c34, %c0_99], %174 {strides = array<i32>} : memref<1x56x128xf32, #tpu.memory_space<vmem>>, vector<1x1x128xf32>,
    %175 = vector.extract_strided_slice %34 {offsets = [160, 0], sizes = [1, 128], strides = [1, 1]} : vector<205x128xf32> to vector<1x128xf32>
    %c0_100 = arith.constant 0 : index
    %c35 = arith.constant 35 : index
    %c0_101 = arith.constant 0 : index
    %176 = vector.load %arg4[%c0_100, %c35, %c0_101] : memref<1x56x128xf32, #tpu.memory_space<vmem>>, vector<1x1x128xf32>
    %177 = vector.shape_cast %176 : vector<1x1x128xf32> to vector<1x128xf32>
    %178 = vector.shape_cast %175 : vector<1x128xf32> to vector<1x1x128xf32>
    tpu.vector_store %arg4[%c0_100, %c35, %c0_101], %178 {strides = array<i32>} : memref<1x56x128xf32, #tpu.memory_space<vmem>>, vector<1x1x128xf32>,
    %179 = vector.extract_strided_slice %34 {offsets = [162, 0], sizes = [1, 128], strides = [1, 1]} : vector<205x128xf32> to vector<1x128xf32>
    %c0_102 = arith.constant 0 : index
    %c36 = arith.constant 36 : index
    %c0_103 = arith.constant 0 : index
    %180 = vector.load %arg4[%c0_102, %c36, %c0_103] : memref<1x56x128xf32, #tpu.memory_space<vmem>>, vector<1x1x128xf32>
    %181 = vector.shape_cast %180 : vector<1x1x128xf32> to vector<1x128xf32>
    %182 = vector.shape_cast %179 : vector<1x128xf32> to vector<1x1x128xf32>
    tpu.vector_store %arg4[%c0_102, %c36, %c0_103], %182 {strides = array<i32>} : memref<1x56x128xf32, #tpu.memory_space<vmem>>, vector<1x1x128xf32>,
    %183 = vector.extract_strided_slice %34 {offsets = [164, 0], sizes = [1, 128], strides = [1, 1]} : vector<205x128xf32> to vector<1x128xf32>
    %c0_104 = arith.constant 0 : index
    %c37 = arith.constant 37 : index
    %c0_105 = arith.constant 0 : index
    %184 = vector.load %arg4[%c0_104, %c37, %c0_105] : memref<1x56x128xf32, #tpu.memory_space<vmem>>, vector<1x1x128xf32>
    %185 = vector.shape_cast %184 : vector<1x1x128xf32> to vector<1x128xf32>
    %186 = vector.shape_cast %183 : vector<1x128xf32> to vector<1x1x128xf32>
    tpu.vector_store %arg4[%c0_104, %c37, %c0_105], %186 {strides = array<i32>} : memref<1x56x128xf32, #tpu.memory_space<vmem>>, vector<1x1x128xf32>,
    %187 = vector.extract_strided_slice %34 {offsets = [166, 0], sizes = [1, 128], strides = [1, 1]} : vector<205x128xf32> to vector<1x128xf32>
    %c0_106 = arith.constant 0 : index
    %c38 = arith.constant 38 : index
    %c0_107 = arith.constant 0 : index
    %188 = vector.load %arg4[%c0_106, %c38, %c0_107] : memref<1x56x128xf32, #tpu.memory_space<vmem>>, vector<1x1x128xf32>
    %189 = vector.shape_cast %188 : vector<1x1x128xf32> to vector<1x128xf32>
    %190 = vector.shape_cast %187 : vector<1x128xf32> to vector<1x1x128xf32>
    tpu.vector_store %arg4[%c0_106, %c38, %c0_107], %190 {strides = array<i32>} : memref<1x56x128xf32, #tpu.memory_space<vmem>>, vector<1x1x128xf32>,
    %191 = vector.extract_strided_slice %34 {offsets = [168, 0], sizes = [1, 128], strides = [1, 1]} : vector<205x128xf32> to vector<1x128xf32>
    %c0_108 = arith.constant 0 : index
    %c39 = arith.constant 39 : index
    %c0_109 = arith.constant 0 : index
    %192 = vector.load %arg4[%c0_108, %c39, %c0_109] : memref<1x56x128xf32, #tpu.memory_space<vmem>>, vector<1x1x128xf32>
    %193 = vector.shape_cast %192 : vector<1x1x128xf32> to vector<1x128xf32>
    %194 = vector.shape_cast %191 : vector<1x128xf32> to vector<1x1x128xf32>
    tpu.vector_store %arg4[%c0_108, %c39, %c0_109], %194 {strides = array<i32>} : memref<1x56x128xf32, #tpu.memory_space<vmem>>, vector<1x1x128xf32>,
    %195 = vector.extract_strided_slice %34 {offsets = [170, 0], sizes = [1, 128], strides = [1, 1]} : vector<205x128xf32> to vector<1x128xf32>
    %c0_110 = arith.constant 0 : index
    %c40 = arith.constant 40 : index
    %c0_111 = arith.constant 0 : index
    %196 = vector.load %arg4[%c0_110, %c40, %c0_111] : memref<1x56x128xf32, #tpu.memory_space<vmem>>, vector<1x1x128xf32>
    %197 = vector.shape_cast %196 : vector<1x1x128xf32> to vector<1x128xf32>
    %198 = vector.shape_cast %195 : vector<1x128xf32> to vector<1x1x128xf32>
    tpu.vector_store %arg4[%c0_110, %c40, %c0_111], %198 {strides = array<i32>} : memref<1x56x128xf32, #tpu.memory_space<vmem>>, vector<1x1x128xf32>,
    %199 = vector.extract_strided_slice %34 {offsets = [172, 0], sizes = [1, 128], strides = [1, 1]} : vector<205x128xf32> to vector<1x128xf32>
    %c0_112 = arith.constant 0 : index
    %c41 = arith.constant 41 : index
    %c0_113 = arith.constant 0 : index
    %200 = vector.load %arg4[%c0_112, %c41, %c0_113] : memref<1x56x128xf32, #tpu.memory_space<vmem>>, vector<1x1x128xf32>
    %201 = vector.shape_cast %200 : vector<1x1x128xf32> to vector<1x128xf32>
    %202 = vector.shape_cast %199 : vector<1x128xf32> to vector<1x1x128xf32>
    tpu.vector_store %arg4[%c0_112, %c41, %c0_113], %202 {strides = array<i32>} : memref<1x56x128xf32, #tpu.memory_space<vmem>>, vector<1x1x128xf32>,
    %203 = vector.extract_strided_slice %34 {offsets = [192, 0], sizes = [1, 128], strides = [1, 1]} : vector<205x128xf32> to vector<1x128xf32>
    %c0_114 = arith.constant 0 : index
    %c42 = arith.constant 42 : index
    %c0_115 = arith.constant 0 : index
    %204 = vector.load %arg4[%c0_114, %c42, %c0_115] : memref<1x56x128xf32, #tpu.memory_space<vmem>>, vector<1x1x128xf32>
    %205 = vector.shape_cast %204 : vector<1x1x128xf32> to vector<1x128xf32>
    %206 = vector.shape_cast %203 : vector<1x128xf32> to vector<1x1x128xf32>
    tpu.vector_store %arg4[%c0_114, %c42, %c0_115], %206 {strides = array<i32>} : memref<1x56x128xf32, #tpu.memory_space<vmem>>, vector<1x1x128xf32>,
    %207 = vector.extract_strided_slice %34 {offsets = [194, 0], sizes = [1, 128], strides = [1, 1]} : vector<205x128xf32> to vector<1x128xf32>
    %c0_116 = arith.constant 0 : index
    %c43 = arith.constant 43 : index
    %c0_117 = arith.constant 0 : index
    %208 = vector.load %arg4[%c0_116, %c43, %c0_117] : memref<1x56x128xf32, #tpu.memory_space<vmem>>, vector<1x1x128xf32>
    %209 = vector.shape_cast %208 : vector<1x1x128xf32> to vector<1x128xf32>
    %210 = vector.shape_cast %207 : vector<1x128xf32> to vector<1x1x128xf32>
    tpu.vector_store %arg4[%c0_116, %c43, %c0_117], %210 {strides = array<i32>} : memref<1x56x128xf32, #tpu.memory_space<vmem>>, vector<1x1x128xf32>,
    %211 = vector.extract_strided_slice %34 {offsets = [196, 0], sizes = [1, 128], strides = [1, 1]} : vector<205x128xf32> to vector<1x128xf32>
    %c0_118 = arith.constant 0 : index
    %c44 = arith.constant 44 : index
    %c0_119 = arith.constant 0 : index
    %212 = vector.load %arg4[%c0_118, %c44, %c0_119] : memref<1x56x128xf32, #tpu.memory_space<vmem>>, vector<1x1x128xf32>
    %213 = vector.shape_cast %212 : vector<1x1x128xf32> to vector<1x128xf32>
    %214 = vector.shape_cast %211 : vector<1x128xf32> to vector<1x1x128xf32>
    tpu.vector_store %arg4[%c0_118, %c44, %c0_119], %214 {strides = array<i32>} : memref<1x56x128xf32, #tpu.memory_space<vmem>>, vector<1x1x128xf32>,
    %215 = vector.extract_strided_slice %34 {offsets = [198, 0], sizes = [1, 128], strides = [1, 1]} : vector<205x128xf32> to vector<1x128xf32>
    %c0_120 = arith.constant 0 : index
    %c45 = arith.constant 45 : index
    %c0_121 = arith.constant 0 : index
    %216 = vector.load %arg4[%c0_120, %c45, %c0_121] : memref<1x56x128xf32, #tpu.memory_space<vmem>>, vector<1x1x128xf32>
    %217 = vector.shape_cast %216 : vector<1x1x128xf32> to vector<1x128xf32>
    %218 = vector.shape_cast %215 : vector<1x128xf32> to vector<1x1x128xf32>
    tpu.vector_store %arg4[%c0_120, %c45, %c0_121], %218 {strides = array<i32>} : memref<1x56x128xf32, #tpu.memory_space<vmem>>, vector<1x1x128xf32>,
    %219 = vector.extract_strided_slice %34 {offsets = [200, 0], sizes = [1, 128], strides = [1, 1]} : vector<205x128xf32> to vector<1x128xf32>
    %c0_122 = arith.constant 0 : index
    %c46 = arith.constant 46 : index
    %c0_123 = arith.constant 0 : index
    %220 = vector.load %arg4[%c0_122, %c46, %c0_123] : memref<1x56x128xf32, #tpu.memory_space<vmem>>, vector<1x1x128xf32>
    %221 = vector.shape_cast %220 : vector<1x1x128xf32> to vector<1x128xf32>
    %222 = vector.shape_cast %219 : vector<1x128xf32> to vector<1x1x128xf32>
    tpu.vector_store %arg4[%c0_122, %c46, %c0_123], %222 {strides = array<i32>} : memref<1x56x128xf32, #tpu.memory_space<vmem>>, vector<1x1x128xf32>,
    %223 = vector.extract_strided_slice %34 {offsets = [202, 0], sizes = [1, 128], strides = [1, 1]} : vector<205x128xf32> to vector<1x128xf32>
    %c0_124 = arith.constant 0 : index
    %c47 = arith.constant 47 : index
    %c0_125 = arith.constant 0 : index
    %224 = vector.load %arg4[%c0_124, %c47, %c0_125] : memref<1x56x128xf32, #tpu.memory_space<vmem>>, vector<1x1x128xf32>
    %225 = vector.shape_cast %224 : vector<1x1x128xf32> to vector<1x128xf32>
    %226 = vector.shape_cast %223 : vector<1x128xf32> to vector<1x1x128xf32>
    tpu.vector_store %arg4[%c0_124, %c47, %c0_125], %226 {strides = array<i32>} : memref<1x56x128xf32, #tpu.memory_space<vmem>>, vector<1x1x128xf32>,
    %227 = vector.extract_strided_slice %34 {offsets = [204, 0], sizes = [1, 128], strides = [1, 1]} : vector<205x128xf32> to vector<1x128xf32>
    %c0_126 = arith.constant 0 : index
    %c48 = arith.constant 48 : index
    %c0_127 = arith.constant 0 : index
    %228 = vector.load %arg4[%c0_126, %c48, %c0_127] : memref<1x56x128xf32, #tpu.memory_space<vmem>>, vector<1x1x128xf32>
    %229 = vector.shape_cast %228 : vector<1x1x128xf32> to vector<1x128xf32>
    %230 = vector.shape_cast %227 : vector<1x128xf32> to vector<1x1x128xf32>
    tpu.vector_store %arg4[%c0_126, %c48, %c0_127], %230 {strides = array<i32>} : memref<1x56x128xf32, #tpu.memory_space<vmem>>, vector<1x1x128xf32>,
    %cst_128 = arith.constant 0.000000e+00 : f32
    %231 = vector.broadcast %cst_128 : f32 to vector<7x128xf32>
    %c0_129 = arith.constant 0 : index
    %c49 = arith.constant 49 : index
    %c0_130 = arith.constant 0 : index
    %232 = vector.load %arg4[%c0_129, %c49, %c0_130] : memref<1x56x128xf32, #tpu.memory_space<vmem>>, vector<1x7x128xf32>
    %233 = vector.shape_cast %232 : vector<1x7x128xf32> to vector<7x128xf32>
    %234 = vector.shape_cast %231 : vector<7x128xf32> to vector<1x7x128xf32>
    tpu.vector_store %arg4[%c0_129, %c49, %c0_130], %234 {strides = array<i32>} : memref<1x56x128xf32, #tpu.memory_space<vmem>>, vector<1x7x128xf32>,
    return
  }
  func.func @transform_0(%arg0: i32) -> (i32, i32, i32) {
    %c0_i32 = arith.constant 0 : i32
    %c0_i32_0 = arith.constant 0 : i32
    %c0_i32_1 = arith.constant 0 : i32
    return %arg0, %c0_i32, %c0_i32_0 : i32, i32, i32
  }
  func.func @transform_1(%arg0: i32) -> (i32, i32, i32) {
    %c0_i32 = arith.constant 0 : i32
    %c0_i32_0 = arith.constant 0 : i32
    %c0_i32_1 = arith.constant 0 : i32
    %c0_i32_2 = arith.constant 0 : i32
    return %c0_i32, %c0_i32_0, %c0_i32_1 : i32, i32, i32
  }
  func.func @transform_2(%arg0: i32) -> (i32, i32) {
    %c0_i32 = arith.constant 0 : i32
    %c0_i32_0 = arith.constant 0 : i32
    %c0_i32_1 = arith.constant 0 : i32
    return %c0_i32, %c0_i32_0 : i32, i32
  }
  func.func @transform_3(%arg0: i32) -> (i32, i32, i32) {
    %c0_i32 = arith.constant 0 : i32
    %c0_i32_0 = arith.constant 0 : i32
    %c0_i32_1 = arith.constant 0 : i32
    return %arg0, %c0_i32, %c0_i32_0 : i32, i32, i32
  }
}

module attributes {stable_mosaic.version = 11 : i64} {
  func.func @_conv_pool_kernel(%arg0: i32, %arg1: memref<1x56x128xf32, #tpu.memory_space<vmem>>, %arg2: memref<4x128x128xf32, #tpu.memory_space<vmem>>, %arg3: memref<1x128xf32, #tpu.memory_space<vmem>>, %arg4: memref<1x9x128xf32, #tpu.memory_space<vmem>>) attributes {dimension_semantics = [#tpu.dimension_semantics<parallel>], iteration_bounds = array<i64: 2>, scalar_prefetch = 0 : i64, scratch_operands = 0 : i64, tpu.core_type = #tpu.core_type<tc>, window_params = [{transform_indices = @transform_0, window_bounds = array<i64: 1, 56, 128>}, {pipeline_mode = #tpu.pipeline_mode<synchronous>, transform_indices = @transform_1, window_bounds = array<i64: 4, 128, 128>}, {pipeline_mode = #tpu.pipeline_mode<synchronous>, transform_indices = @transform_2, window_bounds = array<i64: 1, 128>}, {transform_indices = @transform_3, window_bounds = array<i64: 1, 9, 128>}]} {
    %c0 = arith.constant 0 : index
    %c0_0 = arith.constant 0 : index
    %c0_1 = arith.constant 0 : index
    %0 = vector.load %arg1[%c0, %c0_0, %c0_1] : memref<1x56x128xf32, #tpu.memory_space<vmem>>, vector<1x42x128xf32>
    %1 = vector.shape_cast %0 : vector<1x42x128xf32> to vector<42x128xf32>
    %c0_2 = arith.constant 0 : index
    %c0_3 = arith.constant 0 : index
    %c0_4 = arith.constant 0 : index
    %2 = vector.load %arg2[%c0_2, %c0_3, %c0_4] : memref<4x128x128xf32, #tpu.memory_space<vmem>>, vector<1x128x128xf32>
    %3 = vector.shape_cast %2 : vector<1x128x128xf32> to vector<128x128xf32>
    %cst = arith.constant dense<0.000000e+00> : vector<42x128xf32>
    %4 = tpu.matmul %1, %3, %cst {dimension_numbers = #tpu.dot_dimension_numbers<[1], [0], [0], [1], [0, 0, 1, 1], [], []>} : vector<42x128xf32>, vector<128x128xf32>, vector<42x128xf32> -> vector<42x128xf32>
    %c0_5 = arith.constant 0 : index
    %c1 = arith.constant 1 : index
    %c0_6 = arith.constant 0 : index
    %5 = vector.load %arg1[%c0_5, %c1, %c0_6] : memref<1x56x128xf32, #tpu.memory_space<vmem>>, vector<1x42x128xf32>
    %6 = vector.shape_cast %5 : vector<1x42x128xf32> to vector<42x128xf32>
    %c1_7 = arith.constant 1 : index
    %c0_8 = arith.constant 0 : index
    %c0_9 = arith.constant 0 : index
    %7 = vector.load %arg2[%c1_7, %c0_8, %c0_9] : memref<4x128x128xf32, #tpu.memory_space<vmem>>, vector<1x128x128xf32>
    %8 = vector.shape_cast %7 : vector<1x128x128xf32> to vector<128x128xf32>
    %cst_10 = arith.constant dense<0.000000e+00> : vector<42x128xf32>
    %9 = tpu.matmul %6, %8, %cst_10 {dimension_numbers = #tpu.dot_dimension_numbers<[1], [0], [0], [1], [0, 0, 1, 1], [], []>} : vector<42x128xf32>, vector<128x128xf32>, vector<42x128xf32> -> vector<42x128xf32>
    %10 = arith.addf %4, %9 : vector<42x128xf32>
    %c0_11 = arith.constant 0 : index
    %c7 = arith.constant 7 : index
    %c0_12 = arith.constant 0 : index
    %11 = vector.load %arg1[%c0_11, %c7, %c0_12] : memref<1x56x128xf32, #tpu.memory_space<vmem>>, vector<1x42x128xf32>
    %12 = vector.shape_cast %11 : vector<1x42x128xf32> to vector<42x128xf32>
    %c2 = arith.constant 2 : index
    %c0_13 = arith.constant 0 : index
    %c0_14 = arith.constant 0 : index
    %13 = vector.load %arg2[%c2, %c0_13, %c0_14] : memref<4x128x128xf32, #tpu.memory_space<vmem>>, vector<1x128x128xf32>
    %14 = vector.shape_cast %13 : vector<1x128x128xf32> to vector<128x128xf32>
    %cst_15 = arith.constant dense<0.000000e+00> : vector<42x128xf32>
    %15 = tpu.matmul %12, %14, %cst_15 {dimension_numbers = #tpu.dot_dimension_numbers<[1], [0], [0], [1], [0, 0, 1, 1], [], []>} : vector<42x128xf32>, vector<128x128xf32>, vector<42x128xf32> -> vector<42x128xf32>
    %16 = arith.addf %10, %15 : vector<42x128xf32>
    %c0_16 = arith.constant 0 : index
    %c8 = arith.constant 8 : index
    %c0_17 = arith.constant 0 : index
    %17 = vector.load %arg1[%c0_16, %c8, %c0_17] : memref<1x56x128xf32, #tpu.memory_space<vmem>>, vector<1x42x128xf32>
    %18 = vector.shape_cast %17 : vector<1x42x128xf32> to vector<42x128xf32>
    %c3 = arith.constant 3 : index
    %c0_18 = arith.constant 0 : index
    %c0_19 = arith.constant 0 : index
    %19 = vector.load %arg2[%c3, %c0_18, %c0_19] : memref<4x128x128xf32, #tpu.memory_space<vmem>>, vector<1x128x128xf32>
    %20 = vector.shape_cast %19 : vector<1x128x128xf32> to vector<128x128xf32>
    %cst_20 = arith.constant dense<0.000000e+00> : vector<42x128xf32>
    %21 = tpu.matmul %18, %20, %cst_20 {dimension_numbers = #tpu.dot_dimension_numbers<[1], [0], [0], [1], [0, 0, 1, 1], [], []>} : vector<42x128xf32>, vector<128x128xf32>, vector<42x128xf32> -> vector<42x128xf32>
    %22 = arith.addf %16, %21 : vector<42x128xf32>
    %c0_21 = arith.constant 0 : index
    %c0_22 = arith.constant 0 : index
    %23 = vector.load %arg3[%c0_21, %c0_22] : memref<1x128xf32, #tpu.memory_space<vmem>>, vector<1x128xf32>
    %24 = vector.broadcast %23 : vector<1x128xf32> to vector<42x128xf32>
    %25 = arith.addf %22, %24 : vector<42x128xf32>
    %cst_23 = arith.constant 0.000000e+00 : f32
    %26 = vector.broadcast %cst_23 : f32 to vector<42x128xf32>
    %27 = arith.maximumf %25, %26 : vector<42x128xf32>
    %28 = vector.extract_strided_slice %27 {offsets = [0, 0], sizes = [33, 128], strides = [1, 1]} : vector<42x128xf32> to vector<33x128xf32>
    %29 = vector.extract_strided_slice %27 {offsets = [1, 0], sizes = [33, 128], strides = [1, 1]} : vector<42x128xf32> to vector<33x128xf32>
    %30 = arith.maximumf %28, %29 : vector<33x128xf32>
    %31 = vector.extract_strided_slice %27 {offsets = [7, 0], sizes = [33, 128], strides = [1, 1]} : vector<42x128xf32> to vector<33x128xf32>
    %32 = vector.extract_strided_slice %27 {offsets = [8, 0], sizes = [33, 128], strides = [1, 1]} : vector<42x128xf32> to vector<33x128xf32>
    %33 = arith.maximumf %31, %32 : vector<33x128xf32>
    %34 = arith.maximumf %30, %33 : vector<33x128xf32>
    %35 = vector.extract_strided_slice %34 {offsets = [0, 0], sizes = [1, 128], strides = [1, 1]} : vector<33x128xf32> to vector<1x128xf32>
    %c0_24 = arith.constant 0 : index
    %c0_25 = arith.constant 0 : index
    %c0_26 = arith.constant 0 : index
    %36 = vector.load %arg4[%c0_24, %c0_25, %c0_26] : memref<1x9x128xf32, #tpu.memory_space<vmem>>, vector<1x1x128xf32>
    %37 = vector.shape_cast %36 : vector<1x1x128xf32> to vector<1x128xf32>
    %38 = vector.shape_cast %35 : vector<1x128xf32> to vector<1x1x128xf32>
    tpu.vector_store %arg4[%c0_24, %c0_25, %c0_26], %38 {strides = array<i32>} : memref<1x9x128xf32, #tpu.memory_space<vmem>>, vector<1x1x128xf32>,
    %39 = vector.extract_strided_slice %34 {offsets = [2, 0], sizes = [1, 128], strides = [1, 1]} : vector<33x128xf32> to vector<1x128xf32>
    %c0_27 = arith.constant 0 : index
    %c1_28 = arith.constant 1 : index
    %c0_29 = arith.constant 0 : index
    %40 = vector.load %arg4[%c0_27, %c1_28, %c0_29] : memref<1x9x128xf32, #tpu.memory_space<vmem>>, vector<1x1x128xf32>
    %41 = vector.shape_cast %40 : vector<1x1x128xf32> to vector<1x128xf32>
    %42 = vector.shape_cast %39 : vector<1x128xf32> to vector<1x1x128xf32>
    tpu.vector_store %arg4[%c0_27, %c1_28, %c0_29], %42 {strides = array<i32>} : memref<1x9x128xf32, #tpu.memory_space<vmem>>, vector<1x1x128xf32>,
    %43 = vector.extract_strided_slice %34 {offsets = [4, 0], sizes = [1, 128], strides = [1, 1]} : vector<33x128xf32> to vector<1x128xf32>
    %c0_30 = arith.constant 0 : index
    %c2_31 = arith.constant 2 : index
    %c0_32 = arith.constant 0 : index
    %44 = vector.load %arg4[%c0_30, %c2_31, %c0_32] : memref<1x9x128xf32, #tpu.memory_space<vmem>>, vector<1x1x128xf32>
    %45 = vector.shape_cast %44 : vector<1x1x128xf32> to vector<1x128xf32>
    %46 = vector.shape_cast %43 : vector<1x128xf32> to vector<1x1x128xf32>
    tpu.vector_store %arg4[%c0_30, %c2_31, %c0_32], %46 {strides = array<i32>} : memref<1x9x128xf32, #tpu.memory_space<vmem>>, vector<1x1x128xf32>,
    %47 = vector.extract_strided_slice %34 {offsets = [14, 0], sizes = [1, 128], strides = [1, 1]} : vector<33x128xf32> to vector<1x128xf32>
    %c0_33 = arith.constant 0 : index
    %c3_34 = arith.constant 3 : index
    %c0_35 = arith.constant 0 : index
    %48 = vector.load %arg4[%c0_33, %c3_34, %c0_35] : memref<1x9x128xf32, #tpu.memory_space<vmem>>, vector<1x1x128xf32>
    %49 = vector.shape_cast %48 : vector<1x1x128xf32> to vector<1x128xf32>
    %50 = vector.shape_cast %47 : vector<1x128xf32> to vector<1x1x128xf32>
    tpu.vector_store %arg4[%c0_33, %c3_34, %c0_35], %50 {strides = array<i32>} : memref<1x9x128xf32, #tpu.memory_space<vmem>>, vector<1x1x128xf32>,
    %51 = vector.extract_strided_slice %34 {offsets = [16, 0], sizes = [1, 128], strides = [1, 1]} : vector<33x128xf32> to vector<1x128xf32>
    %c0_36 = arith.constant 0 : index
    %c4 = arith.constant 4 : index
    %c0_37 = arith.constant 0 : index
    %52 = vector.load %arg4[%c0_36, %c4, %c0_37] : memref<1x9x128xf32, #tpu.memory_space<vmem>>, vector<1x1x128xf32>
    %53 = vector.shape_cast %52 : vector<1x1x128xf32> to vector<1x128xf32>
    %54 = vector.shape_cast %51 : vector<1x128xf32> to vector<1x1x128xf32>
    tpu.vector_store %arg4[%c0_36, %c4, %c0_37], %54 {strides = array<i32>} : memref<1x9x128xf32, #tpu.memory_space<vmem>>, vector<1x1x128xf32>,
    %55 = vector.extract_strided_slice %34 {offsets = [18, 0], sizes = [1, 128], strides = [1, 1]} : vector<33x128xf32> to vector<1x128xf32>
    %c0_38 = arith.constant 0 : index
    %c5 = arith.constant 5 : index
    %c0_39 = arith.constant 0 : index
    %56 = vector.load %arg4[%c0_38, %c5, %c0_39] : memref<1x9x128xf32, #tpu.memory_space<vmem>>, vector<1x1x128xf32>
    %57 = vector.shape_cast %56 : vector<1x1x128xf32> to vector<1x128xf32>
    %58 = vector.shape_cast %55 : vector<1x128xf32> to vector<1x1x128xf32>
    tpu.vector_store %arg4[%c0_38, %c5, %c0_39], %58 {strides = array<i32>} : memref<1x9x128xf32, #tpu.memory_space<vmem>>, vector<1x1x128xf32>,
    %59 = vector.extract_strided_slice %34 {offsets = [28, 0], sizes = [1, 128], strides = [1, 1]} : vector<33x128xf32> to vector<1x128xf32>
    %c0_40 = arith.constant 0 : index
    %c6 = arith.constant 6 : index
    %c0_41 = arith.constant 0 : index
    %60 = vector.load %arg4[%c0_40, %c6, %c0_41] : memref<1x9x128xf32, #tpu.memory_space<vmem>>, vector<1x1x128xf32>
    %61 = vector.shape_cast %60 : vector<1x1x128xf32> to vector<1x128xf32>
    %62 = vector.shape_cast %59 : vector<1x128xf32> to vector<1x1x128xf32>
    tpu.vector_store %arg4[%c0_40, %c6, %c0_41], %62 {strides = array<i32>} : memref<1x9x128xf32, #tpu.memory_space<vmem>>, vector<1x1x128xf32>,
    %63 = vector.extract_strided_slice %34 {offsets = [30, 0], sizes = [1, 128], strides = [1, 1]} : vector<33x128xf32> to vector<1x128xf32>
    %c0_42 = arith.constant 0 : index
    %c7_43 = arith.constant 7 : index
    %c0_44 = arith.constant 0 : index
    %64 = vector.load %arg4[%c0_42, %c7_43, %c0_44] : memref<1x9x128xf32, #tpu.memory_space<vmem>>, vector<1x1x128xf32>
    %65 = vector.shape_cast %64 : vector<1x1x128xf32> to vector<1x128xf32>
    %66 = vector.shape_cast %63 : vector<1x128xf32> to vector<1x1x128xf32>
    tpu.vector_store %arg4[%c0_42, %c7_43, %c0_44], %66 {strides = array<i32>} : memref<1x9x128xf32, #tpu.memory_space<vmem>>, vector<1x1x128xf32>,
    %67 = vector.extract_strided_slice %34 {offsets = [32, 0], sizes = [1, 128], strides = [1, 1]} : vector<33x128xf32> to vector<1x128xf32>
    %c0_45 = arith.constant 0 : index
    %c8_46 = arith.constant 8 : index
    %c0_47 = arith.constant 0 : index
    %68 = vector.load %arg4[%c0_45, %c8_46, %c0_47] : memref<1x9x128xf32, #tpu.memory_space<vmem>>, vector<1x1x128xf32>
    %69 = vector.shape_cast %68 : vector<1x1x128xf32> to vector<1x128xf32>
    %70 = vector.shape_cast %67 : vector<1x128xf32> to vector<1x1x128xf32>
    tpu.vector_store %arg4[%c0_45, %c8_46, %c0_47], %70 {strides = array<i32>} : memref<1x9x128xf32, #tpu.memory_space<vmem>>, vector<1x1x128xf32>,
    return
  }
  func.func @transform_0(%arg0: i32) -> (i32, i32, i32) {
    %c0_i32 = arith.constant 0 : i32
    %c0_i32_0 = arith.constant 0 : i32
    %c0_i32_1 = arith.constant 0 : i32
    return %arg0, %c0_i32, %c0_i32_0 : i32, i32, i32
  }
  func.func @transform_1(%arg0: i32) -> (i32, i32, i32) {
    %c0_i32 = arith.constant 0 : i32
    %c0_i32_0 = arith.constant 0 : i32
    %c0_i32_1 = arith.constant 0 : i32
    %c0_i32_2 = arith.constant 0 : i32
    return %c0_i32, %c0_i32_0, %c0_i32_1 : i32, i32, i32
  }
  func.func @transform_2(%arg0: i32) -> (i32, i32) {
    %c0_i32 = arith.constant 0 : i32
    %c0_i32_0 = arith.constant 0 : i32
    %c0_i32_1 = arith.constant 0 : i32
    return %c0_i32, %c0_i32_0 : i32, i32
  }
  func.func @transform_3(%arg0: i32) -> (i32, i32, i32) {
    %c0_i32 = arith.constant 0 : i32
    %c0_i32_0 = arith.constant 0 : i32
    %c0_i32_1 = arith.constant 0 : i32
    return %arg0, %c0_i32, %c0_i32_0 : i32, i32, i32
  }
}

module attributes {stable_mosaic.version = 11 : i64} {
  func.func @_mlp_kernel(%arg0: i32, %arg1: memref<2x1152xf32, #tpu.memory_space<vmem>>, %arg2: memref<1152x512xf32, #tpu.memory_space<vmem>>, %arg3: memref<1x512xf32, #tpu.memory_space<vmem>>, %arg4: memref<512x128xf32, #tpu.memory_space<vmem>>, %arg5: memref<1x128xf32, #tpu.memory_space<vmem>>, %arg6: memref<128x128xf32, #tpu.memory_space<vmem>>, %arg7: memref<1x128xf32, #tpu.memory_space<vmem>>, %arg8: memref<2x128xf32, #tpu.memory_space<vmem>>) attributes {dimension_semantics = [#tpu.dimension_semantics<parallel>], iteration_bounds = array<i64: 1>, scalar_prefetch = 0 : i64, scratch_operands = 0 : i64, tpu.core_type = #tpu.core_type<tc>, window_params = [{transform_indices = @transform_0, window_bounds = array<i64: 2, 1152>}, {pipeline_mode = #tpu.pipeline_mode<synchronous>, transform_indices = @transform_1, window_bounds = array<i64: 1152, 512>}, {pipeline_mode = #tpu.pipeline_mode<synchronous>, transform_indices = @transform_2, window_bounds = array<i64: 1, 512>}, {pipeline_mode = #tpu.pipeline_mode<synchronous>, transform_indices = @transform_3, window_bounds = array<i64: 512, 128>}, {pipeline_mode = #tpu.pipeline_mode<synchronous>, transform_indices = @transform_4, window_bounds = array<i64: 1, 128>}, {pipeline_mode = #tpu.pipeline_mode<synchronous>, transform_indices = @transform_5, window_bounds = array<i64: 128, 128>}, {pipeline_mode = #tpu.pipeline_mode<synchronous>, transform_indices = @transform_6, window_bounds = array<i64: 1, 128>}, {transform_indices = @transform_7, window_bounds = array<i64: 2, 128>}]} {
    %c0 = arith.constant 0 : index
    %c0_0 = arith.constant 0 : index
    %0 = vector.load %arg1[%c0, %c0_0] : memref<2x1152xf32, #tpu.memory_space<vmem>>, vector<2x1152xf32>
    %c0_1 = arith.constant 0 : index
    %c0_2 = arith.constant 0 : index
    %1 = vector.load %arg2[%c0_1, %c0_2] : memref<1152x512xf32, #tpu.memory_space<vmem>>, vector<1152x512xf32>
    %cst = arith.constant dense<0.000000e+00> : vector<2x512xf32>
    %2 = tpu.matmul %0, %1, %cst {dimension_numbers = #tpu.dot_dimension_numbers<[1], [0], [0], [1], [0, 0, 1, 1], [], []>} : vector<2x1152xf32>, vector<1152x512xf32>, vector<2x512xf32> -> vector<2x512xf32>
    %c0_3 = arith.constant 0 : index
    %c0_4 = arith.constant 0 : index
    %3 = vector.load %arg3[%c0_3, %c0_4] : memref<1x512xf32, #tpu.memory_space<vmem>>, vector<1x512xf32>
    %4 = vector.broadcast %3 : vector<1x512xf32> to vector<2x512xf32>
    %5 = arith.addf %2, %4 : vector<2x512xf32>
    %cst_5 = arith.constant 0.000000e+00 : f32
    %6 = vector.broadcast %cst_5 : f32 to vector<2x512xf32>
    %7 = arith.maximumf %5, %6 : vector<2x512xf32>
    %c0_6 = arith.constant 0 : index
    %c0_7 = arith.constant 0 : index
    %8 = vector.load %arg4[%c0_6, %c0_7] : memref<512x128xf32, #tpu.memory_space<vmem>>, vector<512x128xf32>
    %cst_8 = arith.constant dense<0.000000e+00> : vector<2x128xf32>
    %9 = tpu.matmul %7, %8, %cst_8 {dimension_numbers = #tpu.dot_dimension_numbers<[1], [0], [0], [1], [0, 0, 1, 1], [], []>} : vector<2x512xf32>, vector<512x128xf32>, vector<2x128xf32> -> vector<2x128xf32>
    %c0_9 = arith.constant 0 : index
    %c0_10 = arith.constant 0 : index
    %10 = vector.load %arg5[%c0_9, %c0_10] : memref<1x128xf32, #tpu.memory_space<vmem>>, vector<1x128xf32>
    %11 = vector.broadcast %10 : vector<1x128xf32> to vector<2x128xf32>
    %12 = arith.addf %9, %11 : vector<2x128xf32>
    %cst_11 = arith.constant 0.000000e+00 : f32
    %13 = vector.broadcast %cst_11 : f32 to vector<2x128xf32>
    %14 = arith.maximumf %12, %13 : vector<2x128xf32>
    %c0_12 = arith.constant 0 : index
    %c0_13 = arith.constant 0 : index
    %15 = vector.load %arg6[%c0_12, %c0_13] : memref<128x128xf32, #tpu.memory_space<vmem>>, vector<128x128xf32>
    %cst_14 = arith.constant dense<0.000000e+00> : vector<2x128xf32>
    %16 = tpu.matmul %14, %15, %cst_14 {dimension_numbers = #tpu.dot_dimension_numbers<[1], [0], [0], [1], [0, 0, 1, 1], [], []>} : vector<2x128xf32>, vector<128x128xf32>, vector<2x128xf32> -> vector<2x128xf32>
    %c0_15 = arith.constant 0 : index
    %c0_16 = arith.constant 0 : index
    %17 = vector.load %arg7[%c0_15, %c0_16] : memref<1x128xf32, #tpu.memory_space<vmem>>, vector<1x128xf32>
    %18 = vector.broadcast %17 : vector<1x128xf32> to vector<2x128xf32>
    %19 = arith.addf %16, %18 : vector<2x128xf32>
    %c0_17 = arith.constant 0 : index
    %c0_18 = arith.constant 0 : index
    %20 = vector.load %arg8[%c0_17, %c0_18] : memref<2x128xf32, #tpu.memory_space<vmem>>, vector<2x128xf32>
    tpu.vector_store %arg8[%c0_17, %c0_18], %19 {strides = array<i32>} : memref<2x128xf32, #tpu.memory_space<vmem>>, vector<2x128xf32>,
    return
  }
  func.func @transform_0(%arg0: i32) -> (i32, i32) {
    %c0_i32 = arith.constant 0 : i32
    %c0_i32_0 = arith.constant 0 : i32
    return %arg0, %c0_i32 : i32, i32
  }
  func.func @transform_1(%arg0: i32) -> (i32, i32) {
    %c0_i32 = arith.constant 0 : i32
    %c0_i32_0 = arith.constant 0 : i32
    %c0_i32_1 = arith.constant 0 : i32
    return %c0_i32, %c0_i32_0 : i32, i32
  }
  func.func @transform_2(%arg0: i32) -> (i32, i32) {
    %c0_i32 = arith.constant 0 : i32
    %c0_i32_0 = arith.constant 0 : i32
    %c0_i32_1 = arith.constant 0 : i32
    return %c0_i32, %c0_i32_0 : i32, i32
  }
  func.func @transform_3(%arg0: i32) -> (i32, i32) {
    %c0_i32 = arith.constant 0 : i32
    %c0_i32_0 = arith.constant 0 : i32
    %c0_i32_1 = arith.constant 0 : i32
    return %c0_i32, %c0_i32_0 : i32, i32
  }
  func.func @transform_4(%arg0: i32) -> (i32, i32) {
    %c0_i32 = arith.constant 0 : i32
    %c0_i32_0 = arith.constant 0 : i32
    %c0_i32_1 = arith.constant 0 : i32
    return %c0_i32, %c0_i32_0 : i32, i32
  }
  func.func @transform_5(%arg0: i32) -> (i32, i32) {
    %c0_i32 = arith.constant 0 : i32
    %c0_i32_0 = arith.constant 0 : i32
    %c0_i32_1 = arith.constant 0 : i32
    return %c0_i32, %c0_i32_0 : i32, i32
  }
  func.func @transform_6(%arg0: i32) -> (i32, i32) {
    %c0_i32 = arith.constant 0 : i32
    %c0_i32_0 = arith.constant 0 : i32
    %c0_i32_1 = arith.constant 0 : i32
    return %c0_i32, %c0_i32_0 : i32, i32
  }
  func.func @transform_7(%arg0: i32) -> (i32, i32) {
    %c0_i32 = arith.constant 0 : i32
    %c0_i32_0 = arith.constant 0 : i32
    return %arg0, %c0_i32 : i32, i32
  }
}

</mosaic_0001>

<bundles_post_ra>
// kernel: cans_forward.4
= control target key start
LH: loop header
LB: loop body
LE: loop exit
PB: predicated region body
PF: predicated region fallthrough
CT: control target
= control target key end

     0   :  { %8 = vsyncpa [#allocation3], 0  ;;  %s1337_s0 = inlined_call_operand.vmem [shape: f32[2,56,128], index: 0, kind: input, shape index: {}]   ;;  %s1338_s1 = inlined_call_operand.hbm [shape: f32[4,128,128], index: 1, kind: input, shape index: {}]   ;;  %s1339_s2 = inlined_call_operand.hbm [shape: f32[1,128], index: 2, kind: input, shape index: {}]   ;;  %s1340_s3 = inlined_call_operand.vmem [shape: f32[2,9,128], index: 3, kind: output, shape index: {}]  }
   0x1   :  { %9 = vsyncpa [#allocation5], 0  ;;  %s1236_s12 = smov 0  }
   0x2 LB: > { %s1242_s13 = sadd.s32 4294967295, %s1210_s12   ;;  %p846_p0 = scmp.ge.s32.totalorder %s1210_s12, 1  ;;  %s1210_s12 = sphi %s1236_s12, %s15_s12  }
   0x3   : > { %p114_p1 = scmp.lt.s32.totalorder %s1210_s12, 3  ;;  %s1212_s14 = smov [#allocation2]  }
   0x4   : > { %s126_s15 = sshll.u32 %s1212_s14, 4  ;;  %p1128_p3 = scmp.eq.s32.totalorder %s1242_s13, 0  ;;  %s127_s15 = int_to_ptr.vmem [resolvable:$true] %s126_s15 }
   0x5   : > { %p1246_p2 = pnand %p846_p0, %p114_p1  ;;  %s1213_s17 = smov [#allocation4]  }
   0x6   : > { %s140_s18 = sshll.u32 %s1213_s17, 4  ;;  %s1155_s20 = scalar_lea.vmem %s127_s15, 8192  ;;  %s141_s18 = int_to_ptr.vmem [resolvable:$true] %s140_s18 }
   0x7   : > { %p1121_p4 = pneg %p1246_p2  ;;  %p1156_p7 = scmp.ne.s32.totalorder %s127_s15, %s1155_s20 }
   0x8   : > { %p1163_p10 = scmp.lt.s32.totalorder %s127_s15, %s127_s15  ;;  %p1164_p11 = scmp.lt.s32.totalorder %s1155_s20, %s1155_s20 }
   0x9   : > { %p1255_p5 = pnand %p1128_p3, %p1121_p4 }
   0xa   : > { %p1165_p12 = por %p1164_p11, %p1163_p10 }
   0xb   : > { %p1146_p6 = pneg %p1255_p5 }
   0xd   : > { %p1158_p8 = pnand %p1156_p7, %p1146_p6 }
   0xf   : > { %p1159_p9 = pneg %p1158_p8 }
  0x11   : > { %p1166_p13 = pnand %p1165_p12, %p1159_p9 }
  0x13   : > { %1169 = shalt.err (!%p1166_p13)
}
  0x14   : > { %s1214_s21 = smov 128   ;;  %s1215_s22 = smov 8  }
  0x15   : > { %1124 = dma.hbm_to_vmem [thread:$0]  (!%p1255_p5), %s1338_s1, 8192, %s127_s15, [#allocation3], %s1214_s21, %s1214_s21, %s1215_s22  }
  0x16   : > { %s1181_s25 = scalar_lea.vmem %s141_s18, 16  ;;  %s1188_s26 = scalar_lea.vmem %s141_s18, 32 }
  0x17   : > { %p1182_p0 = scmp.ne.s32.totalorder %s141_s18, %s1181_s25  ;;  %p1189_p7 = scmp.lt.s32.totalorder %s141_s18, %s141_s18 }
  0x18   : > { %p1190_p8 = scmp.lt.s32.totalorder %s1188_s26, %s1181_s25 }
  0x19   : > { %p1184_p1 = pnand %p1182_p0, %p1146_p6 }
  0x1a   : > { %p1191_p9 = por %p1190_p8, %p1189_p7 }
  0x1b   : > { %p1185_p4 = pneg %p1184_p1 }
  0x1d   : > { %p1192_p10 = pnand %p1191_p9, %p1185_p4 }
  0x1f   : > { %1195 = shalt.err (!%p1192_p10)
}
  0x20   : > { %1127 = dma.hbm_to_vmem [thread:$0]  (!%p1255_p5), %s1339_s2, 16, %s141_s18, [#allocation5]  }
  0x21   : > { %161 = sbr.rel (%p1246_p2) target bundleno = 336 (0x150), region = 32 }
  0x26   : > { %1201 = dma.done.wait (%p1128_p3), [#allocation3], 8192  }
  0x27   : > { %1203 = vsyncadd (%p1128_p3), [#allocation3], 4294959104 }
  0x28   : > { %1205 = dma.done.wait (%p1128_p3), [#allocation5], 16  }
  0x29   : > { %1207 = vsyncadd (%p1128_p3), [#allocation5], 4294967280  ;;  %v243_v0 = vld [vmem:[#allocation2 + $0xf8] sm:$0xff]  ;;  %v242_v2 = vld [vmem:[#allocation2 + $0xf0] sm:$0xff]  ;;  %p189_p2 = scmp.lt.s32.totalorder %s1242_s13, 1  ;;  %vm706_vm0 = vcmask 1046528  }
  0x2a   : > { %v220_v1 = vld [vmem:[#allocation2 + $0x78] sm:$0xff]  ;;  %948 = vmatprep.subr.mxu0 %v243_v0  ;;  %v219_v3 = vld [vmem:[#allocation2 + $0x70] sm:$0xff]  ;;  %v241_v4 = vld [vmem:[#allocation2 + $0xe8] sm:$0xff]  ;;  %vm738_vm1 = vcmask 1040384  }
  0x2b   : > { %989 = vmatprep.subr.mxu1 %v220_v1  ;;  %949 = vmatpush3.msra.mxu0 %v243_v0  ;;  %v218_v5 = vld [vmem:[#allocation2 + $0x68] sm:$0xff]  ;;  %v240_v6 = vld [vmem:[#allocation2 + $0xe0] sm:$0xff]  ;;  %v239_v8 = vld [vmem:[#allocation2 + $0xd8] sm:$0xff]  ;;  %s1344_s13 = smov (!%p189_p2, %s1242_s13), 1 }
  0x2c   : > { %990 = vmatpush3.msra.mxu1 %v220_v1  ;;  %950 = vmatprep.subr.mxu0 %v242_v2  ;;  %v217_v7 = vld [vmem:[#allocation2 + $0x60] sm:$0xff]  ;;  %v216_v9 = vld [vmem:[#allocation2 + $0x58] sm:$0xff]  ;;  %v238_v10 = vld [vmem:[#allocation2 + $0xd0] sm:$0xff]  ;;  %s1112_s29 = smul.u32 56, %s1344_s13  ;;  %s859_s6 = sshll.u32 %s1344_s13, 4 }
  0x2d   : > { %991 = vmatprep.subr.mxu1 %v219_v3  ;;  %951 = vmatpush3.msra.mxu0 %v242_v2  ;;  %v215_v11 = vld [vmem:[#allocation2 + $0x50] sm:$0xff]  ;;  %v237_v12 = vld [vmem:[#allocation2 + $0xc8] sm:$0xff]  ;;  %v236_v14 = vld [vmem:[#allocation2 + $0xc0] sm:$0xff]  ;;  %s198_s9 = scalar_lea.vmem %s1340_s3, %s859_s6 }
  0x2e   : > { %992 = vmatpush3.msra.mxu1 %v219_v3  ;;  %952 = vmatprep.subr.mxu0 %v241_v4  ;;  %v214_v13 = vld [vmem:[#allocation2 + $0x48] sm:$0xff]  ;;  %v213_v15 = vld [vmem:[#allocation2 + $0x40] sm:$0xff]  ;;  %v235_v16 = vld [vmem:[#allocation2 + $0xb8] sm:$0xff]  ;;  %s1295_s5 = scalar_lea.vmem %s1337_s0, %s1112_s29 }
  0x2f   : > { %993 = vmatprep.subr.mxu1 %v218_v5  ;;  %953 = vmatpush3.msra.mxu0 %v241_v4  ;;  %v212_v17 = vld [vmem:[#allocation2 + $0x38] sm:$0xff]  ;;  %v234_v18 = vld [vmem:[#allocation2 + $0xb0] sm:$0xff]  ;;  %v233_v20 = vld [vmem:[#allocation2 + $0xa8] sm:$0xff] }
  0x30   : > { %994 = vmatpush3.msra.mxu1 %v218_v5  ;;  %954 = vmatprep.subr.mxu0 %v240_v6  ;;  %v211_v19 = vld [vmem:[#allocation2 + $0x30] sm:$0xff]  ;;  %v210_v21 = vld [vmem:[#allocation2 + $0x28] sm:$0xff]  ;;  %v232_v22 = vld [vmem:[#allocation2 + $0xa0] sm:$0xff] }
  0x31   : > { %995 = vmatprep.subr.mxu1 %v217_v7  ;;  %955 = vmatpush3.msra.mxu0 %v240_v6  ;;  %v209_v23 = vld [vmem:[#allocation2 + $0x20] sm:$0xff]  ;;  %v231_v24 = vld [vmem:[#allocation2 + $0x98] sm:$0xff]  ;;  %v230_v26 = vld [vmem:[#allocation2 + $0x90] sm:$0xff] }
  0x32   : > { %996 = vmatpush3.msra.mxu1 %v217_v7  ;;  %956 = vmatprep.subr.mxu0 %v239_v8  ;;  %v208_v25 = vld [vmem:[#allocation2 + $0x18] sm:$0xff]  ;;  %v207_v27 = vld [vmem:[#allocation2 + $0x10] sm:$0xff]  ;;  %v229_v28 = vld [vmem:[#allocation2 + $0x88] sm:$0xff] }
  0x33   : > { %997 = vmatprep.subr.mxu1 %v216_v9  ;;  %957 = vmatpush3.msra.mxu0 %v239_v8  ;;  %v206_v29 = vld [vmem:[#allocation2 + $0x8] sm:$0xff]  ;;  %v228_v30 = vld [vmem:[#allocation2 + $0x80] sm:$0xff]  ;;  %v456_v36 = vld [vmem:[#allocation2 + $0x178] sm:$0xff] }
  0x34   : > { %998 = vmatpush3.msra.mxu1 %v216_v9  ;;  %958 = vmatprep.subr.mxu0 %v238_v10  ;;  %v205_v31 = vld [vmem:[#allocation2] sm:$0xff]  ;;  %v222_v34 = vld [vmem:[%s1295_s5 + $0x9] sm:$0xff]  ;;  %v580_v37 = vld [vmem:[#allocation2 + $0x1f8] sm:$0xff] }
  0x35   : > { %999 = vmatprep.subr.mxu1 %v215_v11  ;;  %959 = vmatpush3.msra.mxu0 %v238_v10  ;;  %v221_v32 = vld [vmem:[%s1295_s5 + $0x1] sm:$0xff]  ;;  %v455_v38 = vld [vmem:[#allocation2 + $0x170] sm:$0xff]  ;;  %v452_v44 = vld [vmem:[#allocation2 + $0x158] sm:$0xff] }
  0x36   : > { %1000 = vmatpush3.msra.mxu1 %v215_v11  ;;  %960 = vmatprep.subr.mxu0 %v237_v12  ;;  %v199_v33 = vld [vmem:[%s1295_s5] sm:$0xff]  ;;  %v1301_v35 = vld [vmem:[%s1295_s5 + $0x8] sm:$0xff]  ;;  %v579_v39 = vld [vmem:[#allocation2 + $0x1f0] sm:$0xff] }
  0x37   : > { %1001 = vmatprep.subr.mxu1 %v214_v13  ;;  %961 = vmatpush3.msra.mxu0 %v237_v12  ;;  %v454_v40 = vld [vmem:[#allocation2 + $0x168] sm:$0xff]  ;;  %v453_v42 = vld [vmem:[#allocation2 + $0x160] sm:$0xff]  ;;  %v576_v45 = vld [vmem:[#allocation2 + $0x1d8] sm:$0xff] }
  0x38   : > { %1002 = vmatpush3.msra.mxu1 %v214_v13  ;;  %962 = vmatprep.subr.mxu0 %v236_v14  ;;  %v578_v41 = vld [vmem:[#allocation2 + $0x1e8] sm:$0xff]  ;;  %v577_v43 = vld [vmem:[#allocation2 + $0x1e0] sm:$0xff]  ;;  %v451_v46 = vld [vmem:[#allocation2 + $0x150] sm:$0xff] }
  0x39   : > { %1003 = vmatprep.subr.mxu1 %v213_v15  ;;  %963 = vmatpush3.msra.mxu0 %v236_v14  ;;  %v575_v47 = vld [vmem:[#allocation2 + $0x1d0] sm:$0xff]  ;;  %v450_v48 = vld [vmem:[#allocation2 + $0x148] sm:$0xff]  ;;  %v449_v50 = vld [vmem:[#allocation2 + $0x140] sm:$0xff] }
  0x3a   : > { %1004 = vmatpush3.msra.mxu1 %v213_v15  ;;  %964 = vmatprep.subr.mxu0 %v235_v16  ;;  %v574_v49 = vld [vmem:[#allocation2 + $0x1c8] sm:$0xff]  ;;  %v573_v51 = vld [vmem:[#allocation2 + $0x1c0] sm:$0xff]  ;;  %v448_v52 = vld [vmem:[#allocation2 + $0x138] sm:$0xff] }
  0x3b   : > { %1005 = vmatprep.subr.mxu1 %v212_v17  ;;  %965 = vmatpush3.msra.mxu0 %v235_v16  ;;  %v572_v53 = vld [vmem:[#allocation2 + $0x1b8] sm:$0xff]  ;;  %v447_v54 = vld [vmem:[#allocation2 + $0x130] sm:$0xff]  ;;  %v446_v56 = vld [vmem:[#allocation2 + $0x128] sm:$0xff] }
  0x3c   : > { %1006 = vmatpush3.msra.mxu1 %v212_v17  ;;  %966 = vmatprep.subr.mxu0 %v234_v18  ;;  %v571_v55 = vld [vmem:[#allocation2 + $0x1b0] sm:$0xff]  ;;  %v570_v57 = vld [vmem:[#allocation2 + $0x1a8] sm:$0xff]  ;;  %v224_v60 = vld [vmem:[%s1295_s5 + $0x19] sm:$0xff] }
  0x3d   : > { %1007 = vmatprep.subr.mxu1 %v211_v19  ;;  %967 = vmatpush3.msra.mxu0 %v234_v18  ;;  %v223_v58 = vld [vmem:[%s1295_s5 + $0x11] sm:$0xff]  ;;  %v445_v62 = vld [vmem:[#allocation2 + $0x120] sm:$0xff]  ;;  %v226_v4 = vld [vmem:[%s1295_s5 + $0x29] sm:$0x3] }
  0x3e   : > { %1008 = vmatpush3.msra.mxu1 %v211_v19  ;;  %968 = vmatprep.subr.mxu0 %v233_v20  ;;  %v201_v59 = vld [vmem:[%s1295_s5 + $0x10] sm:$0xff]  ;;  %v202_v61 = vld [vmem:[%s1295_s5 + $0x18] sm:$0xff]  ;;  %v569_v63 = vld [vmem:[#allocation2 + $0x1a0] sm:$0xff] }
  0x3f   : > { %1009 = vmatprep.subr.mxu1 %v210_v21  ;;  %969 = vmatpush3.msra.mxu0 %v233_v20  ;;  %v444_v0 = vld [vmem:[#allocation2 + $0x118] sm:$0xff]  ;;  %v225_v2 = vld [vmem:[%s1295_s5 + $0x21] sm:$0xff]  ;;  %v443_v6 = vld [vmem:[#allocation2 + $0x110] sm:$0xff] }
  0x40   : > { %1010 = vmatpush3.msra.mxu1 %v210_v21  ;;  %970 = vmatprep.subr.mxu0 %v232_v22  ;;  %v568_v1 = vld [vmem:[#allocation2 + $0x198] sm:$0xff]  ;;  %v203_v3 = vld [vmem:[%s1295_s5 + $0x20] sm:$0xff]  ;;  %v204_v5 = vld [vmem:[%s1295_s5 + $0x28] sm:$0x3] }
  0x41   : > { %1011 = vmatprep.subr.mxu1 %v209_v23  ;;  %971 = vmatpush3.msra.mxu0 %v232_v22  ;;  %v567_v7 = vld [vmem:[#allocation2 + $0x190] sm:$0xff]  ;;  %v442_v8 = vld [vmem:[#allocation2 + $0x108] sm:$0xff]  ;;  %v441_v10 = vld [vmem:[#allocation2 + $0x100] sm:$0xff] }
  0x42   : > { %1012 = vmatpush3.msra.mxu1 %v209_v23  ;;  %972 = vmatprep.subr.mxu0 %v231_v24  ;;  %v566_v9 = vld [vmem:[#allocation2 + $0x188] sm:$0xff]  ;;  %v565_v11 = vld [vmem:[#allocation2 + $0x180] sm:$0xff]  ;;  %v436_v14 = vld [vmem:[%s1295_s5 + $0x17] sm:$0xff] }
  0x43   : > { %1013 = vmatprep.subr.mxu1 %v208_v25  ;;  %973 = vmatpush3.msra.mxu0 %v231_v24  ;;  %v434_v12 = vld [vmem:[%s1295_s5 + $0x7] sm:$0xff]  ;;  %v435_v13 = vld [vmem:[%s1295_s5 + $0xf] sm:$0xff]  ;;  %v437_v15 = vld [vmem:[%s1295_s5 + $0x1f] sm:$0xff] }
  0x44   : > { %1014 = vmatpush3.msra.mxu1 %v208_v25  ;;  %974 = vmatprep.subr.mxu0 %v230_v26  ;;  %v438_v16 = vld [vmem:[%s1295_s5 + $0x27] sm:$0xff]  ;;  %v439_v18 = vld [vmem:[%s1295_s5 + $0x2f] sm:$0x3] }
  0x45   : > { %1015 = vmatprep.subr.mxu1 %v207_v27  ;;  %975 = vmatpush3.msra.mxu0 %v230_v26  ;;  %v562_v17 = vld [vmem:[%s1295_s5 + $0x28] sm:$0xff]  ;;  %v563_v19 = vld [vmem:[%s1295_s5 + $0x30] sm:$0x3] }
  0x46   : > { %1016 = vmatpush3.msra.mxu1 %v207_v27  ;;  %976 = vmatprep.subr.mxu0 %v229_v28 }
  0x47   : > { %1017 = vmatprep.subr.mxu1 %v206_v29  ;;  %977 = vmatpush3.msra.mxu0 %v229_v28 }
  0x48   : > { %1018 = vmatpush3.msra.mxu1 %v206_v29  ;;  %978 = vmatprep.subr.mxu0 %v228_v30 }
  0x49   : > { %1019 = vmatprep.subr.mxu1 %v205_v31  ;;  %979 = vmatpush3.msra.mxu0 %v228_v30 }
  0x4a   : > { %980 = vmatprep.mubr.f32.mxu0 %v221_v32  ;;  %1020 = vmatpush3.msra.mxu1 %v205_v31 }
  0x4b   : > { %1021 = vmatprep.mubr.f32.mxu1 %v199_v33  ;;  %981 = vmatmul.mubr.f32.vlgmr.msra.gmra.mxu0 %v222_v34 }
  0x4c   : > { %1022 = vmatmul.mubr.f32.vlgmr.msra.gmra.mxu1 %v1301_v35  ;;  %1030 = vmatprep.subr.mxu0 %v456_v36 }
  0x4d   : > { %1071 = vmatprep.subr.mxu1 %v580_v37  ;;  %1031 = vmatpush3.msra.mxu0 %v456_v36 }
  0x4e   : > { %1072 = vmatpush3.msra.mxu1 %v580_v37  ;;  %1032 = vmatprep.subr.mxu0 %v455_v38  ;;  %v856_v37 = vld [vmem:[#allocation4] ss:$0 sm:$0xff] }
  0x4f   : > { %1073 = vmatprep.subr.mxu1 %v579_v39  ;;  %1033 = vmatpush3.msra.mxu0 %v455_v38 }
  0x50   : > { %1074 = vmatpush3.msra.mxu1 %v579_v39  ;;  %1034 = vmatprep.subr.mxu0 %v454_v40 }
  0x51   : > { %1075 = vmatprep.subr.mxu1 %v578_v41  ;;  %1035 = vmatpush3.msra.mxu0 %v454_v40 }
  0x52   : > { %1076 = vmatpush3.msra.mxu1 %v578_v41  ;;  %1036 = vmatprep.subr.mxu0 %v453_v42 }
  0x53   : > { %1077 = vmatprep.subr.mxu1 %v577_v43  ;;  %1037 = vmatpush3.msra.mxu0 %v453_v42 }
  0x54   : > { %1078 = vmatpush3.msra.mxu1 %v577_v43  ;;  %1038 = vmatprep.subr.mxu0 %v452_v44 }
  0x55   : > { %1079 = vmatprep.subr.mxu1 %v576_v45  ;;  %1039 = vmatpush3.msra.mxu0 %v452_v44 }
  0x56   : > { %1080 = vmatpush3.msra.mxu1 %v576_v45  ;;  %1040 = vmatprep.subr.mxu0 %v451_v46 }
  0x57   : > { %1081 = vmatprep.subr.mxu1 %v575_v47  ;;  %1041 = vmatpush3.msra.mxu0 %v451_v46 }
  0x58   : > { %1082 = vmatpush3.msra.mxu1 %v575_v47  ;;  %1042 = vmatprep.subr.mxu0 %v450_v48 }
  0x59   : > { %1083 = vmatprep.subr.mxu1 %v574_v49  ;;  %1043 = vmatpush3.msra.mxu0 %v450_v48 }
  0x5a   : > { %1084 = vmatpush3.msra.mxu1 %v574_v49  ;;  %1044 = vmatprep.subr.mxu0 %v449_v50 }
  0x5b   : > { %1085 = vmatprep.subr.mxu1 %v573_v51  ;;  %1045 = vmatpush3.msra.mxu0 %v449_v50 }
  0x5c   : > { %1086 = vmatpush3.msra.mxu1 %v573_v51  ;;  %1046 = vmatprep.subr.mxu0 %v448_v52 }
  0x5d   : > { %1087 = vmatprep.subr.mxu1 %v572_v53  ;;  %1047 = vmatpush3.msra.mxu0 %v448_v52 }
  0x5e   : > { %1088 = vmatpush3.msra.mxu1 %v572_v53  ;;  %1048 = vmatprep.subr.mxu0 %v447_v54 }
  0x5f   : > { %1089 = vmatprep.subr.mxu1 %v571_v55  ;;  %1049 = vmatpush3.msra.mxu0 %v447_v54 }
  0x60   : > { %1090 = vmatpush3.msra.mxu1 %v571_v55  ;;  %1050 = vmatprep.subr.mxu0 %v446_v56 }
  0x61   : > { %1091 = vmatprep.subr.mxu1 %v570_v57  ;;  %983 = vmatprep.mubr.f32.mxu0 %v223_v58 }
  0x62   : > { %1024 = vmatprep.mubr.f32.mxu1 %v201_v59  ;;  %1051 = vmatpush3.msra.mxu0 %v446_v56 }
  0x63   : > { %1092 = vmatpush3.msra.mxu1 %v570_v57  ;;  %984 = vmatmul.mubr.f32.gmra.mxu0 %v224_v60 }
  0x64   : > { %1025 = vmatmul.mubr.f32.gmra.mxu1 %v202_v61  ;;  %1052 = vmatprep.subr.mxu0 %v445_v62 }
  0x65   : > { %1093 = vmatprep.subr.mxu1 %v569_v63  ;;  %1053 = vmatpush3.msra.mxu0 %v445_v62 }
  0x66   : > { %1094 = vmatpush3.msra.mxu1 %v569_v63  ;;  %1054 = vmatprep.subr.mxu0 %v444_v0 }
  0x67   : > { %1095 = vmatprep.subr.mxu1 %v568_v1  ;;  %986 = vmatprep.mubr.f32.mxu0 %v225_v2 }
  0x68   : > { %1027 = vmatprep.mubr.f32.mxu1 %v203_v3  ;;  %1055 = vmatpush3.msra.mxu0 %v444_v0 }
  0x69   : > { %1096 = vmatpush3.msra.mxu1 %v568_v1  ;;  %987 = vmatmul.mubr.f32.gmra.mxu0 %v226_v4 }
  0x6a   : > { %1028 = vmatmul.mubr.f32.gmra.mxu1 %v204_v5  ;;  %1056 = vmatprep.subr.mxu0 %v443_v6 }
  0x6b   : > { %1097 = vmatprep.subr.mxu1 %v567_v7  ;;  %1057 = vmatpush3.msra.mxu0 %v443_v6 }
  0x6c   : > { %1098 = vmatpush3.msra.mxu1 %v567_v7  ;;  %1058 = vmatprep.subr.mxu0 %v442_v8 }
  0x6d   : > { %1099 = vmatprep.subr.mxu1 %v566_v9  ;;  %1059 = vmatpush3.msra.mxu0 %v442_v8 }
  0x6e   : > { %1100 = vmatpush3.msra.mxu1 %v566_v9  ;;  %1060 = vmatprep.subr.mxu0 %v441_v10 }
  0x6f   : > { %1101 = vmatprep.subr.mxu1 %v565_v11  ;;  %1061 = vmatpush3.msra.mxu0 %v441_v10 }
  0x70   : > { %1062 = vmatprep.mubr.f32.mxu0 %v434_v12  ;;  %1102 = vmatpush3.msra.mxu1 %v565_v11 }
  0x71   : > { %1103 = vmatprep.mubr.f32.mxu1 %v1301_v35  ;;  %1063 = vmatmul.mubr.f32.vlgmr.msra.gmra.mxu0 %v435_v13 }
  0x72   : > { %1104 = vmatmul.mubr.f32.vlgmr.msra.gmra.mxu1 %v201_v59  ;;  %1065 = vmatprep.mubr.f32.mxu0 %v436_v14 }
  0x73   : > { %1106 = vmatprep.mubr.f32.mxu1 %v202_v61 }
  0x75   : > { %1066 = vmatmul.mubr.f32.gmra.mxu0 %v437_v15 }
  0x76   : > { %1107 = vmatmul.mubr.f32.gmra.mxu1 %v203_v3  ;;  %1068 = vmatprep.mubr.f32.mxu0 %v438_v16 }
  0x77   : > { %1109 = vmatprep.mubr.f32.mxu1 %v562_v17 }
  0x79   : > { %1069 = vmatmul.mubr.f32.gmra.mxu0 %v439_v18 }
  0x7a   : > { %1110 = vmatmul.mubr.f32.gmra.mxu1 %v563_v19 }
 0x10b   : > { %v982_v20 = vpop.f32.mrf.mxu0 }
 0x10c   : > { %v1023_v21 = vpop.f32.mrf.mxu1 }
 0x10d   : > { %v310_v22 = vpop.f32.mrf.mxu0  ;;  %v411_v32 = vadd.f32 %v1023_v21, %v982_v20 }
 0x10e   : > { %v405_v23 = vpop.f32.mrf.mxu1 }
 0x10f   : > { %v406_v35 = vadd.f32 %v405_v23, %v310_v22 }
 0x123   : > { %v985_v24 = vpop.f32.mrf.mxu0 }
 0x124   : > { %v1026_v25 = vpop.f32.mrf.mxu1 }
 0x125   : > { %v320_v26 = vpop.f32.mrf.mxu0  ;;  %v421_v40 = vadd.f32 %v1026_v25, %v985_v24 }
 0x126   : > { %v415_v27 = vpop.f32.mrf.mxu1 }
 0x127   : > { %v416_v45 = vadd.f32 %v415_v27, %v320_v26 }
 0x129   : > { %v988_v28 = vpop.f32.mrf.mxu0 }
 0x12a   : > { %v1029_v29 = vpop.f32.mrf.mxu1 }
 0x12b   : > { %v330_v30 = vpop.f32.mrf.mxu0  ;;  %v431_v54 = vadd.f32 %v1029_v29, %v988_v28 }
 0x12c   : > { %v425_v31 = vpop.f32.mrf.mxu1 }
 0x12d   : > { %v426_v60 = vadd.f32 %v425_v31, %v330_v30 }
 0x131   : > { %v1064_v33 = vpop.f32.mrf.mxu0 }
 0x132   : > { %v1105_v34 = vpop.f32.mrf.mxu1  ;;  %v553_v36 = vadd.f32 %v1064_v33, %v411_v32 }
 0x133   : > { %v523_v38 = vpop.f32.mrf.mxu0 }
 0x134   : > { %v647_v39 = vpop.f32.mrf.mxu1  ;;  %v677_v41 = vadd.f32 %v1105_v34, %v553_v36  ;;  %v552_v42 = vadd.f32 %v523_v38, %v406_v35 }
 0x135   : > { %v1067_v43 = vpop.f32.mrf.mxu0 }
 0x136   : > { %v1108_v44 = vpop.f32.mrf.mxu1  ;;  %v690_v46 = vadd.f32 %v856_v37, %v677_v41  ;;  %v676_v47 = vadd.f32 %v647_v39, %v552_v42  ;;  %v555_v48 = vadd.f32 %v1067_v43, %v421_v40 }
 0x137   : > { %v533_v49 = vpop.f32.mrf.mxu0 }
 0x138   : > { %v657_v50 = vpop.f32.mrf.mxu1  ;;  %v689_v51 = vadd.f32 %v856_v37, %v676_v47  ;;  %v679_v52 = vadd.f32 %v1108_v44, %v555_v48  ;;  %v554_v53 = vadd.f32 %v533_v49, %v416_v45  ;;  %v696_v55 = vmax.f32 %v690_v46, 0.0 }
 0x139   : > { %v1070_v56 = vpop.f32.mrf.mxu0 }
 0x13a   : > { %v692_v57 = vadd.f32 %v856_v37, %v679_v52  ;;  %v678_v58 = vadd.f32 %v657_v50, %v554_v53  ;;  %v1111_v59 = vpop.f32.mrf.mxu1  ;;  %v695_v61 = vmax.f32 %v689_v51, 0.0  ;;  %v557_v62 = vadd.f32 %v1070_v56, %v431_v54 }
 0x13b   : > { %v543_v63 = vpop.f32.mrf.mxu0  ;;  %v708_v2 = vrot.slane %v696_v55, 1 }
 0x13c   : > { %v698_v0 = vmax.f32 %v692_v57, 0.0  ;;  %v691_v1 = vadd.f32 %v856_v37, %v678_v58  ;;  %v681_v3 = vadd.f32 %v1111_v59, %v557_v62  ;;  %v556_v4 = vadd.f32 %v543_v63, %v426_v60  ;;  %v667_v6 = vpop.f32.mrf.mxu1 }
 0x13d   : > { %v707_v7 = vrot.slane %v695_v61, 1  ;;  %v731_v12 = vmax.f32 %v695_v61, %v708_v2 }
 0x13e   : > { %v697_v5 = vmax.f32 %v691_v1, 0.0  ;;  %v694_v8 = vadd.f32 %v856_v37, %v681_v3  ;;  %v680_v9 = vadd.f32 %v667_v6, %v556_v4  ;;  %v712_v10 = vrot.slane %v698_v0, 1 }
 0x13f   : > { %v709_v17 = vsel %vm706_vm0, %v707_v7, %v708_v2  ;;  %v739_v21 = vrot.slane %v731_v12, 7 }
 0x140   : > { %v710_v11 = vrot.slane %v697_v5, 1  ;;  %v693_v13 = vadd.f32 %v856_v37, %v680_v9  ;;  %v700_v16 = vmax.f32 %v694_v8, 0.0  ;;  %v721_v25 = vmax.f32 %v695_v61, %v709_v17 }
 0x142   : > { %v711_v14 = vsel %vm706_vm0, %v708_v2, %v710_v11  ;;  %v713_v15 = vsel %vm706_vm0, %v710_v11, %v712_v10  ;;  %v699_v20 = vmax.f32 %v693_v13, 0.0  ;;  %v727_v26 = vrot.slane %v700_v16, 1 }
 0x143   : > { %v722_v18 = vmax.f32 %v696_v55, %v711_v14  ;;  %v723_v19 = vmax.f32 %v697_v5, %v713_v15 }
 0x144   : > { %v714_v24 = vrot.slane %v699_v20, 1 }
 0x145   : > { %v740_v22 = vrot.slane %v722_v18, 7  ;;  %v742_v23 = vrot.slane %v723_v19, 7 }
 0x146   : > { %v715_v29 = vsel %vm706_vm0, %v712_v10, %v714_v24  ;;  %v728_v33 = vsel %vm706_vm0, %v714_v24, %v727_v26  ;;  %v725_v36 = vmax.f32 %v699_v20, %v714_v24 }
 0x147   : > { %v741_v27 = vsel %vm738_vm1, %v739_v21, %v740_v22  ;;  %v743_v28 = vsel %vm738_vm1, %v740_v22, %v742_v23  ;;  %v724_v32 = vmax.f32 %v698_v0, %v715_v29  ;;  %v732_v34 = vmax.f32 %v699_v20, %v728_v33 }
 0x148   : > { %v753_v30 = vmax.f32 %v721_v25, %v741_v27  ;;  %v754_v31 = vmax.f32 %v722_v18, %v743_v28 }
 0x149   : > { %v744_v35 = vrot.slane %v724_v32, 7  ;;  %v746_v37 = vrot.slane %v732_v34, 7 }
 0x14a   : > { %758 = vst [vmem:[%s198_s9] sm:$0x1] %v753_v30  ;;  %759 = vst [vmem:[%s198_s9 - $0x1] sm:$0x4] %v753_v30 }
 0x14b   : > { %760 = vst [vmem:[%s198_s9 - $0x2] sm:$0x10] %v753_v30  ;;  %761 = vst [vmem:[%s198_s9 - $0x3] sm:$0x40] %v754_v31  ;;  %v745_v38 = vsel %vm738_vm1, %v742_v23, %v744_v35  ;;  %v747_v39 = vsel %vm738_vm1, %v744_v35, %v746_v37  ;;  %v757_v41 = vmax.f32 %v725_v36, %v746_v37 }
 0x14c   : > { %v755_v40 = vmax.f32 %v723_v19, %v745_v38  ;;  %v756_v42 = vmax.f32 %v724_v32, %v747_v39 }
 0x14d   : > { %766 = vst [vmem:[%s198_s9 + $0x8] sm:$0x1] %v757_v41 }
 0x14e   : > { %762 = vst [vmem:[%s198_s9 + $0x4] sm:$0x1] %v755_v40  ;;  %763 = vst [vmem:[%s198_s9 + $0x3] sm:$0x4] %v755_v40 }
 0x14f   : > { %764 = vst [vmem:[%s198_s9 + $0x2] sm:$0x10] %v756_v42  ;;  %765 = vst [vmem:[%s198_s9 + $0x1] sm:$0x40] %v756_v42 }
 0x150 PF: > { %s15_s12 = sadd.s32 1, %s1210_s12  }
 0x151   : > { %p12_p3 = scmp.ge.s32.totalorder %s15_s12, 4  }
 0x153   :  { %14 = sbr.rel (!%p12_p3) target bundleno = 2 (0x2), region = 74 }
 0x158   :  { %788 = vsyncpa [#allocation3], 1 }
 0x159   :  { %790 = vsyncpa [#allocation3 + $0x1], 1 }
 0x15a   :  { %791 = vsyncpa [#allocation5], 1 }

// kernel: cans_forward.3
= control target key start
LH: loop header
LB: loop body
LE: loop exit
PB: predicated region body
PF: predicated region fallthrough
CT: control target
= control target key end

     0   :  { %8 = vsyncpa [#allocation3], 0  ;;  %s2964_s0 = inlined_call_operand.vmem [shape: f32[2,272,128], index: 0, kind: input, shape index: {}]   ;;  %s2965_s1 = inlined_call_operand.hbm [shape: f32[4,128,128], index: 1, kind: input, shape index: {}]   ;;  %s2966_s2 = inlined_call_operand.hbm [shape: f32[1,128], index: 2, kind: input, shape index: {}]   ;;  %s2967_s3 = inlined_call_operand.vmem [shape: f32[2,56,128], index: 3, kind: output, shape index: {}]  }
   0x1   :  { %9 = vsyncpa [#allocation5], 0  ;;  %s2270_s12 = smov 0  }
   0x2 LB: > { %s2276_s13 = sadd.s32 4294967295, %s2243_s12   ;;  %p1639_p0 = scmp.ge.s32.totalorder %s2243_s12, 1  ;;  %s2243_s12 = sphi %s2270_s12, %s15_s12  }
   0x3   : > { %p114_p1 = scmp.lt.s32.totalorder %s2243_s12, 3  ;;  %s2245_s14 = smov [#allocation2]  }
   0x4   : > { %s126_s15 = sshll.u32 %s2245_s14, 4  ;;  %p2160_p3 = scmp.eq.s32.totalorder %s2276_s13, 0  ;;  %s127_s15 = int_to_ptr.vmem [resolvable:$true] %s126_s15 }
   0x5   : > { %p2280_p2 = pnand %p1639_p0, %p114_p1  ;;  %s2246_s17 = smov [#allocation4]  }
   0x6   : > { %s140_s18 = sshll.u32 %s2246_s17, 4  ;;  %s2188_s20 = scalar_lea.vmem %s127_s15, 8192  ;;  %s141_s18 = int_to_ptr.vmem [resolvable:$true] %s140_s18 }
   0x7   : > { %p2153_p4 = pneg %p2280_p2  ;;  %p2189_p7 = scmp.ne.s32.totalorder %s127_s15, %s2188_s20 }
   0x8   : > { %p2196_p10 = scmp.lt.s32.totalorder %s127_s15, %s127_s15  ;;  %p2197_p11 = scmp.lt.s32.totalorder %s2188_s20, %s2188_s20 }
   0x9   : > { %p2289_p5 = pnand %p2160_p3, %p2153_p4 }
   0xa   : > { %p2198_p12 = por %p2197_p11, %p2196_p10 }
   0xb   : > { %p2179_p6 = pneg %p2289_p5 }
   0xd   : > { %p2191_p8 = pnand %p2189_p7, %p2179_p6 }
   0xf   : > { %p2192_p9 = pneg %p2191_p8 }
  0x11   : > { %p2199_p13 = pnand %p2198_p12, %p2192_p9 }
  0x13   : > { %2202 = shalt.err (!%p2199_p13)
}
  0x14   : > { %s2247_s21 = smov 128   ;;  %s2248_s22 = smov 8  }
  0x15   : > { %2156 = dma.hbm_to_vmem [thread:$0]  (!%p2289_p5), %s2965_s1, 8192, %s127_s15, [#allocation3], %s2247_s21, %s2247_s21, %s2248_s22  }
  0x16   : > { %s2214_s25 = scalar_lea.vmem %s141_s18, 16  ;;  %s2221_s26 = scalar_lea.vmem %s141_s18, 32 }
  0x17   : > { %p2215_p0 = scmp.ne.s32.totalorder %s141_s18, %s2214_s25  ;;  %p2222_p7 = scmp.lt.s32.totalorder %s141_s18, %s141_s18 }
  0x18   : > { %p2223_p8 = scmp.lt.s32.totalorder %s2221_s26, %s2214_s25 }
  0x19   : > { %p2217_p1 = pnand %p2215_p0, %p2179_p6 }
  0x1a   : > { %p2224_p9 = por %p2223_p8, %p2222_p7 }
  0x1b   : > { %p2218_p4 = pneg %p2217_p1 }
  0x1d   : > { %p2225_p10 = pnand %p2224_p9, %p2218_p4 }
  0x1f   : > { %2228 = shalt.err (!%p2225_p10)
}
  0x20   : > { %2159 = dma.hbm_to_vmem [thread:$0]  (!%p2289_p5), %s2966_s2, 16, %s141_s18, [#allocation5]  }
  0x21   : > { %161 = sbr.rel (%p2280_p2) target bundleno = 403 (0x193), region = 32 }
  0x26   : > { %2234 = dma.done.wait (%p2160_p3), [#allocation3], 8192  }
  0x27   : > { %2236 = vsyncadd (%p2160_p3), [#allocation3], 4294959104 }
  0x28   : > { %2238 = dma.done.wait (%p2160_p3), [#allocation5], 16  }
  0x29   : > { %2240 = vsyncadd (%p2160_p3), [#allocation5], 4294967280  ;;  %p189_p6 = scmp.lt.s32.totalorder %s2276_s13, 1  ;;  %v2249_v0 = vmov 0.0   ;;  %v291_v1 = vld [vmem:[#allocation2 + $0xf8] sm:$0xff]  ;;  %v290_v3 = vld [vmem:[#allocation2 + $0xf0] sm:$0xff] }
  0x2a   : > { %v244_v2 = vld [vmem:[#allocation2 + $0x78] sm:$0xff]  ;;  %1835 = vmatprep.subr.mxu0 %v291_v1  ;;  %v243_v4 = vld [vmem:[#allocation2 + $0x70] sm:$0xff]  ;;  %v289_v5 = vld [vmem:[#allocation2 + $0xe8] sm:$0xff]  ;;  %vm1377_vm0 = vcmask 1046528  }
  0x2b   : > { %s2983_s13 = smov (!%p189_p6, %s2276_s13), 1  ;;  %1912 = vmatprep.subr.mxu1 %v244_v2  ;;  %1836 = vmatpush3.msra.mxu0 %v291_v1  ;;  %v242_v6 = vld [vmem:[#allocation2 + $0x68] sm:$0xff]  ;;  %v288_v7 = vld [vmem:[#allocation2 + $0xe0] sm:$0xff]  ;;  %v287_v9 = vld [vmem:[#allocation2 + $0xd8] sm:$0xff] }
  0x2c   : > { %s2144_s29 = smul.u32 56, %s2983_s13  ;;  %1913 = vmatpush3.msra.mxu1 %v244_v2  ;;  %1837 = vmatprep.subr.mxu0 %v290_v3  ;;  %v241_v8 = vld [vmem:[#allocation2 + $0x60] sm:$0xff]  ;;  %v240_v10 = vld [vmem:[#allocation2 + $0x58] sm:$0xff]  ;;  %v286_v11 = vld [vmem:[#allocation2 + $0xd0] sm:$0xff] }
  0x2d   : > { %1914 = vmatprep.subr.mxu1 %v243_v4  ;;  %1838 = vmatpush3.msra.mxu0 %v290_v3  ;;  %v239_v12 = vld [vmem:[#allocation2 + $0x50] sm:$0xff]  ;;  %v285_v13 = vld [vmem:[#allocation2 + $0xc8] sm:$0xff]  ;;  %v284_v15 = vld [vmem:[#allocation2 + $0xc0] sm:$0xff]  ;;  %s2143_s6 = smul.u32 272, %s2983_s13 }
  0x2e   : > { %s2329_s5 = scalar_lea.vmem %s2967_s3, %s2144_s29  ;;  %1915 = vmatpush3.msra.mxu1 %v243_v4  ;;  %1839 = vmatprep.subr.mxu0 %v289_v5  ;;  %v238_v14 = vld [vmem:[#allocation2 + $0x48] sm:$0xff]  ;;  %v237_v16 = vld [vmem:[#allocation2 + $0x40] sm:$0xff]  ;;  %v283_v17 = vld [vmem:[#allocation2 + $0xb8] sm:$0xff] }
  0x2f   : > { %1559 = vst [vmem:[%s2329_s5 + $0x31] sm:$0x7f] %v2249_v0  ;;  %1916 = vmatprep.subr.mxu1 %v242_v6  ;;  %1840 = vmatpush3.msra.mxu0 %v289_v5  ;;  %v236_v18 = vld [vmem:[#allocation2 + $0x38] sm:$0xff]  ;;  %v282_v19 = vld [vmem:[#allocation2 + $0xb0] sm:$0xff]  ;;  %v281_v21 = vld [vmem:[#allocation2 + $0xa8] sm:$0xff]  ;;  %s2336_s9 = scalar_lea.vmem %s2964_s0, %s2143_s6 }
  0x30   : > { %1917 = vmatpush3.msra.mxu1 %v242_v6  ;;  %1841 = vmatprep.subr.mxu0 %v288_v7  ;;  %v235_v20 = vld [vmem:[#allocation2 + $0x30] sm:$0xff]  ;;  %v234_v22 = vld [vmem:[#allocation2 + $0x28] sm:$0xff]  ;;  %v280_v23 = vld [vmem:[#allocation2 + $0xa0] sm:$0xff] }
  0x31   : > { %1918 = vmatprep.subr.mxu1 %v241_v8  ;;  %1842 = vmatpush3.msra.mxu0 %v288_v7  ;;  %v233_v24 = vld [vmem:[#allocation2 + $0x20] sm:$0xff]  ;;  %v279_v25 = vld [vmem:[#allocation2 + $0x98] sm:$0xff]  ;;  %v278_v27 = vld [vmem:[#allocation2 + $0x90] sm:$0xff] }
  0x32   : > { %1919 = vmatpush3.msra.mxu1 %v241_v8  ;;  %1843 = vmatprep.subr.mxu0 %v287_v9  ;;  %v232_v26 = vld [vmem:[#allocation2 + $0x18] sm:$0xff]  ;;  %v231_v28 = vld [vmem:[#allocation2 + $0x10] sm:$0xff]  ;;  %v277_v29 = vld [vmem:[#allocation2 + $0x88] sm:$0xff] }
  0x33   : > { %1920 = vmatprep.subr.mxu1 %v240_v10  ;;  %1844 = vmatpush3.msra.mxu0 %v287_v9  ;;  %v230_v30 = vld [vmem:[#allocation2 + $0x8] sm:$0xff]  ;;  %v276_v31 = vld [vmem:[#allocation2 + $0x80] sm:$0xff]  ;;  %v764_v37 = vld [vmem:[#allocation2 + $0x178] sm:$0xff] }
  0x34   : > { %1921 = vmatpush3.msra.mxu1 %v240_v10  ;;  %1845 = vmatprep.subr.mxu0 %v286_v11  ;;  %v229_v32 = vld [vmem:[#allocation2] sm:$0xff]  ;;  %v246_v35 = vld [vmem:[%s2336_s9 + $0x9] sm:$0xff]  ;;  %v1052_v38 = vld [vmem:[#allocation2 + $0x1f8] sm:$0xff] }
  0x35   : > { %1922 = vmatprep.subr.mxu1 %v239_v12  ;;  %1846 = vmatpush3.msra.mxu0 %v286_v11  ;;  %v245_v33 = vld [vmem:[%s2336_s9 + $0x1] sm:$0xff]  ;;  %v2343_v39 = vld [vmem:[%s2336_s9 + $0x11] sm:$0xff]  ;;  %v2349_v41 = vld [vmem:[%s2336_s9 + $0x19] sm:$0xff] }
  0x36   : > { %1923 = vmatpush3.msra.mxu1 %v239_v12  ;;  %1847 = vmatprep.subr.mxu0 %v285_v13  ;;  %v199_v34 = vld [vmem:[%s2336_s9] sm:$0xff]  ;;  %v200_v36 = vld [vmem:[%s2336_s9 + $0x8] sm:$0xff]  ;;  %v2346_v40 = vld [vmem:[%s2336_s9 + $0x10] sm:$0xff] }
  0x37   : > { %1924 = vmatprep.subr.mxu1 %v238_v14  ;;  %1848 = vmatpush3.msra.mxu0 %v285_v13  ;;  %v2352_v42 = vld [vmem:[%s2336_s9 + $0x18] sm:$0xff]  ;;  %v763_v43 = vld [vmem:[#allocation2 + $0x170] sm:$0xff]  ;;  %v2357_v45 = vld [vmem:[%s2336_s9 + $0x21] sm:$0xff] }
  0x38   : > { %1925 = vmatpush3.msra.mxu1 %v238_v14  ;;  %1849 = vmatprep.subr.mxu0 %v284_v15  ;;  %v1051_v44 = vld [vmem:[#allocation2 + $0x1f0] sm:$0xff]  ;;  %v2362_v46 = vld [vmem:[%s2336_s9 + $0x20] sm:$0xff]  ;;  %v2368_v48 = vld [vmem:[%s2336_s9 + $0x28] sm:$0xff] }
  0x39   : > { %1926 = vmatprep.subr.mxu1 %v237_v16  ;;  %1850 = vmatpush3.msra.mxu0 %v284_v15  ;;  %v2365_v47 = vld [vmem:[%s2336_s9 + $0x29] sm:$0xff]  ;;  %v2373_v51 = vld [vmem:[%s2336_s9 + $0x31] sm:$0xff]  ;;  %v2381_v53 = vld [vmem:[%s2336_s9 + $0x39] sm:$0xff] }
  0x3a   : > { %1927 = vmatpush3.msra.mxu1 %v237_v16  ;;  %1851 = vmatprep.subr.mxu0 %v283_v17  ;;  %v762_v49 = vld [vmem:[#allocation2 + $0x168] sm:$0xff]  ;;  %v2378_v52 = vld [vmem:[%s2336_s9 + $0x30] sm:$0xff]  ;;  %v2384_v54 = vld [vmem:[%s2336_s9 + $0x38] sm:$0xff] }
  0x3b   : > { %1928 = vmatprep.subr.mxu1 %v236_v18  ;;  %1852 = vmatpush3.msra.mxu0 %v283_v17  ;;  %v1050_v50 = vld [vmem:[#allocation2 + $0x1e8] sm:$0xff]  ;;  %v761_v55 = vld [vmem:[#allocation2 + $0x160] sm:$0xff]  ;;  %v760_v59 = vld [vmem:[#allocation2 + $0x158] sm:$0xff] }
  0x3c   : > { %1929 = vmatpush3.msra.mxu1 %v236_v18  ;;  %1853 = vmatprep.subr.mxu0 %v282_v19  ;;  %v1049_v56 = vld [vmem:[#allocation2 + $0x1e0] sm:$0xff]  ;;  %v2397_v60 = vld [vmem:[%s2336_s9 + $0x49] sm:$0xff]  ;;  %v1048_v62 = vld [vmem:[#allocation2 + $0x1d8] sm:$0xff] }
  0x3d   : > { %1930 = vmatprep.subr.mxu1 %v235_v20  ;;  %1854 = vmatpush3.msra.mxu0 %v282_v19  ;;  %v2389_v57 = vld [vmem:[%s2336_s9 + $0x41] sm:$0xff]  ;;  %v2405_v63 = vld [vmem:[%s2336_s9 + $0x51] sm:$0xff]  ;;  %v2413_v2 = vld [vmem:[%s2336_s9 + $0x59] sm:$0xff] }
  0x3e   : > { %1931 = vmatpush3.msra.mxu1 %v235_v20  ;;  %1855 = vmatprep.subr.mxu0 %v281_v21  ;;  %v2394_v58 = vld [vmem:[%s2336_s9 + $0x40] sm:$0xff]  ;;  %v2401_v61 = vld [vmem:[%s2336_s9 + $0x48] sm:$0xff]  ;;  %v2409_v0 = vld [vmem:[%s2336_s9 + $0x50] sm:$0xff] }
  0x3f   : > { %1932 = vmatprep.subr.mxu1 %v234_v22  ;;  %1856 = vmatpush3.msra.mxu0 %v281_v21  ;;  %v759_v1 = vld [vmem:[#allocation2 + $0x150] sm:$0xff]  ;;  %v2417_v3 = vld [vmem:[%s2336_s9 + $0x58] sm:$0xff]  ;;  %v2421_v5 = vld [vmem:[%s2336_s9 + $0x61] sm:$0xff] }
  0x40   : > { %1933 = vmatpush3.msra.mxu1 %v234_v22  ;;  %1857 = vmatprep.subr.mxu0 %v280_v23  ;;  %v1047_v4 = vld [vmem:[#allocation2 + $0x1d0] sm:$0xff]  ;;  %v2425_v6 = vld [vmem:[%s2336_s9 + $0x60] sm:$0xff]  ;;  %v758_v7 = vld [vmem:[#allocation2 + $0x148] sm:$0xff] }
  0x41   : > { %1934 = vmatprep.subr.mxu1 %v233_v24  ;;  %1858 = vmatpush3.msra.mxu0 %v280_v23  ;;  %v2429_v8 = vld [vmem:[%s2336_s9 + $0x69] sm:$0xff]  ;;  %v2437_v11 = vld [vmem:[%s2336_s9 + $0x71] sm:$0xff]  ;;  %v757_v13 = vld [vmem:[#allocation2 + $0x140] sm:$0xff] }
  0x42   : > { %1935 = vmatpush3.msra.mxu1 %v233_v24  ;;  %1859 = vmatprep.subr.mxu0 %v279_v25  ;;  %v2433_v9 = vld [vmem:[%s2336_s9 + $0x68] sm:$0xff]  ;;  %v2441_v12 = vld [vmem:[%s2336_s9 + $0x70] sm:$0xff]  ;;  %v2445_v14 = vld [vmem:[%s2336_s9 + $0x79] sm:$0xff] }
  0x43   : > { %1936 = vmatprep.subr.mxu1 %v232_v26  ;;  %1860 = vmatpush3.msra.mxu0 %v279_v25  ;;  %v1046_v10 = vld [vmem:[#allocation2 + $0x1c8] sm:$0xff]  ;;  %v2449_v15 = vld [vmem:[%s2336_s9 + $0x78] sm:$0xff]  ;;  %v1045_v16 = vld [vmem:[#allocation2 + $0x1c0] sm:$0xff] }
  0x44   : > { %1937 = vmatpush3.msra.mxu1 %v232_v26  ;;  %1861 = vmatprep.subr.mxu0 %v278_v27  ;;  %v756_v17 = vld [vmem:[#allocation2 + $0x138] sm:$0xff]  ;;  %v2454_v18 = vld [vmem:[%s2336_s9 + $0x81] sm:$0xff]  ;;  %v2461_v20 = vld [vmem:[%s2336_s9 + $0x89] sm:$0xff] }
  0x45   : > { %1938 = vmatprep.subr.mxu1 %v231_v28  ;;  %1862 = vmatpush3.msra.mxu0 %v278_v27  ;;  %v2458_v19 = vld [vmem:[%s2336_s9 + $0x80] sm:$0xff]  ;;  %v2464_v21 = vld [vmem:[%s2336_s9 + $0x88] sm:$0xff]  ;;  %v1044_v22 = vld [vmem:[#allocation2 + $0x1b8] sm:$0xff] }
  0x46   : > { %1939 = vmatpush3.msra.mxu1 %v231_v28  ;;  %1863 = vmatprep.subr.mxu0 %v277_v29  ;;  %v755_v23 = vld [vmem:[#allocation2 + $0x130] sm:$0xff]  ;;  %v2477_v26 = vld [vmem:[%s2336_s9 + $0x99] sm:$0xff] }
  0x47   : > { %1940 = vmatprep.subr.mxu1 %v230_v30  ;;  %1864 = vmatpush3.msra.mxu0 %v277_v29  ;;  %v2469_v24 = vld [vmem:[%s2336_s9 + $0x91] sm:$0xff]  ;;  %v754_v29 = vld [vmem:[#allocation2 + $0x128] sm:$0xff] }
  0x48   : > { %1941 = vmatpush3.msra.mxu1 %v230_v30  ;;  %1865 = vmatprep.subr.mxu0 %v276_v31  ;;  %v2474_v25 = vld [vmem:[%s2336_s9 + $0x90] sm:$0xff]  ;;  %v2480_v27 = vld [vmem:[%s2336_s9 + $0x98] sm:$0xff]  ;;  %v2485_v30 = vld [vmem:[%s2336_s9 + $0xa1] sm:$0xff] }
  0x49   : > { %1942 = vmatprep.subr.mxu1 %v229_v32  ;;  %1866 = vmatpush3.msra.mxu0 %v276_v31  ;;  %v1043_v28 = vld [vmem:[#allocation2 + $0x1b0] sm:$0xff]  ;;  %v2490_v31 = vld [vmem:[%s2336_s9 + $0xa0] sm:$0xff] }
  0x4a   : > { %1867 = vmatprep.mubr.f32.mxu0 %v245_v33  ;;  %1943 = vmatpush3.msra.mxu1 %v229_v32  ;;  %v2493_v32 = vld [vmem:[%s2336_s9 + $0xa9] sm:$0xff] }
  0x4b   : > { %1944 = vmatprep.mubr.f32.mxu1 %v199_v34  ;;  %1868 = vmatmul.mubr.f32.vlgmr.msra.gmra.mxu0 %v246_v35  ;;  %v2496_v33 = vld [vmem:[%s2336_s9 + $0xa8] sm:$0xff]  ;;  %v753_v35 = vld [vmem:[#allocation2 + $0x120] sm:$0xff] }
  0x4c   : > { %1945 = vmatmul.mubr.f32.vlgmr.msra.gmra.mxu1 %v200_v36  ;;  %1989 = vmatprep.subr.mxu0 %v764_v37  ;;  %v1042_v34 = vld [vmem:[#allocation2 + $0x1a8] sm:$0xff]  ;;  %v2501_v36 = vld [vmem:[%s2336_s9 + $0xb1] sm:$0xff] }
  0x4d   : > { %2066 = vmatprep.subr.mxu1 %v1052_v38  ;;  %1990 = vmatpush3.msra.mxu0 %v764_v37  ;;  %v2506_v37 = vld [vmem:[%s2336_s9 + $0xb0] sm:$0xff] }
  0x4e   : > { %1870 = vmatprep.mubr.f32.mxu0 %v2343_v39  ;;  %1947 = vmatprep.mubr.f32.mxu1 %v2346_v40 }
  0x4f   : > { %2067 = vmatpush3.msra.mxu1 %v1052_v38  ;;  %1871 = vmatmul.mubr.f32.gmra.mxu0 %v2349_v41  ;;  %v2509_v38 = vld [vmem:[%s2336_s9 + $0xb9] sm:$0xff] }
  0x50   : > { %1948 = vmatmul.mubr.f32.gmra.mxu1 %v2352_v42  ;;  %1991 = vmatprep.subr.mxu0 %v763_v43 }
  0x51   : > { %2068 = vmatprep.subr.mxu1 %v1051_v44  ;;  %1992 = vmatpush3.msra.mxu0 %v763_v43  ;;  %v2512_v43 = vld [vmem:[%s2336_s9 + $0xb8] sm:$0xff] }
  0x52   : > { %1873 = vmatprep.mubr.f32.mxu0 %v2357_v45  ;;  %1950 = vmatprep.mubr.f32.mxu1 %v2362_v46 }
  0x53   : > { %2069 = vmatpush3.msra.mxu1 %v1051_v44  ;;  %1874 = vmatmul.mubr.f32.gmra.mxu0 %v2365_v47  ;;  %v1041_v44 = vld [vmem:[#allocation2 + $0x1a0] sm:$0xff] }
  0x54   : > { %1951 = vmatmul.mubr.f32.gmra.mxu1 %v2368_v48  ;;  %1993 = vmatprep.subr.mxu0 %v762_v49 }
  0x55   : > { %2070 = vmatprep.subr.mxu1 %v1050_v50  ;;  %1994 = vmatpush3.msra.mxu0 %v762_v49  ;;  %v752_v49 = vld [vmem:[#allocation2 + $0x118] sm:$0xff] }
  0x56   : > { %1876 = vmatprep.mubr.f32.mxu0 %v2373_v51  ;;  %1953 = vmatprep.mubr.f32.mxu1 %v2378_v52 }
  0x57   : > { %2071 = vmatpush3.msra.mxu1 %v1050_v50  ;;  %1877 = vmatmul.mubr.f32.gmra.mxu0 %v2381_v53  ;;  %v2519_v50 = vld [vmem:[%s2336_s9 + $0xc1] sm:$0xff] }
  0x58   : > { %1954 = vmatmul.mubr.f32.gmra.mxu1 %v2384_v54  ;;  %1995 = vmatprep.subr.mxu0 %v761_v55 }
  0x59   : > { %2072 = vmatprep.subr.mxu1 %v1049_v56  ;;  %1996 = vmatpush3.msra.mxu0 %v761_v55  ;;  %v2522_v55 = vld [vmem:[%s2336_s9 + $0xc0] sm:$0xff] }
  0x5a   : > { %1879 = vmatprep.mubr.f32.mxu0 %v2389_v57  ;;  %1956 = vmatprep.mubr.f32.mxu1 %v2394_v58 }
  0x5b   : > { %1997 = vmatprep.subr.mxu0 %v760_v59  ;;  %2073 = vmatpush3.msra.mxu1 %v1049_v56  ;;  %v1040_v56 = vld [vmem:[#allocation2 + $0x198] sm:$0xff] }
  0x5c   : > { %1880 = vmatmul.mubr.f32.gmra.mxu0 %v2397_v60  ;;  %1957 = vmatmul.mubr.f32.gmra.mxu1 %v2401_v61 }
  0x5d   : > { %1998 = vmatpush3.msra.mxu0 %v760_v59  ;;  %2074 = vmatprep.subr.mxu1 %v1048_v62  ;;  %v2525_v59 = vld [vmem:[%s2336_s9 + $0xc9] sm:$0xff] }
  0x5e   : > { %1882 = vmatprep.mubr.f32.mxu0 %v2405_v63  ;;  %2075 = vmatpush3.msra.mxu1 %v1048_v62  ;;  %v2528_v62 = vld [vmem:[%s2336_s9 + $0xc8] sm:$0xff] }
  0x5f   : > { %1959 = vmatprep.mubr.f32.mxu1 %v2409_v0  ;;  %1999 = vmatprep.subr.mxu0 %v759_v1 }
  0x60   : > { %1883 = vmatmul.mubr.f32.gmra.mxu0 %v2413_v2  ;;  %1960 = vmatmul.mubr.f32.gmra.mxu1 %v2417_v3 }
  0x61   : > { %2000 = vmatpush3.msra.mxu0 %v759_v1  ;;  %2076 = vmatprep.subr.mxu1 %v1047_v4  ;;  %v751_v1 = vld [vmem:[#allocation2 + $0x110] sm:$0xff] }
  0x62   : > { %1885 = vmatprep.mubr.f32.mxu0 %v2421_v5  ;;  %2077 = vmatpush3.msra.mxu1 %v1047_v4  ;;  %v2534_v4 = vld [vmem:[%s2336_s9 + $0xd1] sm:$0xff] }
  0x63   : > { %1962 = vmatprep.mubr.f32.mxu1 %v2425_v6  ;;  %2001 = vmatprep.subr.mxu0 %v758_v7 }
  0x64   : > { %1886 = vmatmul.mubr.f32.gmra.mxu0 %v2429_v8  ;;  %1963 = vmatmul.mubr.f32.gmra.mxu1 %v2433_v9 }
  0x65   : > { %2002 = vmatpush3.msra.mxu0 %v758_v7  ;;  %2078 = vmatprep.subr.mxu1 %v1046_v10  ;;  %v2537_v7 = vld [vmem:[%s2336_s9 + $0xd0] sm:$0xff] }
  0x66   : > { %1888 = vmatprep.mubr.f32.mxu0 %v2437_v11  ;;  %2079 = vmatpush3.msra.mxu1 %v1046_v10  ;;  %v1039_v10 = vld [vmem:[#allocation2 + $0x190] sm:$0xff] }
  0x67   : > { %1965 = vmatprep.mubr.f32.mxu1 %v2441_v12  ;;  %2003 = vmatprep.subr.mxu0 %v757_v13 }
  0x68   : > { %1889 = vmatmul.mubr.f32.gmra.mxu0 %v2445_v14  ;;  %1966 = vmatmul.mubr.f32.gmra.mxu1 %v2449_v15 }
  0x69   : > { %2004 = vmatpush3.msra.mxu0 %v757_v13  ;;  %2080 = vmatprep.subr.mxu1 %v1045_v16  ;;  %v2541_v13 = vld [vmem:[%s2336_s9 + $0xd9] sm:$0xff] }
  0x6a   : > { %2005 = vmatprep.subr.mxu0 %v756_v17  ;;  %2081 = vmatpush3.msra.mxu1 %v1045_v16  ;;  %v2544_v16 = vld [vmem:[%s2336_s9 + $0xd8] sm:$0xff] }
  0x6b   : > { %1891 = vmatprep.mubr.f32.mxu0 %v2454_v18  ;;  %1968 = vmatprep.mubr.f32.mxu1 %v2458_v19 }
  0x6c   : > { %2006 = vmatpush3.msra.mxu0 %v756_v17  ;;  %1969 = vmatmul.mubr.f32.gmra.mxu1 %v2464_v21  ;;  %v750_v17 = vld [vmem:[#allocation2 + $0x108] sm:$0xff] }
  0x6d   : > { %1892 = vmatmul.mubr.f32.gmra.mxu0 %v2461_v20  ;;  %2082 = vmatprep.subr.mxu1 %v1044_v22 }
  0x6e   : > { %2007 = vmatprep.subr.mxu0 %v755_v23  ;;  %2083 = vmatpush3.msra.mxu1 %v1044_v22  ;;  %v2550_v22 = vld [vmem:[%s2336_s9 + $0xe1] sm:$0xff] }
  0x6f   : > { %1894 = vmatprep.mubr.f32.mxu0 %v2469_v24  ;;  %1971 = vmatprep.mubr.f32.mxu1 %v2474_v25 }
  0x70   : > { %2008 = vmatpush3.msra.mxu0 %v755_v23  ;;  %1972 = vmatmul.mubr.f32.gmra.mxu1 %v2480_v27  ;;  %v1038_v23 = vld [vmem:[#allocation2 + $0x188] sm:$0xff] }
  0x71   : > { %1895 = vmatmul.mubr.f32.gmra.mxu0 %v2477_v26  ;;  %2084 = vmatprep.subr.mxu1 %v1043_v28 }
  0x72   : > { %2009 = vmatprep.subr.mxu0 %v754_v29  ;;  %2085 = vmatpush3.msra.mxu1 %v1043_v28  ;;  %v2554_v28 = vld [vmem:[%s2336_s9 + $0xe9] sm:$0xff] }
  0x73   : > { %1897 = vmatprep.mubr.f32.mxu0 %v2485_v30  ;;  %1974 = vmatprep.mubr.f32.mxu1 %v2490_v31 }
  0x74   : > { %2010 = vmatpush3.msra.mxu0 %v754_v29  ;;  %1975 = vmatmul.mubr.f32.gmra.mxu1 %v2496_v33  ;;  %v2557_v29 = vld [vmem:[%s2336_s9 + $0xe0] sm:$0xff] }
  0x75   : > { %1898 = vmatmul.mubr.f32.gmra.mxu0 %v2493_v32  ;;  %2086 = vmatprep.subr.mxu1 %v1042_v34 }
  0x76   : > { %2011 = vmatprep.subr.mxu0 %v753_v35  ;;  %2087 = vmatpush3.msra.mxu1 %v1042_v34  ;;  %v749_v34 = vld [vmem:[#allocation2 + $0x100] sm:$0xff] }
  0x77   : > { %1900 = vmatprep.mubr.f32.mxu0 %v2501_v36  ;;  %1977 = vmatprep.mubr.f32.mxu1 %v2506_v37 }
  0x78   : > { %2012 = vmatpush3.msra.mxu0 %v753_v35  ;;  %1978 = vmatmul.mubr.f32.gmra.mxu1 %v2512_v43  ;;  %v2561_v35 = vld [vmem:[%s2336_s9 + $0xe8] sm:$0xff] }
  0x79   : > { %1901 = vmatmul.mubr.f32.gmra.mxu0 %v2509_v38  ;;  %2088 = vmatprep.subr.mxu1 %v1041_v44 }
  0x7a   : > { %2013 = vmatprep.subr.mxu0 %v752_v49  ;;  %2089 = vmatpush3.msra.mxu1 %v1041_v44  ;;  %v1037_v44 = vld [vmem:[#allocation2 + $0x180] sm:$0xff] }
  0x7b   : > { %2014 = vmatpush3.msra.mxu0 %v752_v49  ;;  %1903 = vmatprep.mubr.f32.mxu0 %v2519_v50 }
  0x7c   : > { %1980 = vmatprep.mubr.f32.mxu1 %v2522_v55  ;;  %2090 = vmatprep.subr.mxu1 %v1040_v56 }
  0x7d   : > { %1904 = vmatmul.mubr.f32.gmra.mxu0 %v2525_v59  ;;  %1981 = vmatmul.mubr.f32.gmra.mxu1 %v2528_v62 }
  0x7e   : > { %2015 = vmatprep.subr.mxu0 %v751_v1  ;;  %2091 = vmatpush3.msra.mxu1 %v1040_v56 }
  0x7f   : > { %2016 = vmatpush3.msra.mxu0 %v751_v1  ;;  %1906 = vmatprep.mubr.f32.mxu0 %v2534_v4 }
  0x80   : > { %1983 = vmatprep.mubr.f32.mxu1 %v2537_v7  ;;  %2092 = vmatprep.subr.mxu1 %v1039_v10 }
  0x81   : > { %1907 = vmatmul.mubr.f32.gmra.mxu0 %v2541_v13  ;;  %1984 = vmatmul.mubr.f32.gmra.mxu1 %v2544_v16 }
  0x82   : > { %2017 = vmatprep.subr.mxu0 %v750_v17  ;;  %2093 = vmatpush3.msra.mxu1 %v1039_v10 }
  0x83   : > { %2018 = vmatpush3.msra.mxu0 %v750_v17  ;;  %1909 = vmatprep.mubr.f32.mxu0 %v2550_v22 }
  0x84   : > { %2094 = vmatprep.subr.mxu1 %v1038_v23  ;;  %1986 = vmatprep.mubr.f32.mxu1 %v2557_v29 }
  0x85   : > { %1910 = vmatmul.mubr.f32.gmra.mxu0 %v2554_v28  ;;  %2095 = vmatpush3.msra.mxu1 %v1038_v23 }
  0x86   : > { %2019 = vmatprep.subr.mxu0 %v749_v34  ;;  %1987 = vmatmul.mubr.f32.gmra.mxu1 %v2561_v35 }
  0x87   : > { %2020 = vmatpush3.msra.mxu0 %v749_v34  ;;  %2021 = vmatprep.mubr.f32.mxu0 %v2346_v40  ;;  %v1034_v40 = vld [vmem:[%s2336_s9 + $0xf1] sm:$0xff] }
  0x88   : > { %2096 = vmatprep.subr.mxu1 %v1037_v44  ;;  %2098 = vmatprep.mubr.f32.mxu1 %v2343_v39  ;;  %v746_v39 = vld [vmem:[%s2336_s9 + $0xf0] sm:$0xff] }
  0x89   : > { %2022 = vmatmul.mubr.f32.vlgmr.msra.gmra.mxu0 %v2352_v42  ;;  %2097 = vmatpush3.msra.mxu1 %v1037_v44  ;;  %v1035_v42 = vld [vmem:[%s2336_s9 + $0xf9] sm:$0xff] }
  0x8a   : > { %2024 = vmatprep.mubr.f32.mxu0 %v2362_v46  ;;  %2099 = vmatmul.mubr.f32.vlgmr.msra.gmra.mxu1 %v2349_v41  ;;  %v747_v41 = vld [vmem:[%s2336_s9 + $0xf8] sm:$0xff] }
  0x8b   : > { %2101 = vmatprep.mubr.f32.mxu1 %v2357_v45 }
  0x8d   : > { %2025 = vmatmul.mubr.f32.gmra.mxu0 %v2368_v48 }
  0x8e   : > { %2027 = vmatprep.mubr.f32.mxu0 %v2378_v52  ;;  %2102 = vmatmul.mubr.f32.gmra.mxu1 %v2365_v47 }
  0x8f   : > { %2104 = vmatprep.mubr.f32.mxu1 %v2373_v51 }
  0x91   : > { %2028 = vmatmul.mubr.f32.gmra.mxu0 %v2384_v54 }
  0x92   : > { %2030 = vmatprep.mubr.f32.mxu0 %v2394_v58  ;;  %2105 = vmatmul.mubr.f32.gmra.mxu1 %v2381_v53 }
  0x93   : > { %2107 = vmatprep.mubr.f32.mxu1 %v2389_v57 }
  0x95   : > { %2031 = vmatmul.mubr.f32.gmra.mxu0 %v2401_v61 }
  0x96   : > { %2033 = vmatprep.mubr.f32.mxu0 %v2409_v0  ;;  %2108 = vmatmul.mubr.f32.gmra.mxu1 %v2397_v60 }
  0x97   : > { %2110 = vmatprep.mubr.f32.mxu1 %v2405_v63 }
  0x99   : > { %2034 = vmatmul.mubr.f32.gmra.mxu0 %v2417_v3 }
  0x9a   : > { %2036 = vmatprep.mubr.f32.mxu0 %v2425_v6  ;;  %2111 = vmatmul.mubr.f32.gmra.mxu1 %v2413_v2 }
  0x9b   : > { %2113 = vmatprep.mubr.f32.mxu1 %v2421_v5 }
  0x9d   : > { %2037 = vmatmul.mubr.f32.gmra.mxu0 %v2433_v9 }
  0x9e   : > { %2039 = vmatprep.mubr.f32.mxu0 %v2441_v12  ;;  %2114 = vmatmul.mubr.f32.gmra.mxu1 %v2429_v8 }
  0x9f   : > { %2116 = vmatprep.mubr.f32.mxu1 %v2437_v11 }
  0xa1   : > { %2040 = vmatmul.mubr.f32.gmra.mxu0 %v2449_v15 }
  0xa2   : > { %2042 = vmatprep.mubr.f32.mxu0 %v2458_v19  ;;  %2117 = vmatmul.mubr.f32.gmra.mxu1 %v2445_v14 }
  0xa3   : > { %2119 = vmatprep.mubr.f32.mxu1 %v2454_v18 }
  0xa5   : > { %2043 = vmatmul.mubr.f32.gmra.mxu0 %v2464_v21 }
  0xa6   : > { %2045 = vmatprep.mubr.f32.mxu0 %v2474_v25  ;;  %2120 = vmatmul.mubr.f32.gmra.mxu1 %v2461_v20 }
  0xa7   : > { %2122 = vmatprep.mubr.f32.mxu1 %v2469_v24 }
  0xa9   : > { %2046 = vmatmul.mubr.f32.gmra.mxu0 %v2480_v27 }
  0xaa   : > { %2048 = vmatprep.mubr.f32.mxu0 %v2490_v31  ;;  %2123 = vmatmul.mubr.f32.gmra.mxu1 %v2477_v26 }
  0xab   : > { %2125 = vmatprep.mubr.f32.mxu1 %v2485_v30 }
  0xad   : > { %2049 = vmatmul.mubr.f32.gmra.mxu0 %v2496_v33 }
  0xae   : > { %2051 = vmatprep.mubr.f32.mxu0 %v2506_v37  ;;  %2126 = vmatmul.mubr.f32.gmra.mxu1 %v2493_v32 }
  0xaf   : > { %2128 = vmatprep.mubr.f32.mxu1 %v2501_v36 }
  0xb1   : > { %2052 = vmatmul.mubr.f32.gmra.mxu0 %v2512_v43 }
  0xb2   : > { %2054 = vmatprep.mubr.f32.mxu0 %v2522_v55  ;;  %2129 = vmatmul.mubr.f32.gmra.mxu1 %v2509_v38 }
  0xb3   : > { %2131 = vmatprep.mubr.f32.mxu1 %v2519_v50 }
  0xb5   : > { %2055 = vmatmul.mubr.f32.gmra.mxu0 %v2528_v62 }
  0xb6   : > { %2057 = vmatprep.mubr.f32.mxu0 %v2537_v7  ;;  %2132 = vmatmul.mubr.f32.gmra.mxu1 %v2525_v59 }
  0xb7   : > { %2134 = vmatprep.mubr.f32.mxu1 %v2534_v4 }
  0xb9   : > { %2058 = vmatmul.mubr.f32.gmra.mxu0 %v2544_v16 }
  0xba   : > { %2060 = vmatprep.mubr.f32.mxu0 %v2557_v29  ;;  %2135 = vmatmul.mubr.f32.gmra.mxu1 %v2541_v13 }
  0xbb   : > { %2137 = vmatprep.mubr.f32.mxu1 %v2550_v22 }
  0xbd   : > { %2061 = vmatmul.mubr.f32.gmra.mxu0 %v2561_v35 }
  0xbe   : > { %2063 = vmatprep.mubr.f32.mxu0 %v746_v39  ;;  %2138 = vmatmul.mubr.f32.gmra.mxu1 %v2554_v28 }
  0xbf   : > { %2140 = vmatprep.mubr.f32.mxu1 %v1034_v40 }
  0xc1   : > { %2064 = vmatmul.mubr.f32.gmra.mxu0 %v747_v41 }
  0xc2   : > { %2141 = vmatmul.mubr.f32.gmra.mxu1 %v1035_v42 }
 0x10b   : > { %v1869_v45 = vpop.f32.mrf.mxu0 }
 0x10c   : > { %v1946_v46 = vpop.f32.mrf.mxu1 }
 0x10d   : > { %v358_v47 = vpop.f32.mrf.mxu0  ;;  %v577_v40 = vadd.f32 %v1946_v46, %v1869_v45 }
 0x10e   : > { %v571_v48 = vpop.f32.mrf.mxu1 }
 0x10f   : > { %v2626_v51 = vpop.f32.mrf.mxu0 }
 0x110   : > { %v2628_v52 = vpop.f32.mrf.mxu1 }
 0x111   : > { %v2630_v53 = vpop.f32.mrf.mxu0 }
 0x112   : > { %v2632_v54 = vpop.f32.mrf.mxu1 }
 0x113   : > { %v2634_v57 = vpop.f32.mrf.mxu0 }
 0x114   : > { %v2636_v58 = vpop.f32.mrf.mxu1 }
 0x115   : > { %v2638_v60 = vpop.f32.mrf.mxu0 }
 0x116   : > { %v2640_v61 = vpop.f32.mrf.mxu1 }
 0x117   : > { %v2642_v63 = vpop.f32.mrf.mxu0 }
 0x118   : > { %v2644_v0 = vpop.f32.mrf.mxu1 }
 0x119   : > { %v2646_v2 = vpop.f32.mrf.mxu0 }
 0x11a   : > { %v2648_v3 = vpop.f32.mrf.mxu1 }
 0x11c   : > { %v2650_v5 = vpop.f32.mrf.mxu0  ;;  %v2652_v6 = vpop.f32.mrf.mxu1 }
 0x11e   : > { %v2654_v8 = vpop.f32.mrf.mxu0  ;;  %v2656_v9 = vpop.f32.mrf.mxu1 }
 0x120   : > { %v2658_v11 = vpop.f32.mrf.mxu0  ;;  %v2660_v12 = vpop.f32.mrf.mxu1 }
 0x122   : > { %v2662_v14 = vpop.f32.mrf.mxu0  ;;  %v2664_v15 = vpop.f32.mrf.mxu1 }
 0x124   : > { %v1887_v18 = vpop.f32.mrf.mxu0  ;;  %v1964_v19 = vpop.f32.mrf.mxu1 }
 0x125   : > { %v2666_v20 = vadd.f32 %v1964_v19, %v1887_v18  ;;  %v572_v18 = vadd.f32 %v571_v48, %v358_v47 }
 0x126   : > { %v2668_v21 = vpop.f32.mrf.mxu0  ;;  %v2670_v24 = vpop.f32.mrf.mxu1 }
 0x128   : > { %v2672_v25 = vpop.f32.mrf.mxu0  ;;  %v2674_v26 = vpop.f32.mrf.mxu1 }
 0x12a   : > { %v2676_v27 = vpop.f32.mrf.mxu0  ;;  %v2678_v30 = vpop.f32.mrf.mxu1 }
 0x12c   : > { %v2682_v32 = vpop.f32.mrf.mxu1 }
 0x12d   : > { %v2680_v31 = vpop.f32.mrf.mxu0 }
 0x12e   : > { %v2686_v36 = vpop.f32.mrf.mxu1 }
 0x12f   : > { %v2684_v33 = vpop.f32.mrf.mxu0 }
 0x130   : > { %v2690_v38 = vpop.f32.mrf.mxu1 }
 0x131   : > { %v2688_v37 = vpop.f32.mrf.mxu0 }
 0x132   : > { %v2694_v49 = vpop.f32.mrf.mxu1 }
 0x133   : > { %v2692_v43 = vpop.f32.mrf.mxu0 }
 0x134   : > { %v1976_v55 = vpop.f32.mrf.mxu1 }
 0x135   : > { %v1899_v50 = vpop.f32.mrf.mxu0 }
 0x136   : > { %v2696_v56 = vadd.f32 %v1976_v55, %v1899_v50  ;;  %v2700_v62 = vpop.f32.mrf.mxu1  ;;  %v2726_v55 = vld [vmem:[#allocation4] ss:$0 sm:$0xff] }
 0x137   : > { %v2698_v59 = vpop.f32.mrf.mxu0 }
 0x138   : > { %v2704_v4 = vpop.f32.mrf.mxu1 }
 0x139   : > { %v2702_v1 = vpop.f32.mrf.mxu0 }
 0x13a   : > { %v2708_v10 = vpop.f32.mrf.mxu1 }
 0x13b   : > { %v2706_v7 = vpop.f32.mrf.mxu0 }
 0x13d   : > { %v2710_v13 = vpop.f32.mrf.mxu0  ;;  %v2712_v16 = vpop.f32.mrf.mxu1 }
 0x13e   : > { %2970 = vst [vmem:[#allocation8_spill] sm:$0xff] %v2712_v16 }
 0x13f   : > { %v2714_v17 = vpop.f32.mrf.mxu0  ;;  %v2716_v22 = vpop.f32.mrf.mxu1 }
 0x140   : > { %2971 = vst [vmem:[#allocation9_spill] sm:$0xff] %v2714_v17  ;;  %2972 = vst [vmem:[#allocation10_spill] sm:$0xff] %v2716_v22 }
 0x141   : > { %v2718_v23 = vpop.f32.mrf.mxu0  ;;  %v2720_v28 = vpop.f32.mrf.mxu1 }
 0x142   : > { %2973 = vst [vmem:[#allocation11_spill] sm:$0xff] %v2718_v23  ;;  %2974 = vst [vmem:[#allocation12_spill] sm:$0xff] %v2720_v28  ;;  %v587_v23 = vadd.f32 %v2628_v52, %v2626_v51  ;;  %v597_v51 = vadd.f32 %v2636_v58, %v2634_v57 }
 0x143   : > { %v2722_v29 = vpop.f32.mrf.mxu0  ;;  %v2724_v34 = vpop.f32.mrf.mxu1 }
 0x144   : > { %2975 = vst [vmem:[#allocation13_spill] sm:$0xff] %v2722_v29 }
 0x145   : > { %v1911_v35 = vpop.f32.mrf.mxu0 }
 0x146   : > { %v1988_v44 = vpop.f32.mrf.mxu1  ;;  %v582_v35 = vadd.f32 %v2632_v54, %v2630_v53  ;;  %v592_v53 = vadd.f32 %v2640_v61, %v2638_v60 }
 0x147   : > { %v498_v39 = vpop.f32.mrf.mxu0 }
 0x148   : > { %v711_v41 = vpop.f32.mrf.mxu1 }
 0x149   : > { %v2023_v42 = vpop.f32.mrf.mxu0 }
 0x14a   : > { %v979_v19 = vadd.f32 %v2023_v42, %v577_v40  ;;  %v2100_v50 = vpop.f32.mrf.mxu1 }
 0x14b   : > { %v831_v22 = vpop.f32.mrf.mxu0 }
 0x14c   : > { %v1267_v28 = vadd.f32 %v2100_v50, %v979_v19  ;;  %v978_v17 = vadd.f32 %v831_v22, %v572_v18  ;;  %v1119_v29 = vpop.f32.mrf.mxu1  ;;  %v607_v50 = vadd.f32 %v2644_v0, %v2642_v63 }
 0x14d   : > { %v2026_v16 = vpop.f32.mrf.mxu0 }
 0x14e   : > { %v2733_v45 = vadd.f32 %v2726_v55, %v1267_v28  ;;  %v1266_v46 = vadd.f32 %v1119_v29, %v978_v17  ;;  %v981_v47 = vadd.f32 %v2026_v16, %v587_v23  ;;  %v2103_v48 = vpop.f32.mrf.mxu1 }
 0x14f   : > { %v841_v44 = vpop.f32.mrf.mxu0 }
 0x150   : > { %v1301_v39 = vadd.f32 %v2726_v55, %v1266_v46  ;;  %v1269_v40 = vadd.f32 %v2103_v48, %v981_v47  ;;  %v980_v41 = vadd.f32 %v841_v44, %v582_v35  ;;  %v1330_v52 = vmax.f32 %v2733_v45, 0.0  ;;  %v1129_v22 = vpop.f32.mrf.mxu1 }
 0x151   : > { %v2029_v42 = vpop.f32.mrf.mxu0  ;;  %v602_v46 = vadd.f32 %v2648_v3, %v2646_v2  ;;  %v617_v47 = vadd.f32 %v2652_v6, %v2650_v5  ;;  %v627_v5 = vadd.f32 %v2660_v12, %v2658_v11  ;;  %v622_v6 = vadd.f32 %v2664_v15, %v2662_v14 }
 0x152   : > { %v1329_v54 = vmax.f32 %v1301_v39, 0.0  ;;  %v2742_v17 = vadd.f32 %v2726_v55, %v1269_v40  ;;  %v1268_v16 = vadd.f32 %v1129_v22, %v980_v41  ;;  %v983_v23 = vadd.f32 %v2029_v42, %v597_v51  ;;  %v2106_v28 = vpop.f32.mrf.mxu1 }
 0x153   : > { %v851_v29 = vpop.f32.mrf.mxu0  ;;  %v1379_v35 = vrot.slane %v1330_v52, 1  ;;  %v612_v39 = vadd.f32 %v2656_v9, %v2654_v8 }
 0x154   : > { %v1378_v18 = vrot.slane %v1329_v54, 1  ;;  %v1332_v19 = vmax.f32 %v2742_v17, 0.0  ;;  %v1303_v57 = vadd.f32 %v2726_v55, %v1268_v16  ;;  %v982_v58 = vadd.f32 %v851_v29, %v592_v53  ;;  %v1139_v61 = vpop.f32.mrf.mxu1 }
 0x155   : > { %v1271_v60 = vadd.f32 %v2106_v28, %v983_v23  ;;  %v2032_v45 = vpop.f32.mrf.mxu0  ;;  %v632_v16 = vadd.f32 %v2670_v24, %v2668_v21 }
 0x156   : > { %v1331_v48 = vmax.f32 %v1303_v57, 0.0  ;;  %v1270_v44 = vadd.f32 %v1139_v61, %v982_v58  ;;  %v1380_v40 = vsel %vm1377_vm0, %v1378_v18, %v1379_v35  ;;  %v985_v63 = vadd.f32 %v2032_v45, %v607_v50  ;;  %v2109_v0 = vpop.f32.mrf.mxu1 }
 0x157   : > { %v2756_v41 = vadd.f32 %v2726_v55, %v1271_v60  ;;  %v861_v51 = vpop.f32.mrf.mxu0  ;;  %v1447_v22 = vrot.slane %v1332_v19, 1  ;;  %v1425_v18 = vmax.f32 %v1329_v54, %v1380_v40  ;;  %v647_v54 = vadd.f32 %v2674_v26, %v2672_v25 }
 0x158   : > { %v1381_v42 = vrot.slane %v1331_v48, 1  ;;  %v1305_v2 = vadd.f32 %v2726_v55, %v1270_v44  ;;  %v984_v3 = vadd.f32 %v861_v51, %v602_v46  ;;  %v1273_v9 = vadd.f32 %v2109_v0, %v985_v63  ;;  %v1149_v53 = vpop.f32.mrf.mxu1 }
 0x159   : > { %v1334_v8 = vmax.f32 %v2756_v41, 0.0  ;;  %v2035_v17 = vpop.f32.mrf.mxu0 }
 0x15a   : > { %v1448_v23 = vsel %vm1377_vm0, %v1381_v42, %v1447_v22  ;;  %v1333_v28 = vmax.f32 %v1305_v2, 0.0  ;;  %v1272_v29 = vadd.f32 %v1149_v53, %v984_v3  ;;  %v1382_v57 = vsel %vm1377_vm0, %v1379_v35, %v1381_v42  ;;  %v2112_v12 = vpop.f32.mrf.mxu1 }
 0x15b   : > { %v1482_v58 = vmax.f32 %v1331_v48, %v1448_v23  ;;  %v2769_v11 = vadd.f32 %v2726_v55, %v1273_v9  ;;  %v871_v14 = vpop.f32.mrf.mxu0  ;;  %v987_v21 = vadd.f32 %v2035_v17, %v617_v47  ;;  %v1384_v35 = vrot.slane %v1334_v8, 1 }
 0x15c   : > { %v1383_v15 = vrot.slane %v1333_v28, 1  ;;  %v1307_v50 = vadd.f32 %v2726_v55, %v1272_v29  ;;  %v986_v24 = vadd.f32 %v871_v14, %v612_v39  ;;  %v1159_v45 = vpop.f32.mrf.mxu1  ;;  %v1426_v48 = vmax.f32 %v1330_v52, %v1382_v57 }
 0x15d   : > { %v1496_v60 = vmax.f32 %v1425_v18, %v1482_v58  ;;  %v1336_v61 = vmax.f32 %v2769_v11, 0.0  ;;  %v2038_v46 = vpop.f32.mrf.mxu0  ;;  %v1275_v63 = vadd.f32 %v2112_v12, %v987_v21  ;;  %v642_v3 = vadd.f32 %v2678_v30, %v2676_v27 }
 0x15e   : > { %v1449_v44 = vsel %vm1377_vm0, %v1447_v22, %v1383_v15  ;;  %v1335_v40 = vmax.f32 %v1307_v50, 0.0  ;;  %v1385_v47 = vsel %vm1377_vm0, %v1383_v15, %v1384_v35  ;;  %v1274_v39 = vadd.f32 %v1159_v45, %v986_v24  ;;  %v2115_v0 = vpop.f32.mrf.mxu1 }
 0x15f   : > { %1510 = vst [vmem:[%s2329_s5] sm:$0x1] %v1496_v60  ;;  %1511 = vst [vmem:[%s2329_s5 - $0x1] sm:$0x4] %v1496_v60  ;;  %v1483_v25 = vmax.f32 %v1332_v19, %v1449_v44  ;;  %v1450_v26 = vrot.slane %v1336_v61, 1  ;;  %v881_v51 = vpop.f32.mrf.mxu0  ;;  %v2786_v52 = vadd.f32 %v2726_v55, %v1275_v63  ;;  %v989_v22 = vadd.f32 %v2038_v46, %v627_v5 }
 0x160   : > { %1512 = vst [vmem:[%s2329_s5 - $0x2] sm:$0x10] %v1496_v60  ;;  %1513 = vst [vmem:[%s2329_s5 - $0x3] sm:$0x40] %v1496_v60  ;;  %v1386_v42 = vrot.slane %v1335_v40, 1  ;;  %v988_v2 = vadd.f32 %v881_v51, %v622_v6  ;;  %v657_v19 = vadd.f32 %v2682_v32, %v2680_v31  ;;  %v1309_v53 = vadd.f32 %v2726_v55, %v1274_v39  ;;  %v1169_v17 = vpop.f32.mrf.mxu1 }
 0x161   : > { %v1497_v9 = vmax.f32 %v1426_v48, %v1483_v25  ;;  %v2041_v23 = vpop.f32.mrf.mxu0  ;;  %v2795_v29 = vadd.f32 %v2686_v36, %v2684_v33  ;;  %v1338_v5 = vmax.f32 %v2786_v52, 0.0  ;;  %v1277_v6 = vadd.f32 %v2115_v0, %v989_v22 }
 0x162   : > { %v1451_v18 = vsel %vm1377_vm0, %v1386_v42, %v1450_v26  ;;  %v1427_v57 = vmax.f32 %v1333_v28, %v1385_v47  ;;  %v1337_v30 = vmax.f32 %v1309_v53, 0.0  ;;  %v1276_v31 = vadd.f32 %v1169_v17, %v988_v2  ;;  %v2118_v32 = vpop.f32.mrf.mxu1 }
 0x163   : > { %1514 = vst [vmem:[%s2329_s5 + $0x4] sm:$0x1] %v1497_v9  ;;  %1515 = vst [vmem:[%s2329_s5 + $0x3] sm:$0x4] %v1497_v9  ;;  %v1484_v27 = vmax.f32 %v1335_v40, %v1451_v18  ;;  %v891_v58 = vpop.f32.mrf.mxu0  ;;  %v1387_v12 = vsel %vm1377_vm0, %v1384_v35, %v1386_v42  ;;  %v2804_v33 = vadd.f32 %v2726_v55, %v1277_v6  ;;  %v1389_v15 = vrot.slane %v1338_v5, 1 }
 0x164   : > { %1516 = vst [vmem:[%s2329_s5 + $0x2] sm:$0x10] %v1497_v9  ;;  %v991_v36 = vadd.f32 %v2041_v23, %v2666_v20  ;;  %v990_v14 = vadd.f32 %v891_v58, %v632_v16  ;;  %v1388_v50 = vrot.slane %v1337_v30, 1  ;;  %v1311_v21 = vadd.f32 %v2726_v55, %v1276_v31  ;;  %v1179_v24 = vpop.f32.mrf.mxu1 }
 0x165   : > { %v1498_v28 = vmax.f32 %v1427_v57, %v1484_v27  ;;  %v2044_v60 = vpop.f32.mrf.mxu0  ;;  %v1340_v35 = vmax.f32 %v2804_v33, 0.0  ;;  %v667_v20 = vadd.f32 %v2690_v38, %v2688_v37  ;;  %v1428_v16 = vmax.f32 %v1334_v8, %v1387_v12 }
 0x166   : > { %v1279_v45 = vadd.f32 %v2118_v32, %v991_v36  ;;  %v1278_v46 = vadd.f32 %v1179_v24, %v990_v14  ;;  %v993_v48 = vadd.f32 %v2044_v60, %v647_v54  ;;  %v1452_v44 = vsel %vm1377_vm0, %v1450_v26, %v1388_v50  ;;  %v2121_v63 = vpop.f32.mrf.mxu1 }
 0x167   : > { %1517 = vst [vmem:[%s2329_s5 + $0x7] sm:$0x1] %v1498_v28  ;;  %1518 = vst [vmem:[%s2329_s5 + $0x6] sm:$0x4] %v1498_v28  ;;  %v1339_v40 = vmax.f32 %v1311_v21, 0.0  ;;  %v901_v47 = vpop.f32.mrf.mxu0  ;;  %v1390_v25 = vsel %vm1377_vm0, %v1388_v50, %v1389_v15  ;;  %v1485_v54 = vmax.f32 %v1336_v61, %v1452_v44  ;;  %v1453_v39 = vrot.slane %v1340_v35, 1 }
 0x168   : > { %1519 = vst [vmem:[%s2329_s5 + $0x5] sm:$0x10] %v1498_v28  ;;  %1520 = vst [vmem:[%s2329_s5 + $0x4] sm:$0x40] %v1498_v28  ;;  %v2824_v37 = vadd.f32 %v2726_v55, %v1279_v45  ;;  %v2827_v41 = vadd.f32 %v2726_v55, %v1278_v46  ;;  %v1281_v8 = vadd.f32 %v2121_v63, %v993_v48  ;;  %v1189_v0 = vpop.f32.mrf.mxu1 }
 0x169   : > { %v1391_v38 = vrot.slane %v1339_v40, 1  ;;  %v992_v26 = vadd.f32 %v901_v47, %v642_v3  ;;  %v2047_v51 = vpop.f32.mrf.mxu0  ;;  %v662_v42 = vadd.f32 %v2694_v49, %v2692_v43  ;;  %v2833_v11 = vadd.f32 %v2700_v62, %v2698_v59 }
 0x16a   : > { %v1499_v61 = vmax.f32 %v1428_v16, %v1485_v54  ;;  %v995_v22 = vadd.f32 %v2047_v51, %v657_v19  ;;  %v1342_v9 = vmax.f32 %v2824_v37, 0.0  ;;  %v1341_v53 = vmax.f32 %v2827_v41, 0.0  ;;  %v2124_v17 = vpop.f32.mrf.mxu1 }
 0x16b   : > { %v1454_v2 = vsel %vm1377_vm0, %v1391_v38, %v1453_v39  ;;  %v2839_v3 = vadd.f32 %v2726_v55, %v1281_v8  ;;  %v911_v23 = vpop.f32.mrf.mxu0  ;;  %v1429_v18 = vmax.f32 %v1337_v30, %v1390_v25  ;;  %v1392_v43 = vsel %vm1377_vm0, %v1389_v15, %v1391_v38 }
 0x16c   : > { %1521 = vst [vmem:[%s2329_s5 + $0xb] sm:$0x1] %v1499_v61  ;;  %1522 = vst [vmem:[%s2329_s5 + $0xa] sm:$0x4] %v1499_v61  ;;  %v1486_v49 = vmax.f32 %v1339_v40, %v1454_v2  ;;  %v1280_v59 = vadd.f32 %v1189_v0, %v992_v26  ;;  %v1393_v62 = vrot.slane %v1341_v53, 1  ;;  %v1283_v6 = vadd.f32 %v2124_v17, %v995_v22  ;;  %v1199_v27 = vpop.f32.mrf.mxu1 }
 0x16d   : > { %1523 = vst [vmem:[%s2329_s5 + $0x9] sm:$0x10] %v1499_v61  ;;  %v1344_v19 = vmax.f32 %v2839_v3, 0.0  ;;  %v994_v57 = vadd.f32 %v911_v23, %v2795_v29  ;;  %v2050_v31 = vpop.f32.mrf.mxu0  ;;  %v687_v30 = vadd.f32 %v2704_v4, %v2702_v1  ;;  %v2852_v33 = vadd.f32 %v2708_v10, %v2706_v7  ;;  %v2978_v61 = vld [vmem:[#allocation10_spill] sm:$0xff] }
 0x16e   : > { %v1500_v32 = vmax.f32 %v1429_v18, %v1486_v49  ;;  %v1315_v58 = vadd.f32 %v2726_v55, %v1280_v59  ;;  %v997_v12 = vadd.f32 %v2050_v31, %v667_v20  ;;  %v1394_v36 = vrot.slane %v1342_v9, 1  ;;  %v2127_v28 = vpop.f32.mrf.mxu1  ;;  %v2976_v20 = vld [vmem:[#allocation8_spill] sm:$0xff] }
 0x16f   : > { %v1455_v29 = vsel %vm1377_vm0, %v1453_v39, %v1393_v62  ;;  %v2858_v14 = vadd.f32 %v2726_v55, %v1283_v6  ;;  %v921_v15 = vpop.f32.mrf.mxu0  ;;  %v1430_v1 = vmax.f32 %v1338_v5, %v1392_v43  ;;  %v1282_v10 = vadd.f32 %v1199_v27, %v994_v57 }
 0x170   : > { %1524 = vst [vmem:[%s2329_s5 + $0xe] sm:$0x1] %v1500_v32  ;;  %1525 = vst [vmem:[%s2329_s5 + $0xd] sm:$0x4] %v1500_v32  ;;  %v1487_v4 = vmax.f32 %v1340_v35, %v1455_v29  ;;  %v1343_v7 = vmax.f32 %v1315_v58, 0.0  ;;  %v1395_v50 = vsel %vm1377_vm0, %v1393_v62, %v1394_v36  ;;  %v1456_v21 = vrot.slane %v1344_v19, 1  ;;  %v1209_v45 = vpop.f32.mrf.mxu1 }
 0x171   : > { %1526 = vst [vmem:[%s2329_s5 + $0xc] sm:$0x10] %v1500_v32  ;;  %1527 = vst [vmem:[%s2329_s5 + $0xb] sm:$0x40] %v1500_v32  ;;  %v1285_v24 = vadd.f32 %v2127_v28, %v997_v12  ;;  %v996_v60 = vadd.f32 %v921_v15, %v662_v42  ;;  %v2053_v52 = vpop.f32.mrf.mxu0  ;;  %v1317_v48 = vadd.f32 %v2726_v55, %v1282_v10  ;;  %v1346_v44 = vmax.f32 %v2858_v14, 0.0  ;;  %v2977_v42 = vld [vmem:[#allocation9_spill] sm:$0xff] }
 0x172   : > { %v1501_v5 = vmax.f32 %v1430_v1, %v1487_v4  ;;  %v1396_v46 = vrot.slane %v1343_v7, 1  ;;  %v999_v35 = vadd.f32 %v2053_v52, %v2696_v56  ;;  %v697_v16 = vadd.f32 %v2976_v20, %v2710_v13  ;;  %v2130_v47 = vpop.f32.mrf.mxu1 }
 0x173   : > { %v2875_v40 = vadd.f32 %v2726_v55, %v1285_v24  ;;  %v1284_v63 = vadd.f32 %v1209_v45, %v996_v60  ;;  %v931_v25 = vpop.f32.mrf.mxu0  ;;  %v1431_v54 = vmax.f32 %v1341_v53, %v1395_v50  ;;  %v1345_v38 = vmax.f32 %v1317_v48, 0.0 }
 0x174   : > { %1528 = vst [vmem:[%s2329_s5 + $0x12] sm:$0x1] %v1501_v5  ;;  %1529 = vst [vmem:[%s2329_s5 + $0x11] sm:$0x4] %v1501_v5  ;;  %v1457_v39 = vsel %vm1377_vm0, %v1396_v46, %v1456_v21  ;;  %v1287_v41 = vadd.f32 %v2130_v47, %v999_v35  ;;  %v1397_v56 = vsel %vm1377_vm0, %v1394_v36, %v1396_v46  ;;  %v1219_v0 = vpop.f32.mrf.mxu1  ;;  %v1399_v18 = vrot.slane %v1346_v44, 1  ;;  %v2980_v36 = vld [vmem:[#allocation12_spill] sm:$0xff] }
 0x175   : > { %1530 = vst [vmem:[%s2329_s5 + $0x10] sm:$0x10] %v1501_v5  ;;  %v1488_v8 = vmax.f32 %v1343_v7, %v1457_v39  ;;  %v1348_v13 = vmax.f32 %v2875_v40, 0.0  ;;  %v1319_v26 = vadd.f32 %v2726_v55, %v1284_v63  ;;  %v2056_v51 = vpop.f32.mrf.mxu0  ;;  %v692_v22 = vadd.f32 %v2978_v61, %v2977_v42 }
 0x176   : > { %v1398_v2 = vrot.slane %v1345_v38, 1  ;;  %v998_v53 = vadd.f32 %v931_v25, %v2833_v11  ;;  %v1001_v17 = vadd.f32 %v2056_v51, %v687_v30  ;;  %v2890_v49 = vadd.f32 %v2726_v55, %v1287_v41  ;;  %v2133_v59 = vpop.f32.mrf.mxu1  ;;  %v2981_v25 = vld [vmem:[#allocation13_spill] sm:$0xff] }
 0x177   : > { %v1502_v23 = vmax.f32 %v1431_v54, %v1488_v8  ;;  %v1347_v43 = vmax.f32 %v1319_v26, 0.0  ;;  %v941_v62 = vpop.f32.mrf.mxu0  ;;  %v1432_v6 = vmax.f32 %v1342_v9, %v1397_v56  ;;  %v1459_v27 = vrot.slane %v1348_v13, 1  ;;  %v2979_v9 = vld [vmem:[#allocation11_spill] sm:$0xff] }
 0x178   : > { %v1458_v57 = vsel %vm1377_vm0, %v1456_v21, %v1398_v2  ;;  %v1286_v11 = vadd.f32 %v1219_v0, %v998_v53  ;;  %v1400_v31 = vsel %vm1377_vm0, %v1398_v2, %v1399_v18  ;;  %v1289_v58 = vadd.f32 %v2133_v59, %v1001_v17  ;;  %v1229_v12 = vpop.f32.mrf.mxu1 }
 0x179   : > { %1531 = vst [vmem:[%s2329_s5 + $0x15] sm:$0x1] %v1502_v23  ;;  %1532 = vst [vmem:[%s2329_s5 + $0x14] sm:$0x4] %v1502_v23  ;;  %v1489_v30 = vmax.f32 %v1344_v19, %v1458_v57  ;;  %v1401_v32 = vrot.slane %v1347_v43, 1  ;;  %v2059_v37 = vpop.f32.mrf.mxu0  ;;  %v707_v29 = vadd.f32 %v2980_v36, %v2979_v9  ;;  %v1000_v15 = vadd.f32 %v941_v62, %v2852_v33 }
 0x17a   : > { %1533 = vst [vmem:[%s2329_s5 + $0x13] sm:$0x10] %v1502_v23  ;;  %1534 = vst [vmem:[%s2329_s5 + $0x12] sm:$0x40] %v1502_v23  ;;  %v1321_v28 = vadd.f32 %v2726_v55, %v1286_v11  ;;  %v1003_v1 = vadd.f32 %v2059_v37, %v697_v16  ;;  %v1350_v3 = vmax.f32 %v2890_v49, 0.0  ;;  %v2911_v19 = vadd.f32 %v2726_v55, %v1289_v58  ;;  %v2136_v10 = vpop.f32.mrf.mxu1 }
 0x17b   : > { %v1503_v4 = vmax.f32 %v1432_v6, %v1489_v30  ;;  %v1460_v7 = vsel %vm1377_vm0, %v1401_v32, %v1459_v27  ;;  %v951_v50 = vpop.f32.mrf.mxu0  ;;  %v1433_v21 = vmax.f32 %v1345_v38, %v1400_v31  ;;  %v1288_v45 = vadd.f32 %v1229_v12, %v1000_v15 }
 0x17c   : > { %v1490_v24 = vmax.f32 %v1347_v43, %v1460_v7  ;;  %v1349_v60 = vmax.f32 %v1321_v28, 0.0  ;;  %v1402_v33 = vsel %vm1377_vm0, %v1399_v18, %v1401_v32  ;;  %v1352_v52 = vmax.f32 %v2911_v19, 0.0  ;;  %v1239_v48 = vpop.f32.mrf.mxu1 }
 0x17d   : > { %1535 = vst [vmem:[%s2329_s5 + $0x19] sm:$0x1] %v1503_v4  ;;  %1536 = vst [vmem:[%s2329_s5 + $0x18] sm:$0x4] %v1503_v4  ;;  %v1291_v5 = vadd.f32 %v2136_v10, %v1003_v1  ;;  %v1002_v46 = vadd.f32 %v951_v50, %v692_v22  ;;  %v2062_v35 = vpop.f32.mrf.mxu0  ;;  %v1323_v63 = vadd.f32 %v2726_v55, %v1288_v45  ;;  %v1404_v39 = vrot.slane %v1350_v3, 1 }
 0x17e   : > { %1537 = vst [vmem:[%s2329_s5 + $0x17] sm:$0x10] %v1503_v4  ;;  %v1504_v20 = vmax.f32 %v1433_v21, %v1490_v24  ;;  %v1403_v16 = vrot.slane %v1349_v60, 1  ;;  %v1005_v47 = vadd.f32 %v2062_v35, %v707_v29  ;;  %v702_v54 = vadd.f32 %v2724_v34, %v2981_v25  ;;  %v2139_v56 = vpop.f32.mrf.mxu1 }
 0x17f   : > { %v1326_v38 = vadd.f32 %v2726_v55, %v1291_v5  ;;  %v1290_v41 = vadd.f32 %v1239_v48, %v1002_v46  ;;  %v961_v8 = vpop.f32.mrf.mxu0  ;;  %v1434_v26 = vmax.f32 %v1346_v44, %v1402_v33  ;;  %v1351_v51 = vmax.f32 %v1323_v63, 0.0 }
 0x180   : > { %1538 = vst [vmem:[%s2329_s5 + $0x1c] sm:$0x1] %v1504_v20  ;;  %1539 = vst [vmem:[%s2329_s5 + $0x1b] sm:$0x4] %v1504_v20  ;;  %v1461_v0 = vsel %vm1377_vm0, %v1459_v27, %v1403_v16  ;;  %v1293_v42 = vadd.f32 %v2139_v56, %v1005_v47  ;;  %v1462_v61 = vrot.slane %v1352_v52, 1  ;;  %v1249_v53 = vpop.f32.mrf.mxu1  ;;  %v1405_v14 = vsel %vm1377_vm0, %v1403_v16, %v1404_v39 }
 0x181   : > { %1540 = vst [vmem:[%s2329_s5 + $0x1a] sm:$0x10] %v1504_v20  ;;  %1541 = vst [vmem:[%s2329_s5 + $0x19] sm:$0x40] %v1504_v20  ;;  %v1491_v34 = vmax.f32 %v1348_v13, %v1461_v0  ;;  %v1354_v22 = vmax.f32 %v1326_v38, 0.0  ;;  %v1325_v2 = vadd.f32 %v2726_v55, %v1290_v41  ;;  %v2065_v17 = vpop.f32.mrf.mxu0  ;;  %v1406_v44 = vrot.slane %v1351_v51, 1 }
 0x182   : > { %v1328_v23 = vadd.f32 %v2726_v55, %v1293_v42  ;;  %v1004_v18 = vadd.f32 %v961_v8, %v702_v54  ;;  %v2142_v40 = vpop.f32.mrf.mxu1  ;;  %v1435_v31 = vmax.f32 %v1349_v60, %v1405_v14 }
 0x183   : > { %v1505_v43 = vmax.f32 %v1434_v26, %v1491_v34  ;;  %v1409_v59 = vrot.slane %v1354_v22, 1  ;;  %v1353_v62 = vmax.f32 %v1325_v2, 0.0  ;;  %v971_v13 = vpop.f32.mrf.mxu0  ;;  %v1407_v6 = vsel %vm1377_vm0, %v1404_v39, %v1406_v44 }
 0x184   : > { %v1463_v57 = vsel %vm1377_vm0, %v1406_v44, %v1462_v61  ;;  %v1356_v27 = vmax.f32 %v1328_v23, 0.0  ;;  %v1292_v11 = vadd.f32 %v1249_v53, %v1004_v18  ;;  %v1259_v58 = vpop.f32.mrf.mxu1  ;;  %v1436_v9 = vmax.f32 %v1350_v3, %v1407_v6 }
 0x185   : > { %1542 = vst [vmem:[%s2329_s5 + $0x20] sm:$0x1] %v1505_v43  ;;  %1543 = vst [vmem:[%s2329_s5 + $0x1f] sm:$0x4] %v1505_v43  ;;  %v1492_v30 = vmax.f32 %v1351_v51, %v1463_v57  ;;  %v1408_v32 = vrot.slane %v1353_v62, 1  ;;  %v1438_v28 = vmax.f32 %v1354_v22, %v1409_v59 }
 0x186   : > { %1544 = vst [vmem:[%s2329_s5 + $0x1e] sm:$0x10] %v1505_v43  ;;  %v1466_v12 = vrot.slane %v1356_v27, 1  ;;  %v1327_v37 = vadd.f32 %v2726_v55, %v1292_v11 }
 0x187   : > { %v1506_v36 = vmax.f32 %v1435_v31, %v1492_v30  ;;  %v1464_v29 = vsel %vm1377_vm0, %v1462_v61, %v1408_v32  ;;  %v1410_v55 = vsel %vm1377_vm0, %v1408_v32, %v1409_v59 }
 0x188   : > { %v1493_v15 = vmax.f32 %v1352_v52, %v1464_v29  ;;  %v1495_v1 = vmax.f32 %v1356_v27, %v1466_v12  ;;  %v1355_v4 = vmax.f32 %v1327_v37, 0.0  ;;  %v1437_v10 = vmax.f32 %v1353_v62, %v1410_v55 }
 0x189   : > { %1545 = vst [vmem:[%s2329_s5 + $0x23] sm:$0x1] %v1506_v36  ;;  %1546 = vst [vmem:[%s2329_s5 + $0x22] sm:$0x4] %v1506_v36 }
 0x18a   : > { %1547 = vst [vmem:[%s2329_s5 + $0x21] sm:$0x10] %v1506_v36  ;;  %1548 = vst [vmem:[%s2329_s5 + $0x20] sm:$0x40] %v1506_v36  ;;  %v1507_v49 = vmax.f32 %v1436_v9, %v1493_v15  ;;  %v1509_v7 = vmax.f32 %v1438_v28, %v1495_v1  ;;  %v1465_v3 = vrot.slane %v1355_v4, 1 }
 0x18c   : > { %1549 = vst [vmem:[%s2329_s5 + $0x27] sm:$0x1] %v1507_v49  ;;  %1550 = vst [vmem:[%s2329_s5 + $0x26] sm:$0x4] %v1507_v49  ;;  %v1467_v19 = vsel %vm1377_vm0, %v1465_v3, %v1466_v12 }
 0x18d   : > { %1551 = vst [vmem:[%s2329_s5 + $0x25] sm:$0x10] %v1507_v49  ;;  %1556 = vst [vmem:[%s2329_s5 + $0x2e] sm:$0x1] %v1509_v7  ;;  %v1494_v50 = vmax.f32 %v1355_v4, %v1467_v19 }
 0x18e   : > { %1557 = vst [vmem:[%s2329_s5 + $0x2d] sm:$0x4] %v1509_v7  ;;  %1558 = vst [vmem:[%s2329_s5 + $0x2c] sm:$0x10] %v1509_v7 }
 0x18f   : > { %v1508_v21 = vmax.f32 %v1437_v10, %v1494_v50 }
 0x191   : > { %1552 = vst [vmem:[%s2329_s5 + $0x2a] sm:$0x1] %v1508_v21  ;;  %1553 = vst [vmem:[%s2329_s5 + $0x29] sm:$0x4] %v1508_v21 }
 0x192   : > { %1554 = vst [vmem:[%s2329_s5 + $0x28] sm:$0x10] %v1508_v21  ;;  %1555 = vst [vmem:[%s2329_s5 + $0x27] sm:$0x40] %v1508_v21 }
 0x193 PF: > { %s15_s12 = sadd.s32 1, %s2243_s12  }
 0x194   : > { %p12_p2 = scmp.ge.s32.totalorder %s15_s12, 4  }
 0x196   :  { %14 = sbr.rel (!%p12_p2) target bundleno = 2 (0x2), region = 74 }
 0x19b   :  { %1581 = vsyncpa [#allocation3], 1 }
 0x19c   :  { %1583 = vsyncpa [#allocation3 + $0x1], 1 }
 0x19d   :  { %1584 = vsyncpa [#allocation5], 1 }

// kernel: cans_forward.5
= control target key start
LH: loop header
LB: loop body
LE: loop exit
PB: predicated region body
PF: predicated region fallthrough
CT: control target
= control target key end

     0   :  { %12 = vsyncpa [#allocation3], 0  ;;  %s2252_s0 = inlined_call_operand.vmem [shape: f32[2,1152], index: 0, kind: input, shape index: {}]   ;;  %s2253_s1 = inlined_call_operand.hbm [shape: f32[1152,512], index: 1, kind: input, shape index: {}]   ;;  %s2254_s2 = inlined_call_operand.hbm [shape: f32[1,512], index: 2, kind: input, shape index: {}]   ;;  %s2255_s3 = inlined_call_operand.hbm [shape: f32[512,128], index: 3, kind: input, shape index: {}]   ;;  %s2256_s4 = inlined_call_operand.hbm [shape: f32[1,128], index: 4, kind: input, shape index: {}]   ;;  %s2257_s5 = inlined_call_operand.hbm [shape: f32[128,128], index: 5, kind: input, shape index: {}]   ;;  %s2258_s6 = inlined_call_operand.hbm [shape: f32[1,128], index: 6, kind: input, shape index: {}]   ;;  %s2259_s7 = inlined_call_operand.hbm [shape: f32[2,128], index: 7, kind: output, shape index: {}]  }
   0x1   :  { %13 = vsyncpa [#allocation6], 0 }
   0x2   :  { %14 = vsyncpa [#allocation9], 0 }
   0x3   :  { %15 = vsyncpa [#allocation12], 0 }
   0x4   :  { %16 = vsyncpa [#allocation4], 0  ;;  %s2087_s24 = smov [#allocation5]   ;;  %s2088_s26 = smov [#allocation8]  }
   0x5   :  { %s37_s25 = sshll.u32 %s2087_s24, 4  ;;  %s59_s27 = sshll.u32 %s2088_s26, 4  ;;  %s38_s25 = int_to_ptr.vmem [resolvable:$true] %s37_s25  ;;  %s60_s27 = int_to_ptr.vmem [resolvable:$true] %s59_s27 }
   0x6   :  { %s1945_s28 = scalar_lea.vmem %s38_s25, 64  ;;  %p1950_p1 = scmp.lt.s32.totalorder %s38_s25, %s38_s25 }
   0x7   :  { %p1946_p0 = scmp.ne.s32.totalorder %s38_s25, %s1945_s28  ;;  %p1951_p2 = scmp.lt.s32.totalorder %s1945_s28, %s1945_s28 }
   0x9   :  { %p1952_p3 = por %p1951_p2, %p1950_p1 }
   0xb   :  { %p1953_p4 = pnand %p1952_p3, %p1946_p0 }
   0xd   :  { %1956 = shalt.err (!%p1953_p4)
}
   0xe   :  { %40 = dma.hbm_to_vmem [thread:$0]  %s2254_s2, 64, %s38_s25, [#allocation6]  }
   0xf   :  { %s1965_s8 = scalar_lea.vmem %s60_s27, 16  ;;  %s1969_s9 = scalar_lea.vmem %s60_s27, 32 }
  0x10   :  { %p1966_p5 = scmp.ne.s32.totalorder %s60_s27, %s1965_s8  ;;  %p1970_p6 = scmp.lt.s32.totalorder %s60_s27, %s60_s27 }
  0x11   :  { %p1971_p7 = scmp.lt.s32.totalorder %s1969_s9, %s1965_s8 }
  0x13   :  { %p1972_p8 = por %p1971_p7, %p1970_p6 }
  0x15   :  { %p1973_p9 = pnand %p1972_p8, %p1966_p5 }
  0x17   :  { %1976 = shalt.err (!%p1973_p9)
}
  0x18   :  { %62 = dma.hbm_to_vmem [thread:$0]  %s2256_s4, 16, %s60_s27, [#allocation9]  }
  0x19   :  { %s2089_s12 = smov [#allocation2]  }
  0x1a   :  { %s24_s13 = sshll.u32 %s2089_s12, 4  ;;  %s25_s13 = int_to_ptr.vmem [resolvable:$true] %s24_s13 }
  0x1b   :  { %s1985_s14 = scalar_lea.vmem %s25_s13, 73728  ;;  %p1990_p11 = scmp.lt.s32.totalorder %s25_s13, %s25_s13 }
  0x1c   :  { %p1986_p10 = scmp.ne.s32.totalorder %s25_s13, %s1985_s14  ;;  %p1991_p12 = scmp.lt.s32.totalorder %s1985_s14, %s1985_s14 }
  0x1e   :  { %p1992_p13 = por %p1991_p12, %p1990_p11 }
  0x20   :  { %p1993_p0 = pnand %p1992_p13, %p1986_p10 }
  0x22   :  { %1996 = shalt.err (!%p1993_p0)
}
  0x23   :  { %s2090_s2 = smov 512   ;;  %s2091_s15 = smov 32  }
  0x24   :  { %30 = dma.hbm_to_vmem [thread:$0]  %s2253_s1, 73728, %s25_s13, [#allocation3], %s2090_s2, %s2090_s2, %s2091_s15  }
  0x25   :  { %s2092_s18 = smov [#allocation7]  }
  0x26   :  { %s46_s19 = sshll.u32 %s2092_s18, 4  ;;  %s47_s19 = int_to_ptr.vmem [resolvable:$true] %s46_s19 }
  0x27   :  { %s2005_s4 = scalar_lea.vmem %s47_s19, 8192  ;;  %p2010_p2 = scmp.lt.s32.totalorder %s47_s19, %s47_s19 }
  0x28   :  { %p2006_p1 = scmp.ne.s32.totalorder %s47_s19, %s2005_s4  ;;  %p2011_p3 = scmp.lt.s32.totalorder %s2005_s4, %s2005_s4 }
  0x2a   :  { %p2012_p4 = por %p2011_p3, %p2010_p2 }
  0x2c   :  { %p2013_p5 = pnand %p2012_p4, %p2006_p1 }
  0x2e   :  { %2016 = shalt.err (!%p2013_p5)
}
  0x2f   :  { %s2093_s20 = smov 128   ;;  %s2094_s21 = smov 8  }
  0x30   :  { %52 = dma.hbm_to_vmem [thread:$0]  %s2255_s3, 8192, %s47_s19, [#allocation6], %s2093_s20, %s2093_s20, %s2094_s21  }
  0x31   :  { %s2095_s24 = smov [#allocation10]   ;;  %s2096_s26 = smov [#allocation11]  }
  0x32   :  { %s68_s25 = sshll.u32 %s2095_s24, 4  ;;  %s81_s1 = sshll.u32 %s2096_s26, 4  ;;  %s69_s25 = int_to_ptr.vmem [resolvable:$true] %s68_s25  ;;  %s82_s1 = int_to_ptr.vmem [resolvable:$true] %s81_s1 }
  0x33   :  { %s2025_s27 = scalar_lea.vmem %s69_s25, 2048  ;;  %p2030_p7 = scmp.lt.s32.totalorder %s69_s25, %s69_s25 }
  0x34   :  { %p2026_p6 = scmp.ne.s32.totalorder %s69_s25, %s2025_s27  ;;  %p2031_p8 = scmp.lt.s32.totalorder %s2025_s27, %s2025_s27 }
  0x36   :  { %p2032_p9 = por %p2031_p8, %p2030_p7 }
  0x38   :  { %p2033_p10 = pnand %p2032_p9, %p2026_p6 }
  0x3a   :  { %2036 = shalt.err (!%p2033_p10)
}
  0x3b   :  { %74 = dma.hbm_to_vmem [thread:$0]  %s2257_s5, 2048, %s69_s25, [#allocation9], %s2093_s20, %s2093_s20, %s2094_s21  }
  0x3c   :  { %s2045_s30 = scalar_lea.vmem %s82_s1, 16  ;;  %s2049_s3 = scalar_lea.vmem %s82_s1, 32 }
  0x3d   :  { %p2046_p11 = scmp.ne.s32.totalorder %s82_s1, %s2045_s30  ;;  %p2050_p12 = scmp.lt.s32.totalorder %s82_s1, %s82_s1 }
  0x3e   :  { %p2051_p13 = scmp.lt.s32.totalorder %s2049_s3, %s2045_s30 }
  0x40   :  { %p2052_p0 = por %p2051_p13, %p2050_p12 }
  0x42   :  { %p2053_p1 = pnand %p2052_p0, %p2046_p11 }
  0x44   :  { %2056 = shalt.err (!%p2053_p1)
}
  0x45   :  { %84 = dma.hbm_to_vmem [thread:$0]  %s2258_s6, 16, %s82_s1, [#allocation12]  }
  0x46   :  { %2077 = dma.done.wait [#allocation3], 73728  }
  0x47   :  { %2078 = vsyncadd [#allocation3], 4294893568 }
  0x48   :  { %2079 = dma.done.wait [#allocation6], 8256  }
  0x49   :  { %2080 = vsyncadd [#allocation6], 4294959040 }
  0x4a   :  { %2081 = dma.done.wait [#allocation9], 2064  }
  0x4b   :  { %2082 = vsyncadd [#allocation9], 4294965232 }
  0x4c   :  { %2083 = dma.done.wait [#allocation12], 16  }
  0x4d   :  { %2084 = vsyncadd [#allocation12], 4294967280  ;;  %v167_v0 = vld [vmem:[#allocation2 + $0x1e8] sm:$0xff]  ;;  %v166_v2 = vld [vmem:[#allocation2 + $0x1e0] sm:$0xff]  ;;  %vm2099_vm0 = vmmov 0  }
  0x4e   :  { %v295_v1 = vld [vmem:[#allocation2 + $0x5e8] sm:$0xff]  ;;  %757 = vmatprep.subr.mxu0 %v167_v0  ;;  %v294_v3 = vld [vmem:[#allocation2 + $0x5e0] sm:$0xff] }
  0x4f   :  { %828 = vmatprep.subr.mxu1 %v295_v1  ;;  %v163_v4 = vld [vmem:[#allocation2 + $0x1c8] sm:$0xff]  ;;  %758 = vmatpush1.msra.mxu0 %v166_v2  ;;  %v162_v6 = vld [vmem:[#allocation2 + $0x1c0] sm:$0xff] }
  0x50   :  { %v291_v5 = vld [vmem:[#allocation2 + $0x5c8] sm:$0xff]  ;;  %829 = vmatpush1.msra.mxu1 %v294_v3  ;;  %v290_v7 = vld [vmem:[#allocation2 + $0x5c0] sm:$0xff]  ;;  %759 = vmatprep.subr.mxu0 %v163_v4 }
  0x51   :  { %v159_v8 = vld [vmem:[#allocation2 + $0x1a8] sm:$0xff]  ;;  %830 = vmatprep.subr.mxu1 %v291_v5  ;;  %v158_v10 = vld [vmem:[#allocation2 + $0x1a0] sm:$0xff]  ;;  %760 = vmatpush1.msra.mxu0 %v162_v6 }
  0x52   :  { %v287_v9 = vld [vmem:[#allocation2 + $0x5a8] sm:$0xff]  ;;  %v286_v11 = vld [vmem:[#allocation2 + $0x5a0] sm:$0xff]  ;;  %831 = vmatpush1.msra.mxu1 %v290_v7  ;;  %761 = vmatprep.subr.mxu0 %v159_v8 }
  0x53   :  { %v155_v12 = vld [vmem:[#allocation2 + $0x188] sm:$0xff]  ;;  %832 = vmatprep.subr.mxu1 %v287_v9  ;;  %v154_v14 = vld [vmem:[#allocation2 + $0x180] sm:$0xff]  ;;  %762 = vmatpush1.msra.mxu0 %v158_v10 }
  0x54   :  { %v283_v13 = vld [vmem:[#allocation2 + $0x588] sm:$0xff]  ;;  %v282_v15 = vld [vmem:[#allocation2 + $0x580] sm:$0xff]  ;;  %833 = vmatpush1.msra.mxu1 %v286_v11  ;;  %763 = vmatprep.subr.mxu0 %v155_v12 }
  0x55   :  { %v151_v16 = vld [vmem:[#allocation2 + $0x168] sm:$0xff]  ;;  %834 = vmatprep.subr.mxu1 %v283_v13  ;;  %v150_v18 = vld [vmem:[#allocation2 + $0x160] sm:$0xff]  ;;  %764 = vmatpush1.msra.mxu0 %v154_v14 }
  0x56   :  { %v279_v17 = vld [vmem:[#allocation2 + $0x568] sm:$0xff]  ;;  %v278_v19 = vld [vmem:[#allocation2 + $0x560] sm:$0xff]  ;;  %835 = vmatpush1.msra.mxu1 %v282_v15  ;;  %765 = vmatprep.subr.mxu0 %v151_v16 }
  0x57   :  { %v147_v20 = vld [vmem:[#allocation2 + $0x148] sm:$0xff]  ;;  %836 = vmatprep.subr.mxu1 %v279_v17  ;;  %v146_v22 = vld [vmem:[#allocation2 + $0x140] sm:$0xff]  ;;  %766 = vmatpush1.msra.mxu0 %v150_v18 }
  0x58   :  { %v275_v21 = vld [vmem:[#allocation2 + $0x548] sm:$0xff]  ;;  %v274_v23 = vld [vmem:[#allocation2 + $0x540] sm:$0xff]  ;;  %837 = vmatpush1.msra.mxu1 %v278_v19  ;;  %767 = vmatprep.subr.mxu0 %v147_v20 }
  0x59   :  { %v143_v24 = vld [vmem:[#allocation2 + $0x128] sm:$0xff]  ;;  %838 = vmatprep.subr.mxu1 %v275_v21  ;;  %v142_v26 = vld [vmem:[#allocation2 + $0x120] sm:$0xff]  ;;  %768 = vmatpush1.msra.mxu0 %v146_v22 }
  0x5a   :  { %v271_v25 = vld [vmem:[#allocation2 + $0x528] sm:$0xff]  ;;  %v270_v27 = vld [vmem:[#allocation2 + $0x520] sm:$0xff]  ;;  %839 = vmatpush1.msra.mxu1 %v274_v23  ;;  %769 = vmatprep.subr.mxu0 %v143_v24 }
  0x5b   :  { %v139_v28 = vld [vmem:[#allocation2 + $0x108] sm:$0xff]  ;;  %840 = vmatprep.subr.mxu1 %v271_v25  ;;  %v138_v30 = vld [vmem:[#allocation2 + $0x100] sm:$0xff]  ;;  %770 = vmatpush1.msra.mxu0 %v142_v26 }
  0x5c   :  { %v267_v29 = vld [vmem:[#allocation2 + $0x508] sm:$0xff]  ;;  %v266_v31 = vld [vmem:[#allocation2 + $0x500] sm:$0xff]  ;;  %841 = vmatpush1.msra.mxu1 %v270_v27  ;;  %771 = vmatprep.subr.mxu0 %v139_v28 }
  0x5d   :  { %v135_v32 = vld [vmem:[#allocation2 + $0xe8] sm:$0xff]  ;;  %842 = vmatprep.subr.mxu1 %v267_v29  ;;  %v134_v34 = vld [vmem:[#allocation2 + $0xe0] sm:$0xff]  ;;  %772 = vmatpush1.msra.mxu0 %v138_v30  ;;  %v684_v30 = vlaneseq }
  0x5e   :  { %v263_v33 = vld [vmem:[#allocation2 + $0x4e8] sm:$0xff]  ;;  %v262_v35 = vld [vmem:[#allocation2 + $0x4e0] sm:$0xff]  ;;  %843 = vmatpush1.msra.mxu1 %v266_v31  ;;  %773 = vmatprep.subr.mxu0 %v135_v32  ;;  %v2097_v31 = vmov 1983009808  }
  0x5f   :  { %v131_v36 = vld [vmem:[#allocation2 + $0xc8] sm:$0xff]  ;;  %844 = vmatprep.subr.mxu1 %v263_v33  ;;  %v130_v38 = vld [vmem:[#allocation2 + $0xc0] sm:$0xff]  ;;  %774 = vmatpush1.msra.mxu0 %v134_v34  ;;  %v709_v32 = vunpack.c.l.s4 %v2097_v31 }
  0x60   :  { %v259_v37 = vld [vmem:[#allocation2 + $0x4c8] sm:$0xff]  ;;  %v258_v39 = vld [vmem:[#allocation2 + $0x4c0] sm:$0xff]  ;;  %845 = vmatpush1.msra.mxu1 %v262_v35  ;;  %775 = vmatprep.subr.mxu0 %v131_v36 }
  0x61   :  { %v127_v40 = vld [vmem:[#allocation2 + $0xa8] sm:$0xff]  ;;  %846 = vmatprep.subr.mxu1 %v259_v37  ;;  %v126_v42 = vld [vmem:[#allocation2 + $0xa0] sm:$0xff]  ;;  %776 = vmatpush1.msra.mxu0 %v130_v38 }
  0x62   :  { %v255_v41 = vld [vmem:[#allocation2 + $0x4a8] sm:$0xff]  ;;  %v254_v43 = vld [vmem:[#allocation2 + $0x4a0] sm:$0xff]  ;;  %847 = vmatpush1.msra.mxu1 %v258_v39  ;;  %777 = vmatprep.subr.mxu0 %v127_v40 }
  0x63   :  { %v123_v44 = vld [vmem:[#allocation2 + $0x88] sm:$0xff]  ;;  %848 = vmatprep.subr.mxu1 %v255_v41  ;;  %v122_v46 = vld [vmem:[#allocation2 + $0x80] sm:$0xff]  ;;  %778 = vmatpush1.msra.mxu0 %v126_v42  ;;  %v2159_v41 = vshrl.u32 %v684_v30, 7  ;;  %v710_v42 = vunpack.c.0.s8 %v709_v32 }
  0x64   :  { %v251_v45 = vld [vmem:[#allocation2 + $0x488] sm:$0xff]  ;;  %v250_v47 = vld [vmem:[#allocation2 + $0x480] sm:$0xff]  ;;  %849 = vmatpush1.msra.mxu1 %v254_v43  ;;  %779 = vmatprep.subr.mxu0 %v123_v44 }
  0x65   :  { %v119_v48 = vld [vmem:[#allocation2 + $0x68] sm:$0xff]  ;;  %850 = vmatprep.subr.mxu1 %v251_v45  ;;  %v118_v50 = vld [vmem:[#allocation2 + $0x60] sm:$0xff]  ;;  %780 = vmatpush1.msra.mxu0 %v122_v46 }
  0x66   :  { %v247_v49 = vld [vmem:[#allocation2 + $0x468] sm:$0xff]  ;;  %v246_v51 = vld [vmem:[#allocation2 + $0x460] sm:$0xff]  ;;  %851 = vmatpush1.msra.mxu1 %v250_v47  ;;  %781 = vmatprep.subr.mxu0 %v119_v48 }
  0x67   :  { %v115_v52 = vld [vmem:[#allocation2 + $0x48] sm:$0xff]  ;;  %852 = vmatprep.subr.mxu1 %v247_v49  ;;  %v114_v54 = vld [vmem:[#allocation2 + $0x40] sm:$0xff]  ;;  %782 = vmatpush1.msra.mxu0 %v118_v50 }
  0x68   :  { %v243_v53 = vld [vmem:[#allocation2 + $0x448] sm:$0xff]  ;;  %v242_v55 = vld [vmem:[#allocation2 + $0x440] sm:$0xff]  ;;  %853 = vmatpush1.msra.mxu1 %v246_v51  ;;  %783 = vmatprep.subr.mxu0 %v115_v52  ;;  %v2165_v52 = vsub.s32 %v710_v42, %v2159_v41 }
  0x69   :  { %v111_v56 = vld [vmem:[#allocation2 + $0x28] sm:$0xff]  ;;  %854 = vmatprep.subr.mxu1 %v243_v53  ;;  %v110_v58 = vld [vmem:[#allocation2 + $0x20] sm:$0xff]  ;;  %784 = vmatpush1.msra.mxu0 %v114_v54 }
  0x6a   :  { %v239_v57 = vld [vmem:[#allocation2 + $0x428] sm:$0xff]  ;;  %v238_v59 = vld [vmem:[#allocation2 + $0x420] sm:$0xff]  ;;  %855 = vmatpush1.msra.mxu1 %v242_v55  ;;  %785 = vmatprep.subr.mxu0 %v111_v56 }
  0x6b   :  { %v107_v60 = vld [vmem:[#allocation2 + $0x8] sm:$0xff]  ;;  %856 = vmatprep.subr.mxu1 %v239_v57  ;;  %v106_v62 = vld [vmem:[#allocation2] sm:$0xff]  ;;  %786 = vmatpush1.msra.mxu0 %v110_v58 }
  0x6c   :  { %v235_v61 = vld [vmem:[#allocation2 + $0x408] sm:$0xff]  ;;  %v234_v63 = vld [vmem:[#allocation2 + $0x400] sm:$0xff]  ;;  %857 = vmatpush1.msra.mxu1 %v238_v59  ;;  %787 = vmatprep.subr.mxu0 %v107_v60 }
  0x6d   :  { %v231_v0 = vld [vmem:[#allocation2 + $0x3e8] sm:$0xff]  ;;  %858 = vmatprep.subr.mxu1 %v235_v61  ;;  %v230_v2 = vld [vmem:[#allocation2 + $0x3e0] sm:$0xff]  ;;  %788 = vmatpush1.msra.mxu0 %v106_v62 }
  0x6e   :  { %v359_v1 = vld [vmem:[#allocation2 + $0x7e8] sm:$0xff]  ;;  %v358_v3 = vld [vmem:[#allocation2 + $0x7e0] sm:$0xff]  ;;  %859 = vmatpush1.msra.mxu1 %v234_v63  ;;  %789 = vmatprep.subr.mxu0 %v231_v0 }
  0x6f   :  { %v227_v4 = vld [vmem:[#allocation2 + $0x3c8] sm:$0xff]  ;;  %860 = vmatprep.subr.mxu1 %v359_v1  ;;  %v226_v6 = vld [vmem:[#allocation2 + $0x3c0] sm:$0xff]  ;;  %790 = vmatpush2.msra.mxu0 %v230_v2 }
  0x70   :  { %v355_v5 = vld [vmem:[#allocation2 + $0x7c8] sm:$0xff]  ;;  %v354_v7 = vld [vmem:[#allocation2 + $0x7c0] sm:$0xff]  ;;  %861 = vmatpush2.msra.mxu1 %v358_v3  ;;  %791 = vmatprep.subr.mxu0 %v227_v4 }
  0x71   :  { %v223_v8 = vld [vmem:[#allocation2 + $0x3a8] sm:$0xff]  ;;  %862 = vmatprep.subr.mxu1 %v355_v5  ;;  %v222_v10 = vld [vmem:[#allocation2 + $0x3a0] sm:$0xff]  ;;  %792 = vmatpush2.msra.mxu0 %v226_v6 }
  0x72   :  { %v351_v9 = vld [vmem:[#allocation2 + $0x7a8] sm:$0xff]  ;;  %v350_v11 = vld [vmem:[#allocation2 + $0x7a0] sm:$0xff]  ;;  %863 = vmatpush2.msra.mxu1 %v354_v7  ;;  %793 = vmatprep.subr.mxu0 %v223_v8 }
  0x73   :  { %v219_v12 = vld [vmem:[#allocation2 + $0x388] sm:$0xff]  ;;  %864 = vmatprep.subr.mxu1 %v351_v9  ;;  %v218_v14 = vld [vmem:[#allocation2 + $0x380] sm:$0xff]  ;;  %794 = vmatpush2.msra.mxu0 %v222_v10 }
  0x74   :  { %v347_v13 = vld [vmem:[#allocation2 + $0x788] sm:$0xff]  ;;  %v346_v15 = vld [vmem:[#allocation2 + $0x780] sm:$0xff]  ;;  %865 = vmatpush2.msra.mxu1 %v350_v11  ;;  %795 = vmatprep.subr.mxu0 %v219_v12 }
  0x75   :  { %v215_v16 = vld [vmem:[#allocation2 + $0x368] sm:$0xff]  ;;  %866 = vmatprep.subr.mxu1 %v347_v13  ;;  %v214_v18 = vld [vmem:[#allocation2 + $0x360] sm:$0xff]  ;;  %796 = vmatpush2.msra.mxu0 %v218_v14 }
  0x76   :  { %v343_v17 = vld [vmem:[#allocation2 + $0x768] sm:$0xff]  ;;  %v342_v19 = vld [vmem:[#allocation2 + $0x760] sm:$0xff]  ;;  %867 = vmatpush2.msra.mxu1 %v346_v15  ;;  %797 = vmatprep.subr.mxu0 %v215_v16 }
  0x77   :  { %v211_v20 = vld [vmem:[#allocation2 + $0x348] sm:$0xff]  ;;  %868 = vmatprep.subr.mxu1 %v343_v17  ;;  %v210_v22 = vld [vmem:[#allocation2 + $0x340] sm:$0xff]  ;;  %798 = vmatpush2.msra.mxu0 %v214_v18 }
  0x78   :  { %v339_v21 = vld [vmem:[#allocation2 + $0x748] sm:$0xff]  ;;  %v338_v23 = vld [vmem:[#allocation2 + $0x740] sm:$0xff]  ;;  %869 = vmatpush2.msra.mxu1 %v342_v19  ;;  %799 = vmatprep.subr.mxu0 %v211_v20 }
  0x79   :  { %v207_v24 = vld [vmem:[#allocation2 + $0x328] sm:$0xff]  ;;  %870 = vmatprep.subr.mxu1 %v339_v21  ;;  %v206_v26 = vld [vmem:[#allocation2 + $0x320] sm:$0xff]  ;;  %800 = vmatpush2.msra.mxu0 %v210_v22 }
  0x7a   :  { %v335_v25 = vld [vmem:[#allocation2 + $0x728] sm:$0xff]  ;;  %v334_v27 = vld [vmem:[#allocation2 + $0x720] sm:$0xff]  ;;  %871 = vmatpush2.msra.mxu1 %v338_v23  ;;  %801 = vmatprep.subr.mxu0 %v207_v24 }
  0x7b   :  { %v203_v28 = vld [vmem:[#allocation2 + $0x308] sm:$0xff]  ;;  %872 = vmatprep.subr.mxu1 %v335_v25  ;;  %v202_v33 = vld [vmem:[#allocation2 + $0x300] sm:$0xff]  ;;  %802 = vmatpush2.msra.mxu0 %v206_v26 }
  0x7c   :  { %v331_v29 = vld [vmem:[#allocation2 + $0x708] sm:$0xff]  ;;  %v330_v34 = vld [vmem:[#allocation2 + $0x700] sm:$0xff]  ;;  %873 = vmatpush2.msra.mxu1 %v334_v27  ;;  %803 = vmatprep.subr.mxu0 %v203_v28 }
  0x7d   :  { %v199_v35 = vld [vmem:[#allocation2 + $0x2e8] sm:$0xff]  ;;  %874 = vmatprep.subr.mxu1 %v331_v29  ;;  %v198_v37 = vld [vmem:[#allocation2 + $0x2e0] sm:$0xff]  ;;  %804 = vmatpush2.msra.mxu0 %v202_v33 }
  0x7e   :  { %v327_v36 = vld [vmem:[#allocation2 + $0x6e8] sm:$0xff]  ;;  %v326_v38 = vld [vmem:[#allocation2 + $0x6e0] sm:$0xff]  ;;  %875 = vmatpush2.msra.mxu1 %v330_v34  ;;  %805 = vmatprep.subr.mxu0 %v199_v35 }
  0x7f   :  { %v195_v39 = vld [vmem:[#allocation2 + $0x2c8] sm:$0xff]  ;;  %876 = vmatprep.subr.mxu1 %v327_v36  ;;  %v194_v43 = vld [vmem:[#allocation2 + $0x2c0] sm:$0xff]  ;;  %806 = vmatpush2.msra.mxu0 %v198_v37 }
  0x80   :  { %v323_v40 = vld [vmem:[#allocation2 + $0x6c8] sm:$0xff]  ;;  %v322_v44 = vld [vmem:[#allocation2 + $0x6c0] sm:$0xff]  ;;  %877 = vmatpush2.msra.mxu1 %v326_v38  ;;  %807 = vmatprep.subr.mxu0 %v195_v39 }
  0x81   :  { %v191_v45 = vld [vmem:[#allocation2 + $0x2a8] sm:$0xff]  ;;  %878 = vmatprep.subr.mxu1 %v323_v40  ;;  %v190_v47 = vld [vmem:[#allocation2 + $0x2a0] sm:$0xff]  ;;  %808 = vmatpush2.msra.mxu0 %v194_v43 }
  0x82   :  { %v319_v46 = vld [vmem:[#allocation2 + $0x6a8] sm:$0xff]  ;;  %v318_v48 = vld [vmem:[#allocation2 + $0x6a0] sm:$0xff]  ;;  %879 = vmatpush2.msra.mxu1 %v322_v44  ;;  %809 = vmatprep.subr.mxu0 %v191_v45 }
  0x83   :  { %v103_v49 = vld [vmem:[%s2252_s0] sm:$0xff]  ;;  %v187_v50 = vld [vmem:[#allocation2 + $0x288] sm:$0xff]  ;;  %880 = vmatprep.subr.mxu1 %v319_v46  ;;  %810 = vmatpush2.msra.mxu0 %v190_v47 }
  0x84   :  { %v315_v51 = vld [vmem:[#allocation2 + $0x688] sm:$0xff]  ;;  %v186_v53 = vld [vmem:[#allocation2 + $0x280] sm:$0xff]  ;;  %881 = vmatpush2.msra.mxu1 %v318_v48  ;;  %v707_v57 = vcombine.high %v103_v49, %v103_v49  ;;  %811 = vmatprep.subr.mxu0 %v187_v50  ;;  %v2168_v62 = vrot.slane %v103_v49, %v2165_v52 }
  0x85   :  { %v314_v54 = vld [vmem:[#allocation2 + $0x680] sm:$0xff]  ;;  %v183_v55 = vld [vmem:[#allocation2 + $0x268] sm:$0xff]  ;;  %882 = vmatprep.subr.mxu1 %v315_v51  ;;  %812 = vmatpush2.msra.mxu0 %v186_v53 }
  0x86   :  { %v311_v56 = vld [vmem:[#allocation2 + $0x668] sm:$0xff]  ;;  %v182_v58 = vld [vmem:[#allocation2 + $0x260] sm:$0xff]  ;;  %883 = vmatpush2.msra.mxu1 %v314_v54  ;;  %813 = vmatprep.subr.mxu0 %v183_v55  ;;  %v2171_v3 = vrot.slane %v707_v57, %v2165_v52  ;;  %v2175_v8 = vcombine.high %v2168_v62, %v2168_v62 }
  0x87   :  { %v310_v59 = vld [vmem:[#allocation2 + $0x660] sm:$0xff]  ;;  %v179_v60 = vld [vmem:[#allocation2 + $0x248] sm:$0xff]  ;;  %884 = vmatprep.subr.mxu1 %v311_v56  ;;  %814 = vmatpush2.msra.mxu0 %v182_v58 }
  0x88   :  { %v307_v61 = vld [vmem:[#allocation2 + $0x648] sm:$0xff]  ;;  %v178_v63 = vld [vmem:[#allocation2 + $0x240] sm:$0xff]  ;;  %885 = vmatpush2.msra.mxu1 %v310_v59  ;;  %815 = vmatprep.subr.mxu0 %v179_v60  ;;  %v2179_v11 = vcombine.high %v2171_v3, %v2171_v3 }
  0x89   :  { %v306_v0 = vld [vmem:[#allocation2 + $0x640] sm:$0xff]  ;;  %v175_v1 = vld [vmem:[#allocation2 + $0x228] sm:$0xff]  ;;  %886 = vmatprep.subr.mxu1 %v307_v61  ;;  %816 = vmatpush2.msra.mxu0 %v178_v63 }
  0x8a   :  { %v303_v2 = vld [vmem:[#allocation2 + $0x628] sm:$0xff]  ;;  %v174_v4 = vld [vmem:[#allocation2 + $0x220] sm:$0xff]  ;;  %887 = vmatpush2.msra.mxu1 %v306_v0  ;;  %817 = vmatprep.subr.mxu0 %v175_v1 }
  0x8b   :  { %v302_v5 = vld [vmem:[#allocation2 + $0x620] sm:$0xff]  ;;  %v171_v6 = vld [vmem:[#allocation2 + $0x208] sm:$0xff]  ;;  %888 = vmatprep.subr.mxu1 %v303_v2  ;;  %818 = vmatpush2.msra.mxu0 %v174_v4 }
  0x8c   :  { %v299_v7 = vld [vmem:[#allocation2 + $0x608] sm:$0xff]  ;;  %v170_v9 = vld [vmem:[#allocation2 + $0x200] sm:$0xff]  ;;  %889 = vmatpush2.msra.mxu1 %v302_v5  ;;  %819 = vmatprep.subr.mxu0 %v171_v6 }
  0x8d   :  { %v298_v10 = vld [vmem:[#allocation2 + $0x600] sm:$0xff]  ;;  %890 = vmatprep.subr.mxu1 %v299_v7  ;;  %v423_v12 = vld [vmem:[#allocation2 + $0x9e8] sm:$0xff]  ;;  %820 = vmatpush2.msra.mxu0 %v170_v9 }
  0x8e   :  { %821 = vmatprep.mubr.f32.mxu0 %v2175_v8  ;;  %v551_v13 = vld [vmem:[#allocation2 + $0xde8] sm:$0xff]  ;;  %891 = vmatpush2.msra.mxu1 %v298_v10  ;;  %v422_v14 = vld [vmem:[#allocation2 + $0x9e0] sm:$0xff] }
  0x8f   :  { %822 = vmatmul.mubr.f32.vlgmr.msra.gmra.mxu0 %v2168_v62  ;;  %v550_v15 = vld [vmem:[#allocation2 + $0xde0] sm:$0xff]  ;;  %892 = vmatprep.mubr.f32.mxu1 %v2179_v11  ;;  %v419_v16 = vld [vmem:[#allocation2 + $0x9c8] sm:$0xff] }
  0x90   :  { %899 = vmatprep.subr.mxu0 %v423_v12  ;;  %v547_v17 = vld [vmem:[#allocation2 + $0xdc8] sm:$0xff]  ;;  %970 = vmatprep.subr.mxu1 %v551_v13  ;;  %v418_v18 = vld [vmem:[#allocation2 + $0x9c0] sm:$0xff] }
  0x91   :  { %893 = vmatmul.mubr.f32.vlgmr.msra.gmra.mxu1 %v2171_v3  ;;  %v546_v19 = vld [vmem:[#allocation2 + $0xdc0] sm:$0xff]  ;;  %900 = vmatpush1.msra.mxu0 %v422_v14  ;;  %v415_v20 = vld [vmem:[#allocation2 + $0x9a8] sm:$0xff] }
  0x92   :  { %971 = vmatpush1.msra.mxu1 %v550_v15  ;;  %v543_v21 = vld [vmem:[#allocation2 + $0xda8] sm:$0xff]  ;;  %901 = vmatprep.subr.mxu0 %v419_v16  ;;  %v414_v22 = vld [vmem:[#allocation2 + $0x9a0] sm:$0xff] }
  0x93   :  { %972 = vmatprep.subr.mxu1 %v547_v17  ;;  %v542_v23 = vld [vmem:[#allocation2 + $0xda0] sm:$0xff]  ;;  %902 = vmatpush1.msra.mxu0 %v418_v18  ;;  %v411_v24 = vld [vmem:[#allocation2 + $0x988] sm:$0xff] }
  0x94   :  { %973 = vmatpush1.msra.mxu1 %v546_v19  ;;  %v539_v25 = vld [vmem:[#allocation2 + $0xd88] sm:$0xff]  ;;  %903 = vmatprep.subr.mxu0 %v415_v20  ;;  %v410_v26 = vld [vmem:[#allocation2 + $0x980] sm:$0xff] }
  0x95   :  { %974 = vmatprep.subr.mxu1 %v543_v21  ;;  %v538_v27 = vld [vmem:[#allocation2 + $0xd80] sm:$0xff]  ;;  %904 = vmatpush1.msra.mxu0 %v414_v22  ;;  %v407_v28 = vld [vmem:[#allocation2 + $0x968] sm:$0xff] }
  0x96   :  { %975 = vmatpush1.msra.mxu1 %v542_v23  ;;  %v535_v29 = vld [vmem:[#allocation2 + $0xd68] sm:$0xff]  ;;  %905 = vmatprep.subr.mxu0 %v411_v24  ;;  %v406_v30 = vld [vmem:[#allocation2 + $0x960] sm:$0xff] }
  0x97   :  { %976 = vmatprep.subr.mxu1 %v539_v25  ;;  %v534_v31 = vld [vmem:[#allocation2 + $0xd60] sm:$0xff]  ;;  %906 = vmatpush1.msra.mxu0 %v410_v26  ;;  %v403_v32 = vld [vmem:[#allocation2 + $0x948] sm:$0xff] }
  0x98   :  { %977 = vmatpush1.msra.mxu1 %v538_v27  ;;  %v531_v33 = vld [vmem:[#allocation2 + $0xd48] sm:$0xff]  ;;  %907 = vmatprep.subr.mxu0 %v407_v28  ;;  %v402_v34 = vld [vmem:[#allocation2 + $0x940] sm:$0xff] }
  0x99   :  { %978 = vmatprep.subr.mxu1 %v535_v29  ;;  %v530_v35 = vld [vmem:[#allocation2 + $0xd40] sm:$0xff]  ;;  %908 = vmatpush1.msra.mxu0 %v406_v30  ;;  %v399_v36 = vld [vmem:[#allocation2 + $0x928] sm:$0xff] }
  0x9a   :  { %979 = vmatpush1.msra.mxu1 %v534_v31  ;;  %v527_v37 = vld [vmem:[#allocation2 + $0xd28] sm:$0xff]  ;;  %909 = vmatprep.subr.mxu0 %v403_v32  ;;  %v398_v38 = vld [vmem:[#allocation2 + $0x920] sm:$0xff] }
  0x9b   :  { %980 = vmatprep.subr.mxu1 %v531_v33  ;;  %v526_v39 = vld [vmem:[#allocation2 + $0xd20] sm:$0xff]  ;;  %910 = vmatpush1.msra.mxu0 %v402_v34  ;;  %v395_v40 = vld [vmem:[#allocation2 + $0x908] sm:$0xff] }
  0x9c   :  { %981 = vmatpush1.msra.mxu1 %v530_v35  ;;  %v523_v42 = vld [vmem:[#allocation2 + $0xd08] sm:$0xff]  ;;  %911 = vmatprep.subr.mxu0 %v399_v36  ;;  %v394_v43 = vld [vmem:[#allocation2 + $0x900] sm:$0xff] }
  0x9d   :  { %982 = vmatprep.subr.mxu1 %v527_v37  ;;  %v522_v44 = vld [vmem:[#allocation2 + $0xd00] sm:$0xff]  ;;  %912 = vmatpush1.msra.mxu0 %v398_v38  ;;  %v391_v45 = vld [vmem:[#allocation2 + $0x8e8] sm:$0xff] }
  0x9e   :  { %983 = vmatpush1.msra.mxu1 %v526_v39  ;;  %v519_v46 = vld [vmem:[#allocation2 + $0xce8] sm:$0xff]  ;;  %913 = vmatprep.subr.mxu0 %v395_v40  ;;  %v390_v47 = vld [vmem:[#allocation2 + $0x8e0] sm:$0xff] }
  0x9f   :  { %984 = vmatprep.subr.mxu1 %v523_v42  ;;  %v518_v48 = vld [vmem:[#allocation2 + $0xce0] sm:$0xff]  ;;  %914 = vmatpush1.msra.mxu0 %v394_v43  ;;  %v387_v49 = vld [vmem:[#allocation2 + $0x8c8] sm:$0xff] }
  0xa0   :  { %985 = vmatpush1.msra.mxu1 %v522_v44  ;;  %v515_v50 = vld [vmem:[#allocation2 + $0xcc8] sm:$0xff]  ;;  %915 = vmatprep.subr.mxu0 %v391_v45  ;;  %v386_v51 = vld [vmem:[#allocation2 + $0x8c0] sm:$0xff] }
  0xa1   :  { %986 = vmatprep.subr.mxu1 %v519_v46  ;;  %v514_v53 = vld [vmem:[#allocation2 + $0xcc0] sm:$0xff]  ;;  %916 = vmatpush1.msra.mxu0 %v390_v47  ;;  %v383_v54 = vld [vmem:[#allocation2 + $0x8a8] sm:$0xff] }
  0xa2   :  { %987 = vmatpush1.msra.mxu1 %v518_v48  ;;  %v511_v55 = vld [vmem:[#allocation2 + $0xca8] sm:$0xff]  ;;  %917 = vmatprep.subr.mxu0 %v387_v49  ;;  %v382_v56 = vld [vmem:[#allocation2 + $0x8a0] sm:$0xff] }
  0xa3   :  { %988 = vmatprep.subr.mxu1 %v515_v50  ;;  %v510_v57 = vld [vmem:[#allocation2 + $0xca0] sm:$0xff]  ;;  %918 = vmatpush1.msra.mxu0 %v386_v51  ;;  %v379_v58 = vld [vmem:[#allocation2 + $0x888] sm:$0xff] }
  0xa4   :  { %989 = vmatpush1.msra.mxu1 %v514_v53  ;;  %v507_v59 = vld [vmem:[#allocation2 + $0xc88] sm:$0xff]  ;;  %919 = vmatprep.subr.mxu0 %v383_v54  ;;  %v378_v60 = vld [vmem:[#allocation2 + $0x880] sm:$0xff] }
  0xa5   :  { %990 = vmatprep.subr.mxu1 %v511_v55  ;;  %v506_v61 = vld [vmem:[#allocation2 + $0xc80] sm:$0xff]  ;;  %920 = vmatpush1.msra.mxu0 %v382_v56  ;;  %v375_v63 = vld [vmem:[#allocation2 + $0x868] sm:$0xff] }
  0xa6   :  { %991 = vmatpush1.msra.mxu1 %v510_v57  ;;  %v503_v0 = vld [vmem:[#allocation2 + $0xc68] sm:$0xff]  ;;  %921 = vmatprep.subr.mxu0 %v379_v58  ;;  %v374_v1 = vld [vmem:[#allocation2 + $0x860] sm:$0xff] }
  0xa7   :  { %992 = vmatprep.subr.mxu1 %v507_v59  ;;  %v502_v2 = vld [vmem:[#allocation2 + $0xc60] sm:$0xff]  ;;  %922 = vmatpush1.msra.mxu0 %v378_v60  ;;  %v371_v4 = vld [vmem:[#allocation2 + $0x848] sm:$0xff] }
  0xa8   :  { %993 = vmatpush1.msra.mxu1 %v506_v61  ;;  %v499_v5 = vld [vmem:[#allocation2 + $0xc48] sm:$0xff]  ;;  %923 = vmatprep.subr.mxu0 %v375_v63  ;;  %v370_v6 = vld [vmem:[#allocation2 + $0x840] sm:$0xff] }
  0xa9   :  { %994 = vmatprep.subr.mxu1 %v503_v0  ;;  %v498_v7 = vld [vmem:[#allocation2 + $0xc40] sm:$0xff]  ;;  %924 = vmatpush1.msra.mxu0 %v374_v1  ;;  %v367_v9 = vld [vmem:[#allocation2 + $0x828] sm:$0xff] }
  0xaa   :  { %995 = vmatpush1.msra.mxu1 %v502_v2  ;;  %v495_v10 = vld [vmem:[#allocation2 + $0xc28] sm:$0xff]  ;;  %925 = vmatprep.subr.mxu0 %v371_v4  ;;  %v366_v12 = vld [vmem:[#allocation2 + $0x820] sm:$0xff] }
  0xab   :  { %996 = vmatprep.subr.mxu1 %v499_v5  ;;  %v494_v13 = vld [vmem:[#allocation2 + $0xc20] sm:$0xff]  ;;  %926 = vmatpush1.msra.mxu0 %v370_v6  ;;  %v363_v14 = vld [vmem:[#allocation2 + $0x808] sm:$0xff] }
  0xac   :  { %997 = vmatpush1.msra.mxu1 %v498_v7  ;;  %v491_v15 = vld [vmem:[#allocation2 + $0xc08] sm:$0xff]  ;;  %927 = vmatprep.subr.mxu0 %v367_v9  ;;  %v362_v16 = vld [vmem:[#allocation2 + $0x800] sm:$0xff] }
  0xad   :  { %998 = vmatprep.subr.mxu1 %v495_v10  ;;  %v490_v17 = vld [vmem:[#allocation2 + $0xc00] sm:$0xff]  ;;  %928 = vmatpush1.msra.mxu0 %v366_v12  ;;  %v487_v18 = vld [vmem:[#allocation2 + $0xbe8] sm:$0xff] }
  0xae   :  { %999 = vmatpush1.msra.mxu1 %v494_v13  ;;  %v615_v19 = vld [vmem:[#allocation2 + $0xfe8] sm:$0xff]  ;;  %929 = vmatprep.subr.mxu0 %v363_v14  ;;  %v486_v20 = vld [vmem:[#allocation2 + $0xbe0] sm:$0xff] }
  0xaf   :  { %1000 = vmatprep.subr.mxu1 %v491_v15  ;;  %v614_v21 = vld [vmem:[#allocation2 + $0xfe0] sm:$0xff]  ;;  %930 = vmatpush1.msra.mxu0 %v362_v16  ;;  %v483_v22 = vld [vmem:[#allocation2 + $0xbc8] sm:$0xff] }
  0xb0   :  { %1001 = vmatpush1.msra.mxu1 %v490_v17  ;;  %v611_v23 = vld [vmem:[#allocation2 + $0xfc8] sm:$0xff]  ;;  %931 = vmatprep.subr.mxu0 %v487_v18  ;;  %v482_v24 = vld [vmem:[#allocation2 + $0xbc0] sm:$0xff] }
  0xb1   :  { %1002 = vmatprep.subr.mxu1 %v615_v19  ;;  %v610_v25 = vld [vmem:[#allocation2 + $0xfc0] sm:$0xff]  ;;  %932 = vmatpush2.msra.mxu0 %v486_v20  ;;  %v479_v26 = vld [vmem:[#allocation2 + $0xba8] sm:$0xff] }
  0xb2   :  { %1003 = vmatpush2.msra.mxu1 %v614_v21  ;;  %v607_v27 = vld [vmem:[#allocation2 + $0xfa8] sm:$0xff]  ;;  %933 = vmatprep.subr.mxu0 %v483_v22  ;;  %v478_v28 = vld [vmem:[#allocation2 + $0xba0] sm:$0xff] }
  0xb3   :  { %1004 = vmatprep.subr.mxu1 %v611_v23  ;;  %v606_v29 = vld [vmem:[#allocation2 + $0xfa0] sm:$0xff]  ;;  %934 = vmatpush2.msra.mxu0 %v482_v24  ;;  %v475_v30 = vld [vmem:[#allocation2 + $0xb88] sm:$0xff] }
  0xb4   :  { %1005 = vmatpush2.msra.mxu1 %v610_v25  ;;  %v603_v31 = vld [vmem:[#allocation2 + $0xf88] sm:$0xff]  ;;  %935 = vmatprep.subr.mxu0 %v479_v26  ;;  %v474_v32 = vld [vmem:[#allocation2 + $0xb80] sm:$0xff] }
  0xb5   :  { %1006 = vmatprep.subr.mxu1 %v607_v27  ;;  %v602_v33 = vld [vmem:[#allocation2 + $0xf80] sm:$0xff]  ;;  %936 = vmatpush2.msra.mxu0 %v478_v28  ;;  %v471_v34 = vld [vmem:[#allocation2 + $0xb68] sm:$0xff] }
  0xb6   :  { %1007 = vmatpush2.msra.mxu1 %v606_v29  ;;  %v599_v35 = vld [vmem:[#allocation2 + $0xf68] sm:$0xff]  ;;  %937 = vmatprep.subr.mxu0 %v475_v30  ;;  %v470_v36 = vld [vmem:[#allocation2 + $0xb60] sm:$0xff]  ;;  %v169_v30 = vld [vmem:[#allocation2 + $0x1f8] sm:$0xff] }
  0xb7   :  { %1008 = vmatprep.subr.mxu1 %v603_v31  ;;  %v598_v37 = vld [vmem:[#allocation2 + $0xf60] sm:$0xff]  ;;  %938 = vmatpush2.msra.mxu0 %v474_v32  ;;  %v467_v38 = vld [vmem:[#allocation2 + $0xb48] sm:$0xff]  ;;  %v168_v32 = vld [vmem:[#allocation2 + $0x1f0] sm:$0xff] }
  0xb8   :  { %1009 = vmatpush2.msra.mxu1 %v602_v33  ;;  %v595_v39 = vld [vmem:[#allocation2 + $0xf48] sm:$0xff]  ;;  %939 = vmatprep.subr.mxu0 %v471_v34  ;;  %v466_v40 = vld [vmem:[#allocation2 + $0xb40] sm:$0xff]  ;;  %v165_v34 = vld [vmem:[#allocation2 + $0x1d8] sm:$0xff] }
  0xb9   :  { %1010 = vmatprep.subr.mxu1 %v599_v35  ;;  %v594_v42 = vld [vmem:[#allocation2 + $0xf40] sm:$0xff]  ;;  %940 = vmatpush2.msra.mxu0 %v470_v36  ;;  %v463_v43 = vld [vmem:[#allocation2 + $0xb28] sm:$0xff]  ;;  %v164_v36 = vld [vmem:[#allocation2 + $0x1d0] sm:$0xff] }
  0xba   :  { %1011 = vmatpush2.msra.mxu1 %v598_v37  ;;  %v591_v44 = vld [vmem:[#allocation2 + $0xf28] sm:$0xff]  ;;  %941 = vmatprep.subr.mxu0 %v467_v38  ;;  %v462_v45 = vld [vmem:[#allocation2 + $0xb20] sm:$0xff]  ;;  %v161_v38 = vld [vmem:[#allocation2 + $0x1b8] sm:$0xff] }
  0xbb   :  { %1012 = vmatprep.subr.mxu1 %v595_v39  ;;  %v590_v46 = vld [vmem:[#allocation2 + $0xf20] sm:$0xff]  ;;  %942 = vmatpush2.msra.mxu0 %v466_v40  ;;  %v459_v47 = vld [vmem:[#allocation2 + $0xb08] sm:$0xff]  ;;  %v160_v40 = vld [vmem:[#allocation2 + $0x1b0] sm:$0xff] }
  0xbc   :  { %1013 = vmatpush2.msra.mxu1 %v594_v42  ;;  %v587_v48 = vld [vmem:[#allocation2 + $0xf08] sm:$0xff]  ;;  %943 = vmatprep.subr.mxu0 %v463_v43  ;;  %v458_v49 = vld [vmem:[#allocation2 + $0xb00] sm:$0xff]  ;;  %v157_v43 = vld [vmem:[#allocation2 + $0x198] sm:$0xff] }
  0xbd   :  { %1014 = vmatprep.subr.mxu1 %v591_v44  ;;  %v586_v50 = vld [vmem:[#allocation2 + $0xf00] sm:$0xff]  ;;  %944 = vmatpush2.msra.mxu0 %v462_v45  ;;  %v455_v51 = vld [vmem:[#allocation2 + $0xae8] sm:$0xff]  ;;  %v156_v45 = vld [vmem:[#allocation2 + $0x190] sm:$0xff] }
  0xbe   :  { %1015 = vmatpush2.msra.mxu1 %v590_v46  ;;  %v583_v53 = vld [vmem:[#allocation2 + $0xee8] sm:$0xff]  ;;  %945 = vmatprep.subr.mxu0 %v459_v47  ;;  %v454_v54 = vld [vmem:[#allocation2 + $0xae0] sm:$0xff]  ;;  %v153_v47 = vld [vmem:[#allocation2 + $0x178] sm:$0xff] }
  0xbf   :  { %1016 = vmatprep.subr.mxu1 %v587_v48  ;;  %v582_v55 = vld [vmem:[#allocation2 + $0xee0] sm:$0xff]  ;;  %946 = vmatpush2.msra.mxu0 %v458_v49  ;;  %v451_v56 = vld [vmem:[#allocation2 + $0xac8] sm:$0xff]  ;;  %v152_v49 = vld [vmem:[#allocation2 + $0x170] sm:$0xff] }
  0xc0   :  { %1017 = vmatpush2.msra.mxu1 %v586_v50  ;;  %v579_v57 = vld [vmem:[#allocation2 + $0xec8] sm:$0xff]  ;;  %947 = vmatprep.subr.mxu0 %v455_v51  ;;  %v450_v58 = vld [vmem:[#allocation2 + $0xac0] sm:$0xff]  ;;  %v149_v51 = vld [vmem:[#allocation2 + $0x158] sm:$0xff] }
  0xc1   :  { %1018 = vmatprep.subr.mxu1 %v583_v53  ;;  %v578_v59 = vld [vmem:[#allocation2 + $0xec0] sm:$0xff]  ;;  %948 = vmatpush2.msra.mxu0 %v454_v54  ;;  %v447_v60 = vld [vmem:[#allocation2 + $0xaa8] sm:$0xff]  ;;  %v148_v54 = vld [vmem:[#allocation2 + $0x150] sm:$0xff] }
  0xc2   :  { %1019 = vmatpush2.msra.mxu1 %v582_v55  ;;  %v575_v61 = vld [vmem:[#allocation2 + $0xea8] sm:$0xff]  ;;  %949 = vmatprep.subr.mxu0 %v451_v56  ;;  %v446_v63 = vld [vmem:[#allocation2 + $0xaa0] sm:$0xff]  ;;  %v145_v56 = vld [vmem:[#allocation2 + $0x138] sm:$0xff] }
  0xc3   :  { %1020 = vmatprep.subr.mxu1 %v579_v57  ;;  %v574_v0 = vld [vmem:[#allocation2 + $0xea0] sm:$0xff]  ;;  %v104_v1 = vld [vmem:[%s2252_s0 + $0x8] sm:$0xff]  ;;  %950 = vmatpush2.msra.mxu0 %v450_v58  ;;  %v144_v58 = vld [vmem:[#allocation2 + $0x130] sm:$0xff] }
  0xc4   :  { %1021 = vmatpush2.msra.mxu1 %v578_v59  ;;  %v443_v2 = vld [vmem:[#allocation2 + $0xa88] sm:$0xff]  ;;  %951 = vmatprep.subr.mxu0 %v447_v60  ;;  %v442_v5 = vld [vmem:[#allocation2 + $0xa80] sm:$0xff]  ;;  %v724_v10 = vcombine.high %v104_v1, %v104_v1  ;;  %v2189_v16 = vrot.slane %v104_v1, %v2165_v52  ;;  %v141_v60 = vld [vmem:[#allocation2 + $0x118] sm:$0xff] }
  0xc5   :  { %v571_v4 = vld [vmem:[#allocation2 + $0xe88] sm:$0xff]  ;;  %1022 = vmatprep.subr.mxu1 %v575_v61  ;;  %v570_v6 = vld [vmem:[#allocation2 + $0xe80] sm:$0xff]  ;;  %952 = vmatpush2.msra.mxu0 %v446_v63  ;;  %v140_v63 = vld [vmem:[#allocation2 + $0x110] sm:$0xff] }
  0xc6   :  { %1023 = vmatpush2.msra.mxu1 %v574_v0  ;;  %v439_v7 = vld [vmem:[#allocation2 + $0xa68] sm:$0xff]  ;;  %953 = vmatprep.subr.mxu0 %v443_v2  ;;  %v438_v12 = vld [vmem:[#allocation2 + $0xa60] sm:$0xff]  ;;  %v2192_v21 = vrot.slane %v724_v10, %v2165_v52  ;;  %v2196_v26 = vcombine.high %v2189_v16, %v2189_v16  ;;  %v137_v1 = vld [vmem:[#allocation2 + $0xf8] sm:$0xff] }
  0xc7   :  { %v567_v9 = vld [vmem:[#allocation2 + $0xe68] sm:$0xff]  ;;  %1024 = vmatprep.subr.mxu1 %v571_v4  ;;  %v566_v13 = vld [vmem:[#allocation2 + $0xe60] sm:$0xff]  ;;  %954 = vmatpush2.msra.mxu0 %v442_v5  ;;  %v136_v4 = vld [vmem:[#allocation2 + $0xf0] sm:$0xff] }
  0xc8   :  { %1025 = vmatpush2.msra.mxu1 %v570_v6  ;;  %v435_v14 = vld [vmem:[#allocation2 + $0xa48] sm:$0xff]  ;;  %955 = vmatprep.subr.mxu0 %v439_v7  ;;  %v434_v17 = vld [vmem:[#allocation2 + $0xa40] sm:$0xff]  ;;  %v2200_v52 = vcombine.high %v2192_v21, %v2192_v21  ;;  %v133_v6 = vld [vmem:[#allocation2 + $0xd8] sm:$0xff] }
  0xc9   :  { %v563_v15 = vld [vmem:[#allocation2 + $0xe48] sm:$0xff]  ;;  %1026 = vmatprep.subr.mxu1 %v567_v9  ;;  %v562_v18 = vld [vmem:[#allocation2 + $0xe40] sm:$0xff]  ;;  %956 = vmatpush2.msra.mxu0 %v438_v12  ;;  %v132_v9 = vld [vmem:[#allocation2 + $0xd0] sm:$0xff] }
  0xca   :  { %1027 = vmatpush2.msra.mxu1 %v566_v13  ;;  %v431_v19 = vld [vmem:[#allocation2 + $0xa28] sm:$0xff]  ;;  %957 = vmatprep.subr.mxu0 %v435_v14  ;;  %v430_v22 = vld [vmem:[#allocation2 + $0xa20] sm:$0xff]  ;;  %v129_v12 = vld [vmem:[#allocation2 + $0xb8] sm:$0xff] }
  0xcb   :  { %v559_v20 = vld [vmem:[#allocation2 + $0xe28] sm:$0xff]  ;;  %1028 = vmatprep.subr.mxu1 %v563_v15  ;;  %v558_v23 = vld [vmem:[#allocation2 + $0xe20] sm:$0xff]  ;;  %958 = vmatpush2.msra.mxu0 %v434_v17  ;;  %v128_v14 = vld [vmem:[#allocation2 + $0xb0] sm:$0xff] }
  0xcc   :  { %1029 = vmatpush2.msra.mxu1 %v562_v18  ;;  %v427_v24 = vld [vmem:[#allocation2 + $0xa08] sm:$0xff]  ;;  %959 = vmatprep.subr.mxu0 %v431_v19  ;;  %v426_v27 = vld [vmem:[#allocation2 + $0xa00] sm:$0xff]  ;;  %v125_v17 = vld [vmem:[#allocation2 + $0x98] sm:$0xff] }
  0xcd   :  { %v555_v25 = vld [vmem:[#allocation2 + $0xe08] sm:$0xff]  ;;  %1030 = vmatprep.subr.mxu1 %v559_v20  ;;  %960 = vmatpush2.msra.mxu0 %v430_v22  ;;  %v554_v28 = vld [vmem:[#allocation2 + $0xe00] sm:$0xff]  ;;  %v124_v19 = vld [vmem:[#allocation2 + $0x90] sm:$0xff] }
  0xce   :  { %1031 = vmatpush2.msra.mxu1 %v558_v23  ;;  %961 = vmatprep.subr.mxu0 %v427_v24  ;;  %v679_v29 = vld [vmem:[#allocation2 + $0x11e8] sm:$0xff]  ;;  %v678_v31 = vld [vmem:[#allocation2 + $0x11e0] sm:$0xff]  ;;  %v121_v22 = vld [vmem:[#allocation2 + $0x78] sm:$0xff] }
  0xcf   :  { %1032 = vmatprep.subr.mxu1 %v555_v25  ;;  %962 = vmatpush2.msra.mxu0 %v426_v27  ;;  %v675_v33 = vld [vmem:[#allocation2 + $0x11c8] sm:$0xff]  ;;  %v674_v35 = vld [vmem:[#allocation2 + $0x11c0] sm:$0xff]  ;;  %v120_v24 = vld [vmem:[#allocation2 + $0x70] sm:$0xff] }
  0xd0   :  { %963 = vmatprep.mubr.f32.mxu0 %v2196_v26  ;;  %1033 = vmatpush2.msra.mxu1 %v554_v28  ;;  %v671_v37 = vld [vmem:[#allocation2 + $0x11a8] sm:$0xff]  ;;  %v670_v39 = vld [vmem:[#allocation2 + $0x11a0] sm:$0xff]  ;;  %v117_v27 = vld [vmem:[#allocation2 + $0x58] sm:$0xff] }
  0xd1   :  { %964 = vmatmul.mubr.f32.vlgmr.msra.gmra.mxu0 %v2189_v16  ;;  %1034 = vmatprep.mubr.f32.mxu1 %v2200_v52  ;;  %v667_v42 = vld [vmem:[#allocation2 + $0x1188] sm:$0xff]  ;;  %v666_v44 = vld [vmem:[#allocation2 + $0x1180] sm:$0xff] }
  0xd2   :  { %1041 = vmatprep.subr.mxu0 %v679_v29  ;;  %1112 = vmatprep.subr.mxu1 %v169_v30  ;;  %v663_v46 = vld [vmem:[#allocation2 + $0x1168] sm:$0xff]  ;;  %v662_v48 = vld [vmem:[#allocation2 + $0x1160] sm:$0xff]  ;;  %v116_v29 = vld [vmem:[#allocation2 + $0x50] sm:$0xff] }
  0xd3   :  { %1035 = vmatmul.mubr.f32.vlgmr.msra.gmra.mxu1 %v2192_v21  ;;  %1042 = vmatpush1.msra.mxu0 %v678_v31  ;;  %v659_v50 = vld [vmem:[#allocation2 + $0x1148] sm:$0xff]  ;;  %v658_v53 = vld [vmem:[#allocation2 + $0x1140] sm:$0xff]  ;;  %v113_v31 = vld [vmem:[#allocation2 + $0x38] sm:$0xff] }
  0xd4   :  { %1113 = vmatpush1.msra.mxu1 %v168_v32  ;;  %1043 = vmatprep.subr.mxu0 %v675_v33  ;;  %v655_v55 = vld [vmem:[#allocation2 + $0x1128] sm:$0xff]  ;;  %v654_v57 = vld [vmem:[#allocation2 + $0x1120] sm:$0xff]  ;;  %v112_v33 = vld [vmem:[#allocation2 + $0x30] sm:$0xff] }
  0xd5   :  { %1114 = vmatprep.subr.mxu1 %v165_v34  ;;  %1044 = vmatpush1.msra.mxu0 %v674_v35  ;;  %v651_v59 = vld [vmem:[#allocation2 + $0x1108] sm:$0xff]  ;;  %v650_v61 = vld [vmem:[#allocation2 + $0x1100] sm:$0xff]  ;;  %v109_v35 = vld [vmem:[#allocation2 + $0x18] sm:$0xff] }
  0xd6   :  { %1115 = vmatpush1.msra.mxu1 %v164_v36  ;;  %1045 = vmatprep.subr.mxu0 %v671_v37  ;;  %v647_v0 = vld [vmem:[#allocation2 + $0x10e8] sm:$0xff]  ;;  %v646_v2 = vld [vmem:[#allocation2 + $0x10e0] sm:$0xff]  ;;  %v108_v37 = vld [vmem:[#allocation2 + $0x10] sm:$0xff] }
  0xd7   :  { %1116 = vmatprep.subr.mxu1 %v161_v38  ;;  %1046 = vmatpush1.msra.mxu0 %v670_v39  ;;  %v643_v5 = vld [vmem:[#allocation2 + $0x10c8] sm:$0xff]  ;;  %v642_v7 = vld [vmem:[#allocation2 + $0x10c0] sm:$0xff]  ;;  %v1795_v38 = vld.sshfl [vmem:[%s2252_s0 + $0x10] sm:$0x3 pattern:$0x76325410] }
  0xd8   :  { %1117 = vmatpush1.msra.mxu1 %v160_v40  ;;  %1047 = vmatprep.subr.mxu0 %v667_v42  ;;  %v639_v10 = vld [vmem:[#allocation2 + $0x10a8] sm:$0xff]  ;;  %v638_v13 = vld [vmem:[#allocation2 + $0x10a0] sm:$0xff]  ;;  %v233_v39 = vld [vmem:[#allocation2 + $0x3f8] sm:$0xff]  ;;  %v2098_v42 = vmov 0.0  }
  0xd9   :  { %1118 = vmatprep.subr.mxu1 %v157_v43  ;;  %1048 = vmatpush1.msra.mxu0 %v666_v44  ;;  %v635_v15 = vld [vmem:[#allocation2 + $0x1088] sm:$0xff]  ;;  %v634_v18 = vld [vmem:[#allocation2 + $0x1080] sm:$0xff]  ;;  %v297_v40 = vld [vmem:[#allocation2 + $0x5f8] sm:$0xff] }
  0xda   :  { %1119 = vmatpush1.msra.mxu1 %v156_v45  ;;  %1049 = vmatprep.subr.mxu0 %v663_v46  ;;  %v631_v20 = vld [vmem:[#allocation2 + $0x1068] sm:$0xff]  ;;  %v630_v23 = vld [vmem:[#allocation2 + $0x1060] sm:$0xff]  ;;  %v232_v43 = vld [vmem:[#allocation2 + $0x3f0] sm:$0xff] }
  0xdb   :  { %1120 = vmatprep.subr.mxu1 %v153_v47  ;;  %1050 = vmatpush1.msra.mxu0 %v662_v48  ;;  %v627_v25 = vld [vmem:[#allocation2 + $0x1048] sm:$0xff]  ;;  %v626_v28 = vld [vmem:[#allocation2 + $0x1040] sm:$0xff]  ;;  %v296_v44 = vld [vmem:[#allocation2 + $0x5f0] sm:$0xff] }
  0xdc   :  { %1121 = vmatpush1.msra.mxu1 %v152_v49  ;;  %1051 = vmatprep.subr.mxu0 %v659_v50  ;;  %v623_v30 = vld [vmem:[#allocation2 + $0x1028] sm:$0xff]  ;;  %v622_v32 = vld [vmem:[#allocation2 + $0x1020] sm:$0xff]  ;;  %v229_v45 = vld [vmem:[#allocation2 + $0x3d8] sm:$0xff] }
  0xdd   :  { %1122 = vmatprep.subr.mxu1 %v149_v51  ;;  %1052 = vmatpush1.msra.mxu0 %v658_v53  ;;  %v619_v34 = vld [vmem:[#allocation2 + $0x1008] sm:$0xff]  ;;  %v618_v36 = vld [vmem:[#allocation2 + $0x1000] sm:$0xff]  ;;  %v293_v46 = vld [vmem:[#allocation2 + $0x5d8] sm:$0xff] }
  0xde   :  { %1123 = vmatpush1.msra.mxu1 %v148_v54  ;;  %1053 = vmatprep.subr.mxu0 %v655_v55  ;;  %v228_v47 = vld [vmem:[#allocation2 + $0x3d0] sm:$0xff]  ;;  %v225_v49 = vld [vmem:[#allocation2 + $0x3b8] sm:$0xff] }
  0xdf   :  { %1124 = vmatprep.subr.mxu1 %v145_v56  ;;  %1054 = vmatpush1.msra.mxu0 %v654_v57  ;;  %v292_v48 = vld [vmem:[#allocation2 + $0x5d0] sm:$0xff]  ;;  %v289_v50 = vld [vmem:[#allocation2 + $0x5b8] sm:$0xff] }
  0xe0   :  { %1125 = vmatpush1.msra.mxu1 %v144_v58  ;;  %1055 = vmatprep.subr.mxu0 %v651_v59  ;;  %v224_v51 = vld [vmem:[#allocation2 + $0x3b0] sm:$0xff]  ;;  %v221_v54 = vld [vmem:[#allocation2 + $0x398] sm:$0xff] }
  0xe1   :  { %1126 = vmatprep.subr.mxu1 %v141_v60  ;;  %1056 = vmatpush1.msra.mxu0 %v650_v61  ;;  %v288_v53 = vld [vmem:[#allocation2 + $0x5b0] sm:$0xff]  ;;  %v285_v55 = vld [vmem:[#allocation2 + $0x598] sm:$0xff] }
  0xe2   :  { %1127 = vmatpush1.msra.mxu1 %v140_v63  ;;  %1057 = vmatprep.subr.mxu0 %v647_v0  ;;  %v220_v56 = vld [vmem:[#allocation2 + $0x390] sm:$0xff]  ;;  %v217_v58 = vld [vmem:[#allocation2 + $0x378] sm:$0xff] }
  0xe3   :  { %1128 = vmatprep.subr.mxu1 %v137_v1  ;;  %1058 = vmatpush1.msra.mxu0 %v646_v2  ;;  %v284_v57 = vld [vmem:[#allocation2 + $0x590] sm:$0xff]  ;;  %v281_v59 = vld [vmem:[#allocation2 + $0x578] sm:$0xff] }
  0xe4   :  { %1129 = vmatpush1.msra.mxu1 %v136_v4  ;;  %1059 = vmatprep.subr.mxu0 %v643_v5  ;;  %v216_v60 = vld [vmem:[#allocation2 + $0x370] sm:$0xff]  ;;  %v213_v63 = vld [vmem:[#allocation2 + $0x358] sm:$0xff] }
  0xe5   :  { %1130 = vmatprep.subr.mxu1 %v133_v6  ;;  %1060 = vmatpush1.msra.mxu0 %v642_v7  ;;  %v280_v61 = vld [vmem:[#allocation2 + $0x570] sm:$0xff]  ;;  %v277_v0 = vld [vmem:[#allocation2 + $0x558] sm:$0xff] }
  0xe6   :  { %1131 = vmatpush1.msra.mxu1 %v132_v9  ;;  %1061 = vmatprep.subr.mxu0 %v639_v10  ;;  %v212_v1 = vld [vmem:[#allocation2 + $0x350] sm:$0xff]  ;;  %v209_v4 = vld [vmem:[#allocation2 + $0x338] sm:$0xff] }
  0xe7   :  { %1132 = vmatprep.subr.mxu1 %v129_v12  ;;  %1062 = vmatpush1.msra.mxu0 %v638_v13  ;;  %v276_v2 = vld [vmem:[#allocation2 + $0x550] sm:$0xff]  ;;  %v273_v5 = vld [vmem:[#allocation2 + $0x538] sm:$0xff] }
  0xe8   :  { %1133 = vmatpush1.msra.mxu1 %v128_v14  ;;  %1063 = vmatprep.subr.mxu0 %v635_v15  ;;  %v208_v6 = vld [vmem:[#allocation2 + $0x330] sm:$0xff]  ;;  %v205_v9 = vld [vmem:[#allocation2 + $0x318] sm:$0xff] }
  0xe9   :  { %1134 = vmatprep.subr.mxu1 %v125_v17  ;;  %1064 = vmatpush1.msra.mxu0 %v634_v18  ;;  %v272_v7 = vld [vmem:[#allocation2 + $0x530] sm:$0xff]  ;;  %v269_v10 = vld [vmem:[#allocation2 + $0x518] sm:$0xff] }
  0xea   :  { %1135 = vmatpush1.msra.mxu1 %v124_v19  ;;  %1065 = vmatprep.subr.mxu0 %v631_v20  ;;  %v204_v12 = vld [vmem:[#allocation2 + $0x310] sm:$0xff]  ;;  %v201_v14 = vld [vmem:[#allocation2 + $0x2f8] sm:$0xff] }
  0xeb   :  { %1136 = vmatprep.subr.mxu1 %v121_v22  ;;  %1066 = vmatpush1.msra.mxu0 %v630_v23  ;;  %v268_v13 = vld [vmem:[#allocation2 + $0x510] sm:$0xff]  ;;  %v265_v15 = vld [vmem:[#allocation2 + $0x4f8] sm:$0xff] }
  0xec   :  { %1137 = vmatpush1.msra.mxu1 %v120_v24  ;;  %1067 = vmatprep.subr.mxu0 %v627_v25  ;;  %v200_v17 = vld [vmem:[#allocation2 + $0x2f0] sm:$0xff]  ;;  %v197_v19 = vld [vmem:[#allocation2 + $0x2d8] sm:$0xff] }
  0xed   :  { %1138 = vmatprep.subr.mxu1 %v117_v27  ;;  %1068 = vmatpush1.msra.mxu0 %v626_v28  ;;  %v264_v18 = vld [vmem:[#allocation2 + $0x4f0] sm:$0xff]  ;;  %v261_v20 = vld [vmem:[#allocation2 + $0x4d8] sm:$0xff] }
  0xee   :  { %1139 = vmatpush1.msra.mxu1 %v116_v29  ;;  %1069 = vmatprep.subr.mxu0 %v623_v30  ;;  %v196_v22 = vld [vmem:[#allocation2 + $0x2d0] sm:$0xff]  ;;  %v193_v24 = vld [vmem:[#allocation2 + $0x2b8] sm:$0xff] }
  0xef   :  { %1140 = vmatprep.subr.mxu1 %v113_v31  ;;  %1070 = vmatpush1.msra.mxu0 %v622_v32  ;;  %v260_v23 = vld [vmem:[#allocation2 + $0x4d0] sm:$0xff]  ;;  %v257_v25 = vld [vmem:[#allocation2 + $0x4b8] sm:$0xff] }
  0xf0   :  { %1141 = vmatpush1.msra.mxu1 %v112_v33  ;;  %1071 = vmatprep.subr.mxu0 %v619_v34  ;;  %v192_v27 = vld [vmem:[#allocation2 + $0x2b0] sm:$0xff]  ;;  %v189_v29 = vld [vmem:[#allocation2 + $0x298] sm:$0xff] }
  0xf1   :  { %1142 = vmatprep.subr.mxu1 %v109_v35  ;;  %1072 = vmatpush1.msra.mxu0 %v618_v36  ;;  %v256_v28 = vld [vmem:[#allocation2 + $0x4b0] sm:$0xff]  ;;  %v253_v30 = vld [vmem:[#allocation2 + $0x498] sm:$0xff] }
  0xf2   :  { %1105 = vmatprep.mubr.f32.mxu0 %v2098_v42  ;;  %1143 = vmatpush1.msra.mxu1 %v108_v37  ;;  %v188_v31 = vld [vmem:[#allocation2 + $0x290] sm:$0xff]  ;;  %v185_v33 = vld [vmem:[#allocation2 + $0x278] sm:$0xff] }
  0xf3   :  { %1106 = vmatmul.mubr.f32.vlgmr.msra.gmra.mxu0 %v1795_v38  ;;  %1144 = vmatprep.subr.mxu1 %v233_v39  ;;  %v252_v32 = vld [vmem:[#allocation2 + $0x490] sm:$0xff]  ;;  %v249_v34 = vld [vmem:[#allocation2 + $0x478] sm:$0xff] }
  0xf4   :  { %1183 = vmatprep.subr.mxu0 %v297_v40  ;;  %1145 = vmatpush2.msra.mxu1 %v232_v43  ;;  %v184_v35 = vld [vmem:[#allocation2 + $0x270] sm:$0xff]  ;;  %v181_v37 = vld [vmem:[#allocation2 + $0x258] sm:$0xff] }
  0xf5   :  { %1184 = vmatpush1.msra.mxu0 %v296_v44  ;;  %1146 = vmatprep.subr.mxu1 %v229_v45  ;;  %v248_v36 = vld [vmem:[#allocation2 + $0x470] sm:$0xff]  ;;  %v245_v38 = vld [vmem:[#allocation2 + $0x458] sm:$0xff] }
  0xf6   :  { %1185 = vmatprep.subr.mxu0 %v293_v46  ;;  %1147 = vmatpush2.msra.mxu1 %v228_v47  ;;  %v180_v39 = vld [vmem:[#allocation2 + $0x250] sm:$0xff]  ;;  %v177_v43 = vld [vmem:[#allocation2 + $0x238] sm:$0xff] }
  0xf7   :  { %1186 = vmatpush1.msra.mxu0 %v292_v48  ;;  %1148 = vmatprep.subr.mxu1 %v225_v49  ;;  %v244_v40 = vld [vmem:[#allocation2 + $0x450] sm:$0xff]  ;;  %v241_v44 = vld [vmem:[#allocation2 + $0x438] sm:$0xff] }
  0xf8   :  { %1187 = vmatprep.subr.mxu0 %v289_v50  ;;  %1149 = vmatpush2.msra.mxu1 %v224_v51  ;;  %v176_v45 = vld [vmem:[#allocation2 + $0x230] sm:$0xff]  ;;  %v173_v47 = vld [vmem:[#allocation2 + $0x218] sm:$0xff] }
  0xf9   :  { %1188 = vmatpush1.msra.mxu0 %v288_v53  ;;  %1150 = vmatprep.subr.mxu1 %v221_v54  ;;  %v240_v46 = vld [vmem:[#allocation2 + $0x430] sm:$0xff]  ;;  %v237_v48 = vld [vmem:[#allocation2 + $0x418] sm:$0xff] }
  0xfa   :  { %1189 = vmatprep.subr.mxu0 %v285_v55  ;;  %1151 = vmatpush2.msra.mxu1 %v220_v56  ;;  %v172_v49 = vld [vmem:[#allocation2 + $0x210] sm:$0xff]  ;;  %v361_v51 = vld [vmem:[#allocation2 + $0x7f8] sm:$0xff] }
  0xfb   :  { %1190 = vmatpush1.msra.mxu0 %v284_v57  ;;  %1152 = vmatprep.subr.mxu1 %v217_v58  ;;  %v236_v50 = vld [vmem:[#allocation2 + $0x410] sm:$0xff]  ;;  %v425_v53 = vld [vmem:[#allocation2 + $0x9f8] sm:$0xff] }
  0xfc   :  { %1191 = vmatprep.subr.mxu0 %v281_v59  ;;  %1153 = vmatpush2.msra.mxu1 %v216_v60  ;;  %v360_v54 = vld [vmem:[#allocation2 + $0x7f0] sm:$0xff]  ;;  %v357_v56 = vld [vmem:[#allocation2 + $0x7d8] sm:$0xff] }
  0xfd   :  { %1192 = vmatpush1.msra.mxu0 %v280_v61  ;;  %1154 = vmatprep.subr.mxu1 %v213_v63  ;;  %v424_v55 = vld [vmem:[#allocation2 + $0x9f0] sm:$0xff]  ;;  %v421_v57 = vld [vmem:[#allocation2 + $0x9d8] sm:$0xff] }
  0xfe   :  { %1193 = vmatprep.subr.mxu0 %v277_v0  ;;  %1155 = vmatpush2.msra.mxu1 %v212_v1  ;;  %v356_v58 = vld [vmem:[#allocation2 + $0x7d0] sm:$0xff]  ;;  %v353_v60 = vld [vmem:[#allocation2 + $0x7b8] sm:$0xff] }
  0xff   :  { %1194 = vmatpush1.msra.mxu0 %v276_v2  ;;  %1156 = vmatprep.subr.mxu1 %v209_v4  ;;  %v420_v59 = vld [vmem:[#allocation2 + $0x9d0] sm:$0xff]  ;;  %v417_v61 = vld [vmem:[#allocation2 + $0x9b8] sm:$0xff] }
 0x100   :  { %1195 = vmatprep.subr.mxu0 %v273_v5  ;;  %1157 = vmatpush2.msra.mxu1 %v208_v6  ;;  %v352_v63 = vld [vmem:[#allocation2 + $0x7b0] sm:$0xff]  ;;  %v349_v1 = vld [vmem:[#allocation2 + $0x798] sm:$0xff] }
 0x101   :  { %1196 = vmatpush1.msra.mxu0 %v272_v7  ;;  %1158 = vmatprep.subr.mxu1 %v205_v9  ;;  %v416_v0 = vld [vmem:[#allocation2 + $0x9b0] sm:$0xff]  ;;  %v409_v5 = vld [vmem:[#allocation2 + $0x978] sm:$0xff] }
 0x102   :  { %1197 = vmatprep.subr.mxu0 %v269_v10  ;;  %1159 = vmatpush2.msra.mxu1 %v204_v12  ;;  %v348_v2 = vld [vmem:[#allocation2 + $0x790] sm:$0xff]  ;;  %v341_v9 = vld [vmem:[#allocation2 + $0x758] sm:$0xff] }
 0x103   :  { %1198 = vmatpush1.msra.mxu0 %v268_v13  ;;  %1160 = vmatprep.subr.mxu1 %v201_v14  ;;  %v412_v4 = vld [vmem:[#allocation2 + $0x990] sm:$0xff]  ;;  %v405_v10 = vld [vmem:[#allocation2 + $0x958] sm:$0xff] }
 0x104   :  { %1199 = vmatprep.subr.mxu0 %v265_v15  ;;  %1161 = vmatpush2.msra.mxu1 %v200_v17  ;;  %v344_v6 = vld [vmem:[#allocation2 + $0x770] sm:$0xff]  ;;  %v337_v14 = vld [vmem:[#allocation2 + $0x738] sm:$0xff] }
 0x105   :  { %1200 = vmatpush1.msra.mxu0 %v264_v18  ;;  %1162 = vmatprep.subr.mxu1 %v197_v19  ;;  %v408_v7 = vld [vmem:[#allocation2 + $0x970] sm:$0xff]  ;;  %v401_v15 = vld [vmem:[#allocation2 + $0x938] sm:$0xff] }
 0x106   :  { %1201 = vmatprep.subr.mxu0 %v261_v20  ;;  %1163 = vmatpush2.msra.mxu1 %v196_v22  ;;  %v340_v12 = vld [vmem:[#allocation2 + $0x750] sm:$0xff]  ;;  %v333_v19 = vld [vmem:[#allocation2 + $0x718] sm:$0xff] }
 0x107   :  { %1202 = vmatpush1.msra.mxu0 %v260_v23  ;;  %1164 = vmatprep.subr.mxu1 %v193_v24  ;;  %v404_v13 = vld [vmem:[#allocation2 + $0x950] sm:$0xff]  ;;  %v397_v20 = vld [vmem:[#allocation2 + $0x918] sm:$0xff] }
 0x108   :  { %1203 = vmatprep.subr.mxu0 %v257_v25  ;;  %1165 = vmatpush2.msra.mxu1 %v192_v27  ;;  %v336_v17 = vld [vmem:[#allocation2 + $0x730] sm:$0xff]  ;;  %v329_v24 = vld [vmem:[#allocation2 + $0x6f8] sm:$0xff] }
 0x109   :  { %1204 = vmatpush1.msra.mxu0 %v256_v28  ;;  %1166 = vmatprep.subr.mxu1 %v189_v29  ;;  %v400_v18 = vld [vmem:[#allocation2 + $0x930] sm:$0xff]  ;;  %v393_v25 = vld [vmem:[#allocation2 + $0x8f8] sm:$0xff] }
 0x10a   :  { %1205 = vmatprep.subr.mxu0 %v253_v30  ;;  %1167 = vmatpush2.msra.mxu1 %v188_v31  ;;  %v332_v22 = vld [vmem:[#allocation2 + $0x710] sm:$0xff]  ;;  %v325_v29 = vld [vmem:[#allocation2 + $0x6d8] sm:$0xff] }
 0x10b   :  { %1206 = vmatpush1.msra.mxu0 %v252_v32  ;;  %1168 = vmatprep.subr.mxu1 %v185_v33  ;;  %v396_v23 = vld [vmem:[#allocation2 + $0x910] sm:$0xff]  ;;  %v389_v30 = vld [vmem:[#allocation2 + $0x8d8] sm:$0xff] }
 0x10c   :  { %1207 = vmatprep.subr.mxu0 %v249_v34  ;;  %1169 = vmatpush2.msra.mxu1 %v184_v35  ;;  %v328_v27 = vld [vmem:[#allocation2 + $0x6f0] sm:$0xff]  ;;  %v321_v33 = vld [vmem:[#allocation2 + $0x6b8] sm:$0xff] }
 0x10d   :  { %1208 = vmatpush1.msra.mxu0 %v248_v36  ;;  %1170 = vmatprep.subr.mxu1 %v181_v37  ;;  %v392_v28 = vld [vmem:[#allocation2 + $0x8f0] sm:$0xff]  ;;  %v385_v34 = vld [vmem:[#allocation2 + $0x8b8] sm:$0xff] }
 0x10e   :  { %1209 = vmatprep.subr.mxu0 %v245_v38  ;;  %1171 = vmatpush2.msra.mxu1 %v180_v39  ;;  %v324_v31 = vld [vmem:[#allocation2 + $0x6d0] sm:$0xff]  ;;  %v317_v37 = vld [vmem:[#allocation2 + $0x698] sm:$0xff] }
 0x10f   :  { %1210 = vmatpush1.msra.mxu0 %v244_v40  ;;  %1172 = vmatprep.subr.mxu1 %v177_v43  ;;  %v388_v32 = vld [vmem:[#allocation2 + $0x8d0] sm:$0xff]  ;;  %v381_v38 = vld [vmem:[#allocation2 + $0x898] sm:$0xff] }
 0x110   :  { %1211 = vmatprep.subr.mxu0 %v241_v44  ;;  %1173 = vmatpush2.msra.mxu1 %v176_v45  ;;  %v320_v35 = vld [vmem:[#allocation2 + $0x6b0] sm:$0xff]  ;;  %v313_v43 = vld [vmem:[#allocation2 + $0x678] sm:$0xff] }
 0x111   :  { %1212 = vmatpush1.msra.mxu0 %v240_v46  ;;  %1174 = vmatprep.subr.mxu1 %v173_v47  ;;  %v384_v36 = vld [vmem:[#allocation2 + $0x8b0] sm:$0xff]  ;;  %v377_v44 = vld [vmem:[#allocation2 + $0x878] sm:$0xff] }
 0x112   :  { %1213 = vmatprep.subr.mxu0 %v237_v48  ;;  %1175 = vmatpush2.msra.mxu1 %v172_v49  ;;  %v316_v39 = vld [vmem:[#allocation2 + $0x690] sm:$0xff]  ;;  %v309_v47 = vld [vmem:[#allocation2 + $0x658] sm:$0xff] }
 0x113   :  { %1214 = vmatpush1.msra.mxu0 %v236_v50  ;;  %1176 = vmatprep.mubr.f32.mxu1 %v2175_v8  ;;  %v413_v8 = vld [vmem:[#allocation2 + $0x998] sm:$0xff]  ;;  %v380_v40 = vld [vmem:[#allocation2 + $0x890] sm:$0xff] }
 0x114   :  { %1215 = vmatprep.subr.mxu0 %v361_v51  ;;  %1254 = vmatprep.subr.mxu1 %v425_v53  ;;  %v312_v45 = vld [vmem:[#allocation2 + $0x670] sm:$0xff]  ;;  %v373_v48 = vld [vmem:[#allocation2 + $0x858] sm:$0xff] }
 0x115   :  { %1177 = vmatmul.mubr.f32.vlgmr.msra.gmra.mxu1 %v2168_v62  ;;  %1216 = vmatpush2.msra.mxu0 %v360_v54  ;;  %v345_v62 = vld [vmem:[#allocation2 + $0x778] sm:$0xff]  ;;  %v376_v46 = vld [vmem:[#allocation2 + $0x870] sm:$0xff] }
 0x116   :  { %1255 = vmatpush1.msra.mxu1 %v424_v55  ;;  %1217 = vmatprep.subr.mxu0 %v357_v56  ;;  %v308_v49 = vld [vmem:[#allocation2 + $0x650] sm:$0xff]  ;;  %v305_v51 = vld [vmem:[#allocation2 + $0x638] sm:$0xff] }
 0x117   :  { %1256 = vmatprep.subr.mxu1 %v421_v57  ;;  %1218 = vmatpush2.msra.mxu0 %v356_v58  ;;  %v372_v50 = vld [vmem:[#allocation2 + $0x850] sm:$0xff]  ;;  %v369_v53 = vld [vmem:[#allocation2 + $0x838] sm:$0xff] }
 0x118   :  { %1257 = vmatpush1.msra.mxu1 %v420_v59  ;;  %1219 = vmatprep.subr.mxu0 %v353_v60  ;;  %v304_v54 = vld [vmem:[#allocation2 + $0x630] sm:$0xff]  ;;  %v301_v56 = vld [vmem:[#allocation2 + $0x618] sm:$0xff] }
 0x119   :  { %1258 = vmatprep.subr.mxu1 %v417_v61  ;;  %1220 = vmatpush2.msra.mxu0 %v352_v63  ;;  %v368_v55 = vld [vmem:[#allocation2 + $0x830] sm:$0xff]  ;;  %v365_v57 = vld [vmem:[#allocation2 + $0x818] sm:$0xff] }
 0x11a   :  { %1259 = vmatpush1.msra.mxu1 %v416_v0  ;;  %1221 = vmatprep.subr.mxu0 %v349_v1  ;;  %v300_v58 = vld [vmem:[#allocation2 + $0x610] sm:$0xff]  ;;  %v489_v60 = vld [vmem:[#allocation2 + $0xbf8] sm:$0xff] }
 0x11b   :  { %1260 = vmatprep.subr.mxu1 %v413_v8  ;;  %1222 = vmatpush2.msra.mxu0 %v348_v2  ;;  %v364_v59 = vld [vmem:[#allocation2 + $0x810] sm:$0xff]  ;;  %v553_v61 = vld [vmem:[#allocation2 + $0xdf8] sm:$0xff] }
 0x11c   :  { %1261 = vmatpush1.msra.mxu1 %v412_v4  ;;  %1223 = vmatprep.subr.mxu0 %v345_v62  ;;  %v488_v63 = vld [vmem:[#allocation2 + $0xbf0] sm:$0xff]  ;;  %v485_v1 = vld [vmem:[#allocation2 + $0xbd8] sm:$0xff] }
 0x11d   :  { %1262 = vmatprep.subr.mxu1 %v409_v5  ;;  %1224 = vmatpush2.msra.mxu0 %v344_v6  ;;  %v552_v0 = vld [vmem:[#allocation2 + $0xdf0] sm:$0xff]  ;;  %v549_v8 = vld [vmem:[#allocation2 + $0xdd8] sm:$0xff] }
 0x11e   :  { %1263 = vmatpush1.msra.mxu1 %v408_v7  ;;  %1225 = vmatprep.subr.mxu0 %v341_v9  ;;  %v484_v2 = vld [vmem:[#allocation2 + $0xbd0] sm:$0xff]  ;;  %v481_v62 = vld [vmem:[#allocation2 + $0xbb8] sm:$0xff] }
 0x11f   :  { %1264 = vmatprep.subr.mxu1 %v405_v10  ;;  %1226 = vmatpush2.msra.mxu0 %v340_v12  ;;  %v548_v4 = vld [vmem:[#allocation2 + $0xdd0] sm:$0xff]  ;;  %v545_v5 = vld [vmem:[#allocation2 + $0xdb8] sm:$0xff] }
 0x120   :  { %1265 = vmatpush1.msra.mxu1 %v404_v13  ;;  %1227 = vmatprep.subr.mxu0 %v337_v14  ;;  %v480_v6 = vld [vmem:[#allocation2 + $0xbb0] sm:$0xff]  ;;  %v541_v9 = vld [vmem:[#allocation2 + $0xd98] sm:$0xff] }
 0x121   :  { %1266 = vmatprep.subr.mxu1 %v401_v15  ;;  %1228 = vmatpush2.msra.mxu0 %v336_v17  ;;  %v544_v7 = vld [vmem:[#allocation2 + $0xdb0] sm:$0xff]  ;;  %v473_v12 = vld [vmem:[#allocation2 + $0xb78] sm:$0xff] }
 0x122   :  { %1267 = vmatpush1.msra.mxu1 %v400_v18  ;;  %1229 = vmatprep.subr.mxu0 %v333_v19  ;;  %v540_v10 = vld [vmem:[#allocation2 + $0xd90] sm:$0xff]  ;;  %v537_v13 = vld [vmem:[#allocation2 + $0xd78] sm:$0xff] }
 0x123   :  { %1268 = vmatprep.subr.mxu1 %v397_v20  ;;  %1230 = vmatpush2.msra.mxu0 %v332_v22  ;;  %v472_v14 = vld [vmem:[#allocation2 + $0xb70] sm:$0xff]  ;;  %v469_v17 = vld [vmem:[#allocation2 + $0xb58] sm:$0xff] }
 0x124   :  { %1269 = vmatpush1.msra.mxu1 %v396_v23  ;;  %1231 = vmatprep.subr.mxu0 %v329_v24  ;;  %v536_v15 = vld [vmem:[#allocation2 + $0xd70] sm:$0xff]  ;;  %v533_v18 = vld [vmem:[#allocation2 + $0xd58] sm:$0xff] }
 0x125   :  { %1270 = vmatprep.subr.mxu1 %v393_v25  ;;  %1232 = vmatpush2.msra.mxu0 %v328_v27  ;;  %v468_v19 = vld [vmem:[#allocation2 + $0xb50] sm:$0xff]  ;;  %v465_v22 = vld [vmem:[#allocation2 + $0xb38] sm:$0xff] }
 0x126   :  { %1271 = vmatpush1.msra.mxu1 %v392_v28  ;;  %1233 = vmatprep.subr.mxu0 %v325_v29  ;;  %v532_v20 = vld [vmem:[#allocation2 + $0xd50] sm:$0xff]  ;;  %v529_v23 = vld [vmem:[#allocation2 + $0xd38] sm:$0xff] }
 0x127   :  { %1272 = vmatprep.subr.mxu1 %v389_v30  ;;  %1234 = vmatpush2.msra.mxu0 %v324_v31  ;;  %v464_v24 = vld [vmem:[#allocation2 + $0xb30] sm:$0xff]  ;;  %v461_v27 = vld [vmem:[#allocation2 + $0xb18] sm:$0xff] }
 0x128   :  { %1273 = vmatpush1.msra.mxu1 %v388_v32  ;;  %1235 = vmatprep.subr.mxu0 %v321_v33  ;;  %v528_v25 = vld [vmem:[#allocation2 + $0xd30] sm:$0xff]  ;;  %v525_v28 = vld [vmem:[#allocation2 + $0xd18] sm:$0xff] }
 0x129   :  { %1274 = vmatprep.subr.mxu1 %v385_v34  ;;  %1236 = vmatpush2.msra.mxu0 %v320_v35  ;;  %v460_v29 = vld [vmem:[#allocation2 + $0xb10] sm:$0xff]  ;;  %v457_v31 = vld [vmem:[#allocation2 + $0xaf8] sm:$0xff] }
 0x12a   :  { %1275 = vmatpush1.msra.mxu1 %v384_v36  ;;  %1237 = vmatprep.subr.mxu0 %v317_v37  ;;  %v524_v30 = vld [vmem:[#allocation2 + $0xd10] sm:$0xff]  ;;  %v521_v32 = vld [vmem:[#allocation2 + $0xcf8] sm:$0xff] }
 0x12b   :  { %1276 = vmatprep.subr.mxu1 %v381_v38  ;;  %1238 = vmatpush2.msra.mxu0 %v316_v39  ;;  %v456_v33 = vld [vmem:[#allocation2 + $0xaf0] sm:$0xff]  ;;  %v453_v35 = vld [vmem:[#allocation2 + $0xad8] sm:$0xff] }
 0x12c   :  { %1277 = vmatpush1.msra.mxu1 %v380_v40  ;;  %1239 = vmatprep.subr.mxu0 %v313_v43  ;;  %v520_v34 = vld [vmem:[#allocation2 + $0xcf0] sm:$0xff]  ;;  %v517_v36 = vld [vmem:[#allocation2 + $0xcd8] sm:$0xff] }
 0x12d   :  { %1278 = vmatprep.subr.mxu1 %v377_v44  ;;  %1240 = vmatpush2.msra.mxu0 %v312_v45  ;;  %v452_v37 = vld [vmem:[#allocation2 + $0xad0] sm:$0xff]  ;;  %v449_v39 = vld [vmem:[#allocation2 + $0xab8] sm:$0xff] }
 0x12e   :  { %1279 = vmatpush1.msra.mxu1 %v376_v46  ;;  %1241 = vmatprep.subr.mxu0 %v309_v47  ;;  %v516_v38 = vld [vmem:[#allocation2 + $0xcd0] sm:$0xff]  ;;  %v513_v40 = vld [vmem:[#allocation2 + $0xcb8] sm:$0xff] }
 0x12f   :  { %1280 = vmatprep.subr.mxu1 %v373_v48  ;;  %1242 = vmatpush2.msra.mxu0 %v308_v49  ;;  %v448_v43 = vld [vmem:[#allocation2 + $0xab0] sm:$0xff]  ;;  %v445_v45 = vld [vmem:[#allocation2 + $0xa98] sm:$0xff] }
 0x130   :  { %1281 = vmatpush1.msra.mxu1 %v372_v50  ;;  %1243 = vmatprep.subr.mxu0 %v305_v51  ;;  %v512_v44 = vld [vmem:[#allocation2 + $0xcb0] sm:$0xff]  ;;  %v509_v46 = vld [vmem:[#allocation2 + $0xc98] sm:$0xff] }
 0x131   :  { %1282 = vmatprep.subr.mxu1 %v369_v53  ;;  %1244 = vmatpush2.msra.mxu0 %v304_v54  ;;  %v444_v47 = vld [vmem:[#allocation2 + $0xa90] sm:$0xff]  ;;  %v441_v49 = vld [vmem:[#allocation2 + $0xa78] sm:$0xff] }
 0x132   :  { %1283 = vmatpush1.msra.mxu1 %v368_v55  ;;  %1245 = vmatprep.subr.mxu0 %v301_v56  ;;  %v508_v48 = vld [vmem:[#allocation2 + $0xc90] sm:$0xff]  ;;  %v505_v50 = vld [vmem:[#allocation2 + $0xc78] sm:$0xff] }
 0x133   :  { %1284 = vmatprep.subr.mxu1 %v365_v57  ;;  %1246 = vmatpush2.msra.mxu0 %v300_v58  ;;  %v440_v51 = vld [vmem:[#allocation2 + $0xa70] sm:$0xff]  ;;  %v437_v54 = vld [vmem:[#allocation2 + $0xa58] sm:$0xff] }
 0x134   :  { %1247 = vmatprep.mubr.f32.mxu0 %v2179_v11  ;;  %1285 = vmatpush1.msra.mxu1 %v364_v59  ;;  %v477_v11 = vld [vmem:[#allocation2 + $0xb98] sm:$0xff]  ;;  %v504_v53 = vld [vmem:[#allocation2 + $0xc70] sm:$0xff] }
 0x135   :  { %1248 = vmatmul.mubr.f32.vlgmr.msra.gmra.mxu0 %v2171_v3  ;;  %1286 = vmatprep.subr.mxu1 %v489_v60  ;;  %v476_v3 = vld [vmem:[#allocation2 + $0xb90] sm:$0xff]  ;;  %v501_v55 = vld [vmem:[#allocation2 + $0xc58] sm:$0xff] }
 0x136   :  { %1325 = vmatprep.subr.mxu0 %v553_v61  ;;  %1287 = vmatpush2.msra.mxu1 %v488_v63  ;;  %v436_v56 = vld [vmem:[#allocation2 + $0xa50] sm:$0xff]  ;;  %v433_v58 = vld [vmem:[#allocation2 + $0xa38] sm:$0xff] }
 0x137   :  { %1326 = vmatpush1.msra.mxu0 %v552_v0  ;;  %1288 = vmatprep.subr.mxu1 %v485_v1  ;;  %v500_v57 = vld [vmem:[#allocation2 + $0xc50] sm:$0xff]  ;;  %v497_v59 = vld [vmem:[#allocation2 + $0xc38] sm:$0xff] }
 0x138   :  { %1327 = vmatprep.subr.mxu0 %v549_v8  ;;  %1289 = vmatpush2.msra.mxu1 %v484_v2  ;;  %v432_v60 = vld [vmem:[#allocation2 + $0xa30] sm:$0xff]  ;;  %v429_v63 = vld [vmem:[#allocation2 + $0xa18] sm:$0xff] }
 0x139   :  { %1328 = vmatpush1.msra.mxu0 %v548_v4  ;;  %1290 = vmatprep.subr.mxu1 %v481_v62  ;;  %v496_v61 = vld [vmem:[#allocation2 + $0xc30] sm:$0xff]  ;;  %v493_v0 = vld [vmem:[#allocation2 + $0xc18] sm:$0xff] }
 0x13a   :  { %1329 = vmatprep.subr.mxu0 %v545_v5  ;;  %1291 = vmatpush2.msra.mxu1 %v480_v6  ;;  %v428_v1 = vld [vmem:[#allocation2 + $0xa10] sm:$0xff]  ;;  %v617_v2 = vld [vmem:[#allocation2 + $0xff8] sm:$0xff] }
 0x13b   :  { %1330 = vmatpush1.msra.mxu0 %v544_v7  ;;  %1292 = vmatprep.subr.mxu1 %v477_v11  ;;  %v492_v8 = vld [vmem:[#allocation2 + $0xc10] sm:$0xff]  ;;  %v681_v4 = vld [vmem:[#allocation2 + $0x11f8] sm:$0xff] }
 0x13c   :  { %1331 = vmatprep.subr.mxu0 %v541_v9  ;;  %1293 = vmatpush2.msra.mxu1 %v476_v3  ;;  %v616_v62 = vld [vmem:[#allocation2 + $0xff0] sm:$0xff]  ;;  %v613_v6 = vld [vmem:[#allocation2 + $0xfd8] sm:$0xff] }
 0x13d   :  { %1332 = vmatpush1.msra.mxu0 %v540_v10  ;;  %1294 = vmatprep.subr.mxu1 %v473_v12  ;;  %v680_v5 = vld [vmem:[#allocation2 + $0x11f0] sm:$0xff]  ;;  %v677_v7 = vld [vmem:[#allocation2 + $0x11d8] sm:$0xff] }
 0x13e   :  { %1333 = vmatprep.subr.mxu0 %v537_v13  ;;  %1295 = vmatpush2.msra.mxu1 %v472_v14  ;;  %v612_v11 = vld [vmem:[#allocation2 + $0xfd0] sm:$0xff]  ;;  %v609_v3 = vld [vmem:[#allocation2 + $0xfb8] sm:$0xff] }
 0x13f   :  { %1334 = vmatpush1.msra.mxu0 %v536_v15  ;;  %1296 = vmatprep.subr.mxu1 %v469_v17  ;;  %v676_v9 = vld [vmem:[#allocation2 + $0x11d0] sm:$0xff]  ;;  %v673_v10 = vld [vmem:[#allocation2 + $0x11b8] sm:$0xff] }
 0x140   :  { %1335 = vmatprep.subr.mxu0 %v533_v18  ;;  %1297 = vmatpush2.msra.mxu1 %v468_v19  ;;  %v608_v12 = vld [vmem:[#allocation2 + $0xfb0] sm:$0xff]  ;;  %v669_v14 = vld [vmem:[#allocation2 + $0x1198] sm:$0xff] }
 0x141   :  { %1336 = vmatpush1.msra.mxu0 %v532_v20  ;;  %1298 = vmatprep.subr.mxu1 %v465_v22  ;;  %v672_v13 = vld [vmem:[#allocation2 + $0x11b0] sm:$0xff]  ;;  %v601_v17 = vld [vmem:[#allocation2 + $0xf78] sm:$0xff] }
 0x142   :  { %1337 = vmatprep.subr.mxu0 %v529_v23  ;;  %1299 = vmatpush2.msra.mxu1 %v464_v24  ;;  %v668_v15 = vld [vmem:[#allocation2 + $0x1190] sm:$0xff]  ;;  %v665_v18 = vld [vmem:[#allocation2 + $0x1178] sm:$0xff] }
 0x143   :  { %1338 = vmatpush1.msra.mxu0 %v528_v25  ;;  %1300 = vmatprep.subr.mxu1 %v461_v27  ;;  %v600_v19 = vld [vmem:[#allocation2 + $0xf70] sm:$0xff]  ;;  %v597_v22 = vld [vmem:[#allocation2 + $0xf58] sm:$0xff] }
 0x144   :  { %1339 = vmatprep.subr.mxu0 %v525_v28  ;;  %1301 = vmatpush2.msra.mxu1 %v460_v29  ;;  %v664_v20 = vld [vmem:[#allocation2 + $0x1170] sm:$0xff]  ;;  %v661_v23 = vld [vmem:[#allocation2 + $0x1158] sm:$0xff] }
 0x145   :  { %1340 = vmatpush1.msra.mxu0 %v524_v30  ;;  %1302 = vmatprep.subr.mxu1 %v457_v31  ;;  %v596_v24 = vld [vmem:[#allocation2 + $0xf50] sm:$0xff]  ;;  %v593_v27 = vld [vmem:[#allocation2 + $0xf38] sm:$0xff] }
 0x146   :  { %1341 = vmatprep.subr.mxu0 %v521_v32  ;;  %1303 = vmatpush2.msra.mxu1 %v456_v33  ;;  %v660_v25 = vld [vmem:[#allocation2 + $0x1150] sm:$0xff]  ;;  %v657_v28 = vld [vmem:[#allocation2 + $0x1138] sm:$0xff] }
 0x147   :  { %1342 = vmatpush1.msra.mxu0 %v520_v34  ;;  %1304 = vmatprep.subr.mxu1 %v453_v35  ;;  %v592_v29 = vld [vmem:[#allocation2 + $0xf30] sm:$0xff]  ;;  %v589_v31 = vld [vmem:[#allocation2 + $0xf18] sm:$0xff] }
 0x148   :  { %1343 = vmatprep.subr.mxu0 %v517_v36  ;;  %1305 = vmatpush2.msra.mxu1 %v452_v37  ;;  %v656_v30 = vld [vmem:[#allocation2 + $0x1130] sm:$0xff]  ;;  %v653_v32 = vld [vmem:[#allocation2 + $0x1118] sm:$0xff] }
 0x149   :  { %1344 = vmatpush1.msra.mxu0 %v516_v38  ;;  %1306 = vmatprep.subr.mxu1 %v449_v39  ;;  %v588_v33 = vld [vmem:[#allocation2 + $0xf10] sm:$0xff]  ;;  %v585_v35 = vld [vmem:[#allocation2 + $0xef8] sm:$0xff] }
 0x14a   :  { %1345 = vmatprep.subr.mxu0 %v513_v40  ;;  %1307 = vmatpush2.msra.mxu1 %v448_v43  ;;  %v652_v34 = vld [vmem:[#allocation2 + $0x1110] sm:$0xff]  ;;  %v649_v36 = vld [vmem:[#allocation2 + $0x10f8] sm:$0xff] }
 0x14b   :  { %1346 = vmatpush1.msra.mxu0 %v512_v44  ;;  %1308 = vmatprep.subr.mxu1 %v445_v45  ;;  %v584_v37 = vld [vmem:[#allocation2 + $0xef0] sm:$0xff]  ;;  %v581_v39 = vld [vmem:[#allocation2 + $0xed8] sm:$0xff] }
 0x14c   :  { %1347 = vmatprep.subr.mxu0 %v509_v46  ;;  %1309 = vmatpush2.msra.mxu1 %v444_v47  ;;  %v648_v38 = vld [vmem:[#allocation2 + $0x10f0] sm:$0xff]  ;;  %v645_v40 = vld [vmem:[#allocation2 + $0x10d8] sm:$0xff] }
 0x14d   :  { %1348 = vmatpush1.msra.mxu0 %v508_v48  ;;  %1310 = vmatprep.subr.mxu1 %v441_v49  ;;  %v580_v43 = vld [vmem:[#allocation2 + $0xed0] sm:$0xff]  ;;  %v577_v45 = vld [vmem:[#allocation2 + $0xeb8] sm:$0xff] }
 0x14e   :  { %1349 = vmatprep.subr.mxu0 %v505_v50  ;;  %1311 = vmatpush2.msra.mxu1 %v440_v51  ;;  %v644_v44 = vld [vmem:[#allocation2 + $0x10d0] sm:$0xff]  ;;  %v641_v46 = vld [vmem:[#allocation2 + $0x10b8] sm:$0xff] }
 0x14f   :  { %1350 = vmatpush1.msra.mxu0 %v504_v53  ;;  %1312 = vmatprep.subr.mxu1 %v437_v54  ;;  %v576_v47 = vld [vmem:[#allocation2 + $0xeb0] sm:$0xff]  ;;  %v573_v49 = vld [vmem:[#allocation2 + $0xe98] sm:$0xff] }
 0x150   :  { %1351 = vmatprep.subr.mxu0 %v501_v55  ;;  %1313 = vmatpush2.msra.mxu1 %v436_v56  ;;  %v640_v48 = vld [vmem:[#allocation2 + $0x10b0] sm:$0xff]  ;;  %v637_v50 = vld [vmem:[#allocation2 + $0x1098] sm:$0xff] }
 0x151   :  { %1352 = vmatpush1.msra.mxu0 %v500_v57  ;;  %1314 = vmatprep.subr.mxu1 %v433_v58  ;;  %v572_v51 = vld [vmem:[#allocation2 + $0xe90] sm:$0xff]  ;;  %v569_v54 = vld [vmem:[#allocation2 + $0xe78] sm:$0xff] }
 0x152   :  { %1353 = vmatprep.subr.mxu0 %v497_v59  ;;  %1315 = vmatpush2.msra.mxu1 %v432_v60  ;;  %v636_v53 = vld [vmem:[#allocation2 + $0x1090] sm:$0xff]  ;;  %v633_v55 = vld [vmem:[#allocation2 + $0x1078] sm:$0xff] }
 0x153   :  { %1354 = vmatpush1.msra.mxu0 %v496_v61  ;;  %1316 = vmatprep.subr.mxu1 %v429_v63  ;;  %v568_v56 = vld [vmem:[#allocation2 + $0xe70] sm:$0xff]  ;;  %v565_v58 = vld [vmem:[#allocation2 + $0xe58] sm:$0xff] }
 0x154   :  { %1355 = vmatprep.subr.mxu0 %v493_v0  ;;  %1317 = vmatpush2.msra.mxu1 %v428_v1  ;;  %v632_v57 = vld [vmem:[#allocation2 + $0x1070] sm:$0xff]  ;;  %v629_v59 = vld [vmem:[#allocation2 + $0x1058] sm:$0xff] }
 0x155   :  { %1318 = vmatprep.mubr.f32.mxu1 %v2196_v26  ;;  %1356 = vmatpush1.msra.mxu0 %v492_v8  ;;  %v605_v26 = vld [vmem:[#allocation2 + $0xf98] sm:$0xff]  ;;  %v564_v60 = vld [vmem:[#allocation2 + $0xe50] sm:$0xff] }
 0x156   :  { %1319 = vmatmul.mubr.f32.vlgmr.msra.gmra.mxu1 %v2189_v16  ;;  %1357 = vmatprep.subr.mxu0 %v617_v2  ;;  %v604_v16 = vld [vmem:[#allocation2 + $0xf90] sm:$0xff]  ;;  %v561_v63 = vld [vmem:[#allocation2 + $0xe38] sm:$0xff] }
 0x157   :  { %1396 = vmatprep.subr.mxu1 %v681_v4  ;;  %1358 = vmatpush2.msra.mxu0 %v616_v62  ;;  %v628_v61 = vld [vmem:[#allocation2 + $0x1050] sm:$0xff]  ;;  %v625_v0 = vld [vmem:[#allocation2 + $0x1038] sm:$0xff] }
 0x158   :  { %1397 = vmatpush1.msra.mxu1 %v680_v5  ;;  %1359 = vmatprep.subr.mxu0 %v613_v6  ;;  %v560_v1 = vld [vmem:[#allocation2 + $0xe30] sm:$0xff]  ;;  %v557_v2 = vld [vmem:[#allocation2 + $0xe18] sm:$0xff] }
 0x159   :  { %1398 = vmatprep.subr.mxu1 %v677_v7  ;;  %1360 = vmatpush2.msra.mxu0 %v612_v11  ;;  %v624_v8 = vld [vmem:[#allocation2 + $0x1030] sm:$0xff]  ;;  %v621_v4 = vld [vmem:[#allocation2 + $0x1018] sm:$0xff] }
 0x15a   :  { %1399 = vmatpush1.msra.mxu1 %v676_v9  ;;  %1361 = vmatprep.subr.mxu0 %v609_v3  ;;  %v556_v62 = vld [vmem:[#allocation2 + $0xe10] sm:$0xff]  ;;  %v1502_v6 = vld [vmem:[#allocation7 + $0xf8] sm:$0xff] }
 0x15b   :  { %1400 = vmatprep.subr.mxu1 %v673_v10  ;;  %1362 = vmatpush2.msra.mxu0 %v608_v12  ;;  %v620_v5 = vld [vmem:[#allocation2 + $0x1010] sm:$0xff]  ;;  %v1486_v7 = vld [vmem:[#allocation7 + $0x78] sm:$0xff] }
 0x15c   :  { %1401 = vmatpush1.msra.mxu1 %v672_v13  ;;  %1363 = vmatprep.subr.mxu0 %v605_v26  ;;  %v1936_v11 = vld.sshfl [vmem:[%s2252_s0 + $0x10] sm:$0x3 pattern:$0x76325410]  ;;  %v1501_v9 = vld [vmem:[#allocation7 + $0xf0] sm:$0xff]  ;;  %v1483_v13 = vld [vmem:[#allocation7 + $0x60] sm:$0xff] }
 0x15d   :  { %1402 = vmatprep.subr.mxu1 %v669_v14  ;;  %1364 = vmatpush2.msra.mxu0 %v604_v16  ;;  %v1485_v3 = vld [vmem:[#allocation7 + $0x70] sm:$0xff]  ;;  %v1500_v10 = vld [vmem:[#allocation7 + $0xe8] sm:$0xff]  ;;  %v1498_v26 = vld [vmem:[#allocation7 + $0xd8] sm:$0xff]  ;;  %s2100_s0 = smov [#allocation13]  }
 0x15e   :  { %1403 = vmatpush1.msra.mxu1 %v668_v15  ;;  %1365 = vmatprep.subr.mxu0 %v601_v17  ;;  %v1484_v12 = vld [vmem:[#allocation7 + $0x68] sm:$0xff]  ;;  %v1497_v14 = vld [vmem:[#allocation7 + $0xd0] sm:$0xff]  ;;  %s1783_s15 = sshll.u32 %s2100_s0, 4  ;;  %s1784_s15 = int_to_ptr.vmem [resolvable:$true] %s1783_s15 }
 0x15f   :  { %1404 = vmatprep.subr.mxu1 %v665_v18  ;;  %1366 = vmatpush2.msra.mxu0 %v600_v19  ;;  %v1481_v16 = vld [vmem:[#allocation7 + $0x50] sm:$0xff]  ;;  %v1496_v15 = vld [vmem:[#allocation7 + $0xc8] sm:$0xff]  ;;  %v1495_v18 = vld [vmem:[#allocation7 + $0xc0] sm:$0xff]  ;;  %s2057_s16 = scalar_lea.vmem %s1784_s15, 32  ;;  %p2062_p3 = scmp.lt.s32.totalorder %s1784_s15, %s1784_s15 }
 0x160   :  { %1405 = vmatpush1.msra.mxu1 %v664_v20  ;;  %1367 = vmatprep.subr.mxu0 %v597_v22  ;;  %v1480_v17 = vld [vmem:[#allocation7 + $0x48] sm:$0xff]  ;;  %v1479_v19 = vld [vmem:[#allocation7 + $0x40] sm:$0xff]  ;;  %v1494_v20 = vld [vmem:[#allocation7 + $0xb8] sm:$0xff]  ;;  %p2058_p2 = scmp.ne.s32.totalorder %s1784_s15, %s2057_s16  ;;  %p2063_p4 = scmp.lt.s32.totalorder %s2057_s16, %s2057_s16 }
 0x161   :  { %1406 = vmatprep.subr.mxu1 %v661_v23  ;;  %1368 = vmatpush2.msra.mxu0 %v596_v24  ;;  %v1478_v22 = vld [vmem:[#allocation7 + $0x38] sm:$0xff]  ;;  %v1493_v23 = vld [vmem:[#allocation7 + $0xb0] sm:$0xff] }
 0x162   :  { %1407 = vmatpush1.msra.mxu1 %v660_v25  ;;  %1369 = vmatprep.subr.mxu0 %v593_v27  ;;  %v1477_v24 = vld [vmem:[#allocation7 + $0x30] sm:$0xff]  ;;  %v1492_v25 = vld [vmem:[#allocation7 + $0xa8] sm:$0xff]  ;;  %p2064_p5 = por %p2063_p4, %p2062_p3 }
 0x163   :  { %1408 = vmatprep.subr.mxu1 %v657_v28  ;;  %1370 = vmatpush2.msra.mxu0 %v592_v29  ;;  %v1476_v27 = vld [vmem:[#allocation7 + $0x28] sm:$0xff]  ;;  %v1491_v28 = vld [vmem:[#allocation7 + $0xa0] sm:$0xff] }
 0x164   :  { %1409 = vmatpush1.msra.mxu1 %v656_v30  ;;  %1371 = vmatprep.subr.mxu0 %v589_v31  ;;  %v1475_v29 = vld [vmem:[#allocation7 + $0x20] sm:$0xff]  ;;  %v1490_v30 = vld [vmem:[#allocation7 + $0x98] sm:$0xff]  ;;  %p2065_p6 = pnand %p2064_p5, %p2058_p2 }
 0x165   :  { %1410 = vmatprep.subr.mxu1 %v653_v32  ;;  %1372 = vmatpush2.msra.mxu0 %v588_v33  ;;  %v1474_v31 = vld [vmem:[#allocation7 + $0x18] sm:$0xff]  ;;  %v1489_v32 = vld [vmem:[#allocation7 + $0x90] sm:$0xff] }
 0x166   :  { %1411 = vmatpush1.msra.mxu1 %v652_v34  ;;  %1373 = vmatprep.subr.mxu0 %v585_v35  ;;  %v1473_v33 = vld [vmem:[#allocation7 + $0x10] sm:$0xff]  ;;  %v1488_v34 = vld [vmem:[#allocation7 + $0x88] sm:$0xff] }
 0x167   :  { %1412 = vmatprep.subr.mxu1 %v649_v36  ;;  %1374 = vmatpush2.msra.mxu0 %v584_v37  ;;  %v1472_v35 = vld [vmem:[#allocation7 + $0x8] sm:$0xff]  ;;  %v1487_v36 = vld [vmem:[#allocation7 + $0x80] sm:$0xff] }
 0x168   :  { %1413 = vmatpush1.msra.mxu1 %v648_v38  ;;  %1375 = vmatprep.subr.mxu0 %v581_v39  ;;  %v1471_v37 = vld [vmem:[#allocation7] sm:$0xff]  ;;  %v1534_v38 = vld [vmem:[#allocation7 + $0x1f8] sm:$0xff] }
 0x169   :  { %1414 = vmatprep.subr.mxu1 %v645_v40  ;;  %1376 = vmatpush2.msra.mxu0 %v580_v43  ;;  %v1518_v39 = vld [vmem:[#allocation7 + $0x178] sm:$0xff]  ;;  %v1533_v40 = vld [vmem:[#allocation7 + $0x1f0] sm:$0xff] }
 0x16a   :  { %1415 = vmatpush1.msra.mxu1 %v644_v44  ;;  %1377 = vmatprep.subr.mxu0 %v577_v45  ;;  %v1517_v43 = vld [vmem:[#allocation7 + $0x170] sm:$0xff]  ;;  %v1532_v44 = vld [vmem:[#allocation7 + $0x1e8] sm:$0xff] }
 0x16b   :  { %1416 = vmatprep.subr.mxu1 %v641_v46  ;;  %1378 = vmatpush2.msra.mxu0 %v576_v47  ;;  %v1516_v45 = vld [vmem:[#allocation7 + $0x168] sm:$0xff]  ;;  %v1531_v46 = vld [vmem:[#allocation7 + $0x1e0] sm:$0xff] }
 0x16c   :  { %1417 = vmatpush1.msra.mxu1 %v640_v48  ;;  %1379 = vmatprep.subr.mxu0 %v573_v49  ;;  %v1515_v47 = vld [vmem:[#allocation7 + $0x160] sm:$0xff]  ;;  %v1530_v48 = vld [vmem:[#allocation7 + $0x1d8] sm:$0xff] }
 0x16d   :  { %1418 = vmatprep.subr.mxu1 %v637_v50  ;;  %1380 = vmatpush2.msra.mxu0 %v572_v51  ;;  %v1514_v49 = vld [vmem:[#allocation7 + $0x158] sm:$0xff]  ;;  %v686_v50 = vsub.s32 0, %v2159_v41  ;;  %v1529_v51 = vld [vmem:[#allocation7 + $0x1d0] sm:$0xff] }
 0x16e   :  { %1419 = vmatpush1.msra.mxu1 %v636_v53  ;;  %1381 = vmatprep.subr.mxu0 %v569_v54  ;;  %v2224_v53 = vld [vmem:[#allocation5] sm:$0xf]  ;;  %v690_v54 = vsub.s32 1, %v2159_v41 }
 0x16f   :  { %1420 = vmatprep.subr.mxu1 %v633_v55  ;;  %1382 = vmatpush2.msra.mxu0 %v568_v56  ;;  %v1513_v55 = vld [vmem:[#allocation7 + $0x150] sm:$0xff]  ;;  %v823_v56 = vpop.f32.mrf.mxu0 }
 0x170   :  { %1421 = vmatpush1.msra.mxu1 %v632_v57  ;;  %1383 = vmatprep.subr.mxu0 %v565_v58  ;;  %v1528_v57 = vld [vmem:[#allocation7 + $0x1c8] sm:$0xff] }
 0x171   :  { %1422 = vmatprep.subr.mxu1 %v629_v59  ;;  %1384 = vmatpush2.msra.mxu0 %v564_v60  ;;  %v1512_v58 = vld [vmem:[#allocation7 + $0x148] sm:$0xff]  ;;  %v687_v59 = vrot.slane %v2224_v53, %v686_v50  ;;  %v1527_v60 = vld [vmem:[#allocation7 + $0x1c0] sm:$0xff]  ;;  %v698_v50 = vsub.s32 3, %v2159_v41 }
 0x172   :  { %1423 = vmatpush1.msra.mxu1 %v628_v61  ;;  %1385 = vmatprep.subr.mxu0 %v561_v63  ;;  %v691_v61 = vrot.slane %v2224_v53, %v690_v54  ;;  %v1511_v63 = vld [vmem:[#allocation7 + $0x140] sm:$0xff] }
 0x173   :  { %1424 = vmatprep.subr.mxu1 %v625_v0  ;;  %1386 = vmatpush2.msra.mxu0 %v560_v1  ;;  %v894_v0 = vpop.f32.mrf.mxu1  ;;  %v825_v1 = vpop.f32.mrf.mxu0 }
 0x174   :  { %1425 = vmatpush1.msra.mxu1 %v624_v8  ;;  %1387 = vmatprep.subr.mxu0 %v557_v2  ;;  %v1526_v8 = vld [vmem:[#allocation7 + $0x1b8] sm:$0xff] }
 0x175   :  { %1426 = vmatprep.subr.mxu1 %v621_v4  ;;  %1388 = vmatpush2.msra.mxu0 %v556_v62  ;;  %v1510_v2 = vld [vmem:[#allocation7 + $0x138] sm:$0xff]  ;;  %v824_v4 = vadd.f32 %v823_v56, %v687_v59  ;;  %v699_v56 = vrot.slane %v2224_v53, %v698_v50 }
 0x176   :  { %1389 = vmatprep.mubr.f32.mxu0 %v2200_v52  ;;  %1427 = vmatpush1.msra.mxu1 %v620_v5  ;;  %v1499_v52 = vld [vmem:[#allocation7 + $0xe0] sm:$0xff]  ;;  %v1525_v5 = vld [vmem:[#allocation7 + $0x1b0] sm:$0xff] }
 0x177   :  { %1460 = vmatprep.mubr.f32.mxu1 %v2098_v42  ;;  %1390 = vmatmul.mubr.f32.vlgmr.msra.gmra.mxu0 %v2192_v21  ;;  %v1482_v21 = vld [vmem:[#allocation7 + $0x58] sm:$0xff] }
 0x178   :  { %1461 = vmatmul.mubr.f32.vlgmr.msra.gmra.mxu1 %v1936_v11  ;;  %1798 = vmatprep.subr.mxu0 %v1502_v6  ;;  %v826_v6 = vadd.f32 %v825_v1, %v691_v61  ;;  %v896_v11 = vpop.f32.mrf.mxu1 }
 0x179   :  { %1799 = vmatpush3.msra.mxu0 %v1486_v7  ;;  %1833 = vmatprep.subr.mxu1 %v1534_v38  ;;  %v1509_v7 = vld [vmem:[#allocation7 + $0x130] sm:$0xff]  ;;  %v1695_v38 = vld [vmem:[#allocation10 + $0x60] sm:$0xff] }
 0x17a   :  { %1800 = vmatprep.subr.mxu0 %v1501_v9  ;;  %1834 = vmatpush3.msra.mxu1 %v1518_v39  ;;  %v1524_v9 = vld [vmem:[#allocation7 + $0x1a8] sm:$0xff]  ;;  %v1694_v39 = vld [vmem:[#allocation10 + $0x58] sm:$0xff] }
 0x17b   :  { %1801 = vmatpush3.msra.mxu0 %v1485_v3  ;;  %1835 = vmatprep.subr.mxu1 %v1533_v40  ;;  %v1508_v3 = vld [vmem:[#allocation7 + $0x128] sm:$0xff]  ;;  %v1693_v40 = vld [vmem:[#allocation10 + $0x50] sm:$0xff] }
 0x17c   :  { %1802 = vmatprep.subr.mxu0 %v1500_v10  ;;  %1836 = vmatpush3.msra.mxu1 %v1517_v43  ;;  %v895_v10 = vadd.f32 %v894_v0, %v824_v4  ;;  %v1692_v43 = vld [vmem:[#allocation10 + $0x48] sm:$0xff] }
 0x17d   :  { %1803 = vmatpush3.msra.mxu0 %v1484_v12  ;;  %1837 = vmatprep.subr.mxu1 %v1532_v44  ;;  %v1691_v44 = vld [vmem:[#allocation10 + $0x40] sm:$0xff] }
 0x17e   :  { %1804 = vmatprep.subr.mxu0 %v1499_v52  ;;  %1838 = vmatpush3.msra.mxu1 %v1516_v45  ;;  %v1690_v45 = vld [vmem:[#allocation10 + $0x38] sm:$0xff] }
 0x17f   :  { %1805 = vmatpush3.msra.mxu0 %v1483_v13  ;;  %1839 = vmatprep.subr.mxu1 %v1531_v46  ;;  %v897_v13 = vadd.f32 %v896_v11, %v826_v6  ;;  %v1689_v46 = vld [vmem:[#allocation10 + $0x30] sm:$0xff] }
 0x180   :  { %1806 = vmatprep.subr.mxu0 %v1498_v26  ;;  %1840 = vmatpush3.msra.mxu1 %v1515_v47  ;;  %v1688_v47 = vld [vmem:[#allocation10 + $0x28] sm:$0xff] }
 0x181   :  { %1807 = vmatpush3.msra.mxu0 %v1482_v21  ;;  %1841 = vmatprep.subr.mxu1 %v1530_v48  ;;  %v694_v48 = vsub.s32 2, %v2159_v41 }
 0x182   :  { %1808 = vmatprep.subr.mxu0 %v1497_v14  ;;  %1842 = vmatpush3.msra.mxu1 %v1514_v49 }
 0x183   :  { %1809 = vmatpush3.msra.mxu0 %v1481_v16  ;;  %1843 = vmatprep.subr.mxu1 %v1529_v51  ;;  %v695_v51 = vrot.slane %v2224_v53, %v694_v48  ;;  %v1687_v53 = vld [vmem:[#allocation10 + $0x20] sm:$0xff] }
 0x184   :  { %1810 = vmatprep.subr.mxu0 %v1496_v15  ;;  %1844 = vmatpush3.msra.mxu1 %v1513_v55 }
 0x185   :  { %1811 = vmatpush3.msra.mxu0 %v1480_v17  ;;  %1845 = vmatprep.subr.mxu1 %v1528_v57 }
 0x186   :  { %1812 = vmatprep.subr.mxu0 %v1495_v18  ;;  %1846 = vmatpush3.msra.mxu1 %v1512_v58 }
 0x187   :  { %1813 = vmatpush3.msra.mxu0 %v1479_v19  ;;  %1847 = vmatprep.subr.mxu1 %v1527_v60 }
 0x188   :  { %1814 = vmatprep.subr.mxu0 %v1494_v20  ;;  %1848 = vmatpush3.msra.mxu1 %v1511_v63 }
 0x189   :  { %1815 = vmatpush3.msra.mxu0 %v1478_v22  ;;  %1849 = vmatprep.subr.mxu1 %v1526_v8  ;;  %v1523_v22 = vld [vmem:[#allocation7 + $0x1a0] sm:$0xff] }
 0x18a   :  { %1816 = vmatprep.subr.mxu0 %v1493_v23  ;;  %1850 = vmatpush3.msra.mxu1 %v1510_v2 }
 0x18b   :  { %1817 = vmatpush3.msra.mxu0 %v1477_v24  ;;  %1851 = vmatprep.subr.mxu1 %v1525_v5  ;;  %v1507_v24 = vld [vmem:[#allocation7 + $0x120] sm:$0xff] }
 0x18c   :  { %1818 = vmatprep.subr.mxu0 %v1492_v25  ;;  %1852 = vmatpush3.msra.mxu1 %v1509_v7 }
 0x18d   :  { %1819 = vmatpush3.msra.mxu0 %v1476_v27  ;;  %1853 = vmatprep.subr.mxu1 %v1524_v9  ;;  %v1522_v27 = vld [vmem:[#allocation7 + $0x198] sm:$0xff] }
 0x18e   :  { %1820 = vmatprep.subr.mxu0 %v1491_v28  ;;  %1854 = vmatpush3.msra.mxu1 %v1508_v3  ;;  %v1506_v28 = vld [vmem:[#allocation7 + $0x118] sm:$0xff] }
 0x18f   :  { %1821 = vmatpush3.msra.mxu0 %v1475_v29  ;;  %1855 = vmatprep.subr.mxu1 %v1523_v22  ;;  %v1521_v29 = vld [vmem:[#allocation7 + $0x190] sm:$0xff] }
 0x190   :  { %1822 = vmatprep.subr.mxu0 %v1490_v30  ;;  %1856 = vmatpush3.msra.mxu1 %v1507_v24  ;;  %v1505_v30 = vld [vmem:[#allocation7 + $0x110] sm:$0xff] }
 0x191   :  { %1823 = vmatpush3.msra.mxu0 %v1474_v31  ;;  %v965_v62 = vpop.f32.mrf.mxu0  ;;  %1857 = vmatprep.subr.mxu1 %v1522_v27  ;;  %v1520_v31 = vld [vmem:[#allocation7 + $0x188] sm:$0xff] }
 0x192   :  { %1824 = vmatprep.subr.mxu0 %v1489_v32  ;;  %v966_v26 = vadd.f32 %v965_v62, %v895_v10  ;;  %1858 = vmatpush3.msra.mxu1 %v1506_v28  ;;  %v1504_v32 = vld [vmem:[#allocation7 + $0x108] sm:$0xff]  ;;  %v1686_v10 = vld [vmem:[#allocation10 + $0x18] sm:$0xff] }
 0x193   :  { %1825 = vmatpush3.msra.mxu0 %v1473_v33  ;;  %v1036_v12 = vpop.f32.mrf.mxu1  ;;  %v967_v52 = vpop.f32.mrf.mxu0  ;;  %1859 = vmatprep.subr.mxu1 %v1521_v29  ;;  %v1519_v33 = vld [vmem:[#allocation7 + $0x180] sm:$0xff] }
 0x194   :  { %1826 = vmatprep.subr.mxu0 %v1488_v34  ;;  %v968_v21 = vadd.f32 %v967_v52, %v897_v13  ;;  %v1037_v16 = vadd.f32 %v1036_v12, %v966_v26  ;;  %1860 = vmatpush3.msra.mxu1 %v1505_v30  ;;  %v1503_v34 = vld [vmem:[#allocation7 + $0x100] sm:$0xff]  ;;  %v1685_v12 = vld [vmem:[#allocation10 + $0x10] sm:$0xff]  ;;  %v1684_v52 = vld [vmem:[#allocation10 + $0x8] sm:$0xff] }
 0x195   :  { %1827 = vmatpush3.msra.mxu0 %v1472_v35  ;;  %v1038_v14 = vpop.f32.mrf.mxu1  ;;  %1861 = vmatprep.subr.mxu1 %v1520_v31  ;;  %v1698_v35 = vld [vmem:[#allocation10 + $0x78] sm:$0xff]  ;;  %v1683_v13 = vld [vmem:[#allocation10] sm:$0xff] }
 0x196   :  { %1828 = vmatprep.subr.mxu0 %v1487_v36  ;;  %v1039_v17 = vadd.f32 %v1038_v14, %v968_v21  ;;  %1862 = vmatpush3.msra.mxu1 %v1504_v32  ;;  %v1697_v36 = vld [vmem:[#allocation10 + $0x70] sm:$0xff] }
 0x197   :  { %1829 = vmatpush3.msra.mxu0 %v1471_v37  ;;  %1863 = vmatprep.subr.mxu1 %v1519_v33  ;;  %v1696_v37 = vld [vmem:[#allocation10 + $0x68] sm:$0xff] }
 0x198   :  { %1885 = vmatprep.subr.mxu0 %v2098_v42  ;;  %1864 = vmatpush3.msra.mxu1 %v1503_v34 }
 0x1b3   :  { %v1107_v15 = vpop.f32.mrf.mxu0 }
 0x1b4   :  { %v1108_v18 = vadd.f32 %v1107_v15, %v1037_v16  ;;  %v1796_v16 = vld [vmem:[#allocation8] ss:$0 sm:$0xff] }
 0x1b5   :  { %v1109_v19 = vpop.f32.mrf.mxu0 }
 0x1b6   :  { %v1110_v20 = vadd.f32 %v1109_v19, %v1039_v17  ;;  %v1467_v25 = vmax.f32 %v1108_v18, 0.0 }
 0x1b8   :  { %v1468_v23 = vmax.f32 %v1110_v20, 0.0 }
 0x1ba   :  { %1606 = vmatprep.mubr.f32.mxu0 %v1468_v23  ;;  %v1797_v23 = vld [vmem:[#allocation11] ss:$0 sm:$0xff] }
 0x1bb   :  { %1607 = vmatmul.mubr.f32.vlgmr.msra.gmra.mxu0 %v1467_v25 }
 0x1bc   :  { %1886 = vmatpush3.msra.mxu0 %v1698_v35  ;;  %1917 = vmatprep.mubr.msk.f32.mxu0 %vm2099_vm0, %v2098_v42 }
 0x1bd   :  { %1887 = vmatprep.subr.mxu0 %v2098_v42 }
 0x1be   :  { %1888 = vmatpush3.msra.mxu0 %v1697_v36 }
 0x1bf   :  { %1889 = vmatprep.subr.mxu0 %v2098_v42 }
 0x1c0   :  { %1890 = vmatpush3.msra.mxu0 %v1696_v37 }
 0x1c1   :  { %1891 = vmatprep.subr.mxu0 %v2098_v42 }
 0x1c2   :  { %1892 = vmatpush3.msra.mxu0 %v1695_v38 }
 0x1c3   :  { %1893 = vmatprep.subr.mxu0 %v2098_v42 }
 0x1c4   :  { %1894 = vmatpush3.msra.mxu0 %v1694_v39 }
 0x1c5   :  { %1895 = vmatprep.subr.mxu0 %v2098_v42 }
 0x1c6   :  { %1896 = vmatpush3.msra.mxu0 %v1693_v40 }
 0x1c7   :  { %1897 = vmatprep.subr.mxu0 %v2098_v42 }
 0x1c8   :  { %1898 = vmatpush3.msra.mxu0 %v1692_v43 }
 0x1c9   :  { %1899 = vmatprep.subr.mxu0 %v2098_v42 }
 0x1ca   :  { %1900 = vmatpush3.msra.mxu0 %v1691_v44 }
 0x1cb   :  { %1901 = vmatprep.subr.mxu0 %v2098_v42 }
 0x1cc   :  { %1902 = vmatpush3.msra.mxu0 %v1690_v45 }
 0x1cd   :  { %1903 = vmatprep.subr.mxu0 %v2098_v42 }
 0x1ce   :  { %1904 = vmatpush3.msra.mxu0 %v1689_v46 }
 0x1cf   :  { %1905 = vmatprep.subr.mxu0 %v2098_v42 }
 0x1d0   :  { %1906 = vmatpush3.msra.mxu0 %v1688_v47 }
 0x1d1   :  { %1907 = vmatprep.subr.mxu0 %v2098_v42 }
 0x1d2   :  { %1908 = vmatpush3.msra.mxu0 %v1687_v53 }
 0x1d3   :  { %1909 = vmatprep.subr.mxu0 %v2098_v42 }
 0x1d4   :  { %1910 = vmatpush3.msra.mxu0 %v1686_v10 }
 0x1d5   :  { %v1178_v49 = vpop.f32.mrf.mxu1  ;;  %1911 = vmatprep.subr.mxu0 %v2098_v42 }
 0x1d6   :  { %v1179_v58 = vadd.f32 %v1178_v49, %v695_v51  ;;  %1912 = vmatpush3.msra.mxu0 %v1685_v12 }
 0x1d7   :  { %v1180_v54 = vpop.f32.mrf.mxu1  ;;  %1913 = vmatprep.subr.mxu0 %v2098_v42 }
 0x1d8   :  { %v1181_v60 = vadd.f32 %v1180_v54, %v699_v56  ;;  %1914 = vmatpush3.msra.mxu0 %v1684_v52 }
 0x1d9   :  { %1915 = vmatprep.subr.mxu0 %v2098_v42 }
 0x1da   :  { %1916 = vmatpush3.msra.mxu0 %v1683_v13 }
 0x1f5   :  { %v1249_v55 = vpop.f32.mrf.mxu0 }
 0x1f6   :  { %v1250_v61 = vadd.f32 %v1249_v55, %v1179_v58 }
 0x1f7   :  { %v1251_v59 = vpop.f32.mrf.mxu0 }
 0x1f8   :  { %v1252_v0 = vadd.f32 %v1251_v59, %v1181_v60 }
 0x216   :  { %v1320_v57 = vpop.f32.mrf.mxu1 }
 0x217   :  { %v1321_v1 = vadd.f32 %v1320_v57, %v1250_v61 }
 0x218   :  { %v1322_v63 = vpop.f32.mrf.mxu1 }
 0x219   :  { %v1323_v4 = vadd.f32 %v1322_v63, %v1252_v0 }
 0x237   :  { %v1391_v8 = vpop.f32.mrf.mxu0 }
 0x238   :  { %v1462_v2 = vpop.f32.mrf.mxu1  ;;  %v1392_v62 = vadd.f32 %v1391_v8, %v1321_v1 }
 0x239   :  { %v1393_v5 = vpop.f32.mrf.mxu0 }
 0x23a   :  { %v1394_v41 = vadd.f32 %v1393_v5, %v1323_v4  ;;  %v1463_v6 = vadd.f32 %v1462_v2, %v1392_v62  ;;  %v1464_v7 = vpop.f32.mrf.mxu1 }
 0x23c   :  { %v1465_v11 = vadd.f32 %v1464_v7, %v1394_v41  ;;  %v1469_v3 = vmax.f32 %v1463_v6, 0.0 }
 0x23e   :  { %v1470_v9 = vmax.f32 %v1465_v11, 0.0 }
 0x240   :  { %1676 = vmatprep.mubr.f32.mxu1 %v1470_v9 }
 0x241   :  { %1677 = vmatmul.mubr.f32.vlgmr.msra.gmra.mxu1 %v1469_v3 }
 0x27b   :  { %v1830_v26 = vpop.f32.mrf.mxu0 }
 0x27d   :  { %v1831_v21 = vpop.f32.mrf.mxu0 }
 0x27e   :  { %v1832_v14 = vadd.f32 %v1831_v21, %v1830_v26 }
 0x280   :  { %v1609_v18 = vadd.f32 %v1832_v14, %v1796_v16 }
 0x301   :  { %v1865_v15 = vpop.f32.mrf.mxu1 }
 0x303   :  { %v1866_v17 = vpop.f32.mrf.mxu1 }
 0x304   :  { %v1867_v19 = vadd.f32 %v1866_v17, %v1865_v15 }
 0x306   :  { %v1679_v20 = vadd.f32 %v1867_v19, %v1609_v18 }
 0x308   :  { %v1682_v22 = vmax.f32 %v1679_v20, 0.0 }
 0x30a   :  { %1918 = vmatmul.mubr.f32.vlgmr.msra.gmra.mxu0 %v1682_v22 }
 0x3ca   :  { %v1772_v24 = vpop.f32.mrf.mxu0 }
 0x3cb   :  { %v1773_v25 = vadd.f32 %v1797_v23, %v1772_v24 }
 0x3cc   :  { %v1919_v27 = vpop.f32.mrf.mxu0 }
 0x3cd   :  { %1776 = vst [vmem:[#allocation13] sm:$0x3] %v1773_v25 }
 0x3ce   :  { %2068 = shalt.err (!%p2065_p6)
}
 0x3cf   :  { %1786 = dma.vmem_to_hbm [thread:$0]  %s1784_s15, 32, %s2259_s7, [#allocation4]  }
 0x3d0   :  { %2085 = dma.done.wait [#allocation4], 32  }
 0x3d1   :  { %2086 = vsyncadd [#allocation4], 4294967264 }
 0x3d2   :  { %1790 = vsyncpa [#allocation3], 1 }
 0x3d3   :  { %1791 = vsyncpa [#allocation6], 1 }
 0x3d4   :  { %1792 = vsyncpa [#allocation9], 1 }
 0x3d5   :  { %1793 = vsyncpa [#allocation12], 1 }
 0x3d6   :  { %1794 = vsyncpa [#allocation4], 1 }

</bundles_post_ra>
